<compile_context>
chip_gen: v5e
topology: v5e:2x2
jax: 0.10.0
libtpu: 0.0.40
codegen_flags: <defaults>
</compile_context>

<pallas_src>
import functools
import math

import jax
import jax.numpy as jnp
from jax.experimental import pallas as pl
from jax.experimental.pallas import tpu as pltpu


def _leaky_relu(v):
    return jnp.where(v > 0, v, 0.01 * v)


def _fused_forward_kernel(cols1_ref, w1_ref, sh1_ref, wl_ref, shl_ref,
                          wqkv_ref, bqkv_ref, wo_ref, bo_ref,
                          wa_ref, ba_ref, wpool_ref, bpool_ref,
                          wmisc_ref, bmisc_ref,
                          act_ref, misc_ref,
                          *, H, W, num_heads, num_layers):
    S = H * W
    D = wo_ref.shape[0]
    head_dim = D // num_heads
    f32 = jnp.float32
    bf16 = jnp.bfloat16
    P = W + 1  # zero-pad rows on each side of the flattened token axis

    # ---- conv1 + folded BN(eval) + LeakyReLU: one im2col matmul ------------
    cols = cols1_ref[0].astype(bf16)                              # (S, 9*Cin)
    y = jnp.dot(cols, w1_ref[...], preferred_element_type=f32) + sh1_ref[...]
    x = _leaky_relu(y)                                            # (S, D) f32

    # ---- residual 3x3 conv blocks -------------------------------------------
    # Column-boundary masks depend only on dx -> hoisted out of the layer
    # loop.  Row (dy) boundaries are handled by the zero padding itself.
    ww = jax.lax.broadcasted_iota(jnp.int32, (S, 1), 0) % W
    col_ok = {1: ww < (W - 1), -1: ww >= 1}
    zpad = jnp.zeros((P, D), bf16)

    for layer in range(num_layers):
        xb = x.astype(bf16)
        xpad = jnp.concatenate([zpad, xb, zpad], axis=0)          # (S + 2P, D)
        pieces = []
        for dy in (-1, 0, 1):
            for dx in (-1, 0, 1):
                off = dy * W + dx
                xs = xpad[P + off:P + off + S, :]                 # static slice
                if dx != 0:
                    xs = jnp.where(col_ok[dx], xs, 0.0)
                pieces.append(xs)
        xcat = jnp.concatenate(pieces, axis=1)                    # (S, 9*D) bf16
        y = jnp.dot(xcat, wl_ref[layer],
                    preferred_element_type=f32) + shl_ref[layer]
        x = _leaky_relu(y) + x            # Dropout == identity in eval mode.

    # ---- multi-head self-attention over the S tokens ------------------------
    xb = x.astype(bf16)
    qkv = jnp.dot(xb, wqkv_ref[...], preferred_element_type=f32) + bqkv_ref[...]
    q = qkv[:, 0:D].astype(bf16)          # 1/sqrt(head_dim) folded into W_q/b_q
    k = qkv[:, D:2 * D]
    v = qkv[:, 2 * D:3 * D]
    lane = jax.lax.broadcasted_iota(jnp.int32, (1, D), 1)
    ctx = jnp.zeros((S, D), f32)
    for h in range(num_heads):
        m = (lane >= h * head_dim) & (lane < (h + 1) * head_dim)
        kh = jnp.where(m, k, 0.0).astype(bf16)   # other heads' lanes zeroed
        vh = jnp.where(m, v, 0.0).astype(bf16)
        s = jax.lax.dot_general(q, kh, (((1,), (1,)), ((), ())),
                                preferred_element_type=f32)       # (S, S)
        s = s - jnp.max(s, axis=-1, keepdims=True)
        p = jnp.exp(s)
        p = p * pl.reciprocal(jnp.sum(p, axis=-1, keepdims=True), approx=True)
        ctx = ctx + jnp.dot(p.astype(bf16), vh, preferred_element_type=f32)
    x = jnp.dot(ctx.astype(bf16), wo_ref[...],
                preferred_element_type=f32) + bo_ref[...]         # (S, D) f32

    # ---- heads ----------------------------------------------------------------
    # Action head (1x1 conv); lane-dense 128-wide output slab.
    act_ref[0] = jnp.dot(x, wa_ref[...], preferred_element_type=f32) + ba_ref[...]

    # Value + size heads share the global average pool; results packed into one
    # lane-dense (1, 128) row: [value, size0, size1, 0, ...].
    pooled = jnp.mean(x, axis=0, keepdims=True)                   # (1, D)
    yp = jnp.dot(pooled, wpool_ref[...], preferred_element_type=f32) + bpool_ref[...]
    lane_p = jax.lax.broadcasted_iota(jnp.int32, (1, yp.shape[1]), 1)
    z = jnp.where(lane_p == 0, yp, _leaky_relu(yp))   # LeakyReLU on MLP part only
    misc_ref[0] = jnp.dot(z, wmisc_ref[...], preferred_element_type=f32) + bmisc_ref[...]


def forward(params, x_nchw, num_heads=4, num_colors=10):
    B, Cin, H, W = x_nchw.shape
    S = H * W
    num_layers = params["wl"].shape[0]
    nc_pad = params["wa"].shape[1]

    # NCHW -> NHWC, im2col for the FIRST conv only (9*Cin columns; tiny).
    xt = jnp.transpose(x_nchw, (0, 2, 3, 1))
    xp = jnp.pad(xt, ((0, 0), (1, 1), (1, 1), (0, 0)))
    cols1 = jnp.concatenate(
        [xp[:, ky:ky + H, kx:kx + W, :] for ky in range(3) for kx in range(3)],
        axis=-1).reshape(B, S, 9 * Cin)

    kernel = functools.partial(_fused_forward_kernel, H=H, W=W,
                               num_heads=num_heads, num_layers=num_layers)

    def full(a):
        nd = a.ndim
        return pl.BlockSpec(a.shape, lambda b, _nd=nd: (0,) * _nd)

    act_out, misc_out = pl.pallas_call(
        kernel,
        out_shape=(jax.ShapeDtypeStruct((B, S, nc_pad), jnp.float32),
                   jax.ShapeDtypeStruct((B, 1, 128), jnp.float32)),
        grid=(B,),
        in_specs=[pl.BlockSpec((1, S, 9 * Cin), lambda b: (b, 0, 0)),
                  full(params["w1"]), full(params["sh1"]),
                  full(params["wl"]), full(params["shl"]),
                  full(params["wqkv"]), full(params["bqkv"]),
                  full(params["wo"]), full(params["bo"]),
                  full(params["wa"]), full(params["ba"]),
                  full(params["wpool"]), full(params["bpool"]),
                  full(params["wmisc"]), full(params["bmisc"])],
        out_specs=(pl.BlockSpec((1, S, nc_pad), lambda b: (b, 0, 0)),
                   pl.BlockSpec((1, 1, 128), lambda b: (b, 0, 0))),
        compiler_params=pltpu.CompilerParams(dimension_semantics=("parallel",)),
    )(cols1, params["w1"], params["sh1"], params["wl"], params["shl"],
      params["wqkv"], params["bqkv"], params["wo"], params["bo"],
      params["wa"], params["ba"], params["wpool"], params["bpool"],
      params["wmisc"], params["bmisc"])

    action = act_out[:, :, :num_colors].reshape(B, H, W, num_colors)
    action_logits = jnp.transpose(action, (0, 3, 1, 2))       # (B, num_colors, H, W)
    value = misc_out[:, 0, 0:1]                               # (B, 1)
    size_logits = misc_out[:, 0, 1:3]                         # (B, 2)
    return action_logits, value, size_logits


def init_params(key, input_dim=1, hidden_dim=128, num_layers=6,
                num_colors=10, num_heads=4):
    """Random parameters in PyTorch-equivalent layout, folded/packed for the kernel."""
    eps = 1e-5
    D = hidden_dim
    keys = iter(jax.random.split(key, 8 * (num_layers + 1) + 32))

    def nrm(shape, s=0.05):
        return s * jax.random.normal(next(keys), shape, jnp.float32)

    def fold_bn(gamma, beta, mean, var, conv_b):
        scale = gamma / jnp.sqrt(var + eps)
        shift = beta + (conv_b - mean) * scale
        return scale, shift

    # conv1: weight stored (ky, kx, Cin, Cout) == torch (Cout, Cin, ky, kx) transposed;
    # BN(eval) scale folded into the output channels of the weight.
    w1c = nrm((3, 3, input_dim, D))
    b1c = nrm((D,), 0.01)
    g1, be1 = 1.0 + nrm((D,), 0.1), nrm((D,), 0.1)
    s1, sh1 = fold_bn(g1, be1, jnp.zeros((D,)), jnp.ones((D,)), b1c)
    w1 = (w1c * s1).reshape(9 * input_dim, D)

    wl, shl = [], []
    for _ in range(num_layers):
        w = nrm((3, 3, D, D))
        bc = nrm((D,), 0.01)
        g, be = 1.0 + nrm((D,), 0.1), nrm((D,), 0.1)
        sc, sh = fold_bn(g, be, jnp.zeros((D,)), jnp.ones((D,)), bc)
        wl.append((w * sc).reshape(9 * D, D))                 # tap-major rows
        shl.append(sh.reshape(1, D))
    wl = jnp.stack(wl, axis=0)                                # (L, 9*D, D)
    shl = jnp.stack(shl, axis=0)                              # (L, 1, D)

    # Attention: linear weights stored as (in, out); fuse QKV, fold 1/sqrt(hd) into Q.
    wq, bq = nrm((D, D)), nrm((D,), 0.01)
    wk, bk = nrm((D, D)), nrm((D,), 0.01)
    wv, bv = nrm((D, D)), nrm((D,), 0.01)
    wo, bo = nrm((D, D)), nrm((D,), 0.01)
    scale = 1.0 / math.sqrt(D // num_heads)
    wqkv = jnp.concatenate([wq * scale, wk, wv], axis=1)      # (D, 3D)
    bqkv = jnp.concatenate([bq * scale, bk, bv]).reshape(1, 3 * D)

    # Heads.
    wa, ba = nrm((D, num_colors)), nrm((num_colors,), 0.01)   # action 1x1 conv
    wvh, bvh = nrm((D, 1)), nrm((1,), 0.01)                   # value 1x1 conv
    w1m, b1m = nrm((D, 64)), nrm((64,), 0.01)                 # size MLP layer 1
    w2m, b2m = nrm((64, 2)), nrm((2,), 0.01)                  # size MLP layer 2

    nc_pad = ((num_colors + 127) // 128) * 128
    wa_pad = jnp.pad(wa, ((0, 0), (0, nc_pad - num_colors)))
    ba_pad = jnp.pad(ba, (0, nc_pad - num_colors)).reshape(1, nc_pad)

    # Packed pooled heads: y = pooled @ wpool + bpool -> [value | size hidden(64)]
    wpool = jnp.concatenate([wvh, w1m], axis=1)               # (D, 65)
    bpool = jnp.concatenate([bvh, b1m]).reshape(1, 65)
    # misc = z @ wmisc + bmisc -> lane 0 = value (identity), lanes 1:3 = size logits
    wmisc = jnp.zeros((65, 128), jnp.float32)
    wmisc = wmisc.at[0, 0].set(1.0)
    wmisc = wmisc.at[1:65, 1:3].set(w2m)
    bmisc = jnp.zeros((1, 128), jnp.float32).at[0, 1:3].set(b2m)

    return {
        "w1": w1.astype(jnp.bfloat16),
        "sh1": sh1.reshape(1, D),
        "wl": wl.astype(jnp.bfloat16),
        "shl": shl,
        "wqkv": wqkv.astype(jnp.bfloat16),
        "bqkv": bqkv,
        "wo": wo.astype(jnp.bfloat16),
        "bo": bo.reshape(1, D),
        "wa": wa_pad, "ba": ba_pad,
        "wpool": wpool, "bpool": bpool,
        "wmisc": wmisc, "bmisc": bmisc,
    }


if __name__ == "__main__":
    key = jax.random.PRNGKey(0)
    pkey, xkey = jax.random.split(key)

    B, Cin, H, W = 2, 1, 8, 8
    hidden_dim, num_layers, num_colors, num_heads = 128, 2, 10, 4

    params = init_params(pkey, Cin, hidden_dim, num_layers, num_colors, num_heads)
    x = jax.random.normal(xkey, (B, Cin, H, W), dtype=jnp.float32)

    fwd = jax.jit(functools.partial(forward, num_heads=num_heads,
                                    num_colors=num_colors))
    action_logits, value, size_logits = fwd(params, x)
    jax.block_until_ready((action_logits, value, size_logits))

    assert action_logits.shape == (B, num_colors, H, W), action_logits.shape
    assert value.shape == (B, 1), value.shape
    assert size_logits.shape == (B, 2), size_logits.shape
    assert bool(jnp.all(jnp.isfinite(action_logits)))
    assert bool(jnp.all(jnp.isfinite(value)))
    assert bool(jnp.all(jnp.isfinite(size_logits)))

    print("KERNEL_OK")
</pallas_src>

<mosaic_0001>
module attributes {stable_mosaic.version = 11 : i64} {
  func.func @_fused_forward_kernel(%arg0: i32, %arg1: memref<1x64x9xf32, #tpu.memory_space<vmem>>, %arg2: memref<9x128xbf16, #tpu.memory_space<vmem>>, %arg3: memref<1x128xf32, #tpu.memory_space<vmem>>, %arg4: memref<2x1152x128xbf16, #tpu.memory_space<vmem>>, %arg5: memref<2x1x128xf32, #tpu.memory_space<vmem>>, %arg6: memref<128x384xbf16, #tpu.memory_space<vmem>>, %arg7: memref<1x384xf32, #tpu.memory_space<vmem>>, %arg8: memref<128x128xbf16, #tpu.memory_space<vmem>>, %arg9: memref<1x128xf32, #tpu.memory_space<vmem>>, %arg10: memref<128x128xf32, #tpu.memory_space<vmem>>, %arg11: memref<1x128xf32, #tpu.memory_space<vmem>>, %arg12: memref<128x65xf32, #tpu.memory_space<vmem>>, %arg13: memref<1x65xf32, #tpu.memory_space<vmem>>, %arg14: memref<65x128xf32, #tpu.memory_space<vmem>>, %arg15: memref<1x128xf32, #tpu.memory_space<vmem>>, %arg16: memref<1x64x128xf32, #tpu.memory_space<vmem>>, %arg17: memref<1x1x128xf32, #tpu.memory_space<vmem>>) attributes {dimension_semantics = [#tpu.dimension_semantics<parallel>], iteration_bounds = array<i64: 2>, scalar_prefetch = 0 : i64, scratch_operands = 0 : i64, tpu.core_type = #tpu.core_type<tc>, window_params = [{transform_indices = @transform_0, window_bounds = array<i64: 1, 64, 9>}, {pipeline_mode = #tpu.pipeline_mode<synchronous>, transform_indices = @transform_1, window_bounds = array<i64: 9, 128>}, {pipeline_mode = #tpu.pipeline_mode<synchronous>, transform_indices = @transform_2, window_bounds = array<i64: 1, 128>}, {pipeline_mode = #tpu.pipeline_mode<synchronous>, transform_indices = @transform_3, window_bounds = array<i64: 2, 1152, 128>}, {pipeline_mode = #tpu.pipeline_mode<synchronous>, transform_indices = @transform_4, window_bounds = array<i64: 2, 1, 128>}, {pipeline_mode = #tpu.pipeline_mode<synchronous>, transform_indices = @transform_5, window_bounds = array<i64: 128, 384>}, {pipeline_mode = #tpu.pipeline_mode<synchronous>, transform_indices = @transform_6, window_bounds = array<i64: 1, 384>}, {pipeline_mode = #tpu.pipeline_mode<synchronous>, transform_indices = @transform_7, window_bounds = array<i64: 128, 128>}, {pipeline_mode = #tpu.pipeline_mode<synchronous>, transform_indices = @transform_8, window_bounds = array<i64: 1, 128>}, {pipeline_mode = #tpu.pipeline_mode<synchronous>, transform_indices = @transform_9, window_bounds = array<i64: 128, 128>}, {pipeline_mode = #tpu.pipeline_mode<synchronous>, transform_indices = @transform_10, window_bounds = array<i64: 1, 128>}, {pipeline_mode = #tpu.pipeline_mode<synchronous>, transform_indices = @transform_11, window_bounds = array<i64: 128, 65>}, {pipeline_mode = #tpu.pipeline_mode<synchronous>, transform_indices = @transform_12, window_bounds = array<i64: 1, 65>}, {pipeline_mode = #tpu.pipeline_mode<synchronous>, transform_indices = @transform_13, window_bounds = array<i64: 65, 128>}, {pipeline_mode = #tpu.pipeline_mode<synchronous>, transform_indices = @transform_14, window_bounds = array<i64: 1, 128>}, {transform_indices = @transform_15, window_bounds = array<i64: 1, 64, 128>}, {transform_indices = @transform_16, window_bounds = array<i64: 1, 1, 128>}]} {
    %c0 = arith.constant 0 : index
    %c0_0 = arith.constant 0 : index
    %c0_1 = arith.constant 0 : index
    %0 = vector.load %arg1[%c0, %c0_0, %c0_1] : memref<1x64x9xf32, #tpu.memory_space<vmem>>, vector<1x64x9xf32>
    %1 = vector.shape_cast %0 : vector<1x64x9xf32> to vector<64x9xf32>
    %2 = arith.truncf %1 : vector<64x9xf32> to vector<64x9xbf16>
    %c0_2 = arith.constant 0 : index
    %c0_3 = arith.constant 0 : index
    %3 = vector.load %arg2[%c0_2, %c0_3] : memref<9x128xbf16, #tpu.memory_space<vmem>>, vector<9x128xbf16>
    %cst = arith.constant dense<0.000000e+00> : vector<64x128xf32>
    %4 = tpu.matmul %2, %3, %cst {dimension_numbers = #tpu.dot_dimension_numbers<[1], [0], [0], [1], [0, 0, 1, 1], [], []>} : vector<64x9xbf16>, vector<9x128xbf16>, vector<64x128xf32> -> vector<64x128xf32>
    %c0_4 = arith.constant 0 : index
    %c0_5 = arith.constant 0 : index
    %5 = vector.load %arg3[%c0_4, %c0_5] : memref<1x128xf32, #tpu.memory_space<vmem>>, vector<1x128xf32>
    %6 = vector.broadcast %5 : vector<1x128xf32> to vector<64x128xf32>
    %7 = arith.addf %4, %6 : vector<64x128xf32>
    %cst_6 = arith.constant 0.000000e+00 : f32
    %8 = vector.broadcast %cst_6 : f32 to vector<64x128xf32>
    %9 = arith.cmpf ogt, %7, %8 : vector<64x128xf32>
    %cst_7 = arith.constant 0.00999999977 : f32
    %10 = vector.broadcast %cst_7 : f32 to vector<64x128xf32>
    %11 = arith.mulf %10, %7 : vector<64x128xf32>
    %12 = arith.select %9, %7, %11 : vector<64x128xi1>, vector<64x128xf32>
    %13 = tpu.iota {dimensions = array<i32: 0>} : vector<64x1xi32>
    %c8_i32 = arith.constant 8 : i32
    %c0_i32 = arith.constant 0 : i32
    %14 = arith.cmpi eq, %c8_i32, %c0_i32 : i32
    %c1_i32 = arith.constant 1 : i32
    %15 = arith.select %14, %c1_i32, %c8_i32 : i32
    %16 = vector.broadcast %15 : i32 to vector<64x1xi32>
    %17 = arith.remsi %13, %16 : vector<64x1xi32>
    %c0_i32_8 = arith.constant 0 : i32
    %18 = vector.broadcast %c0_i32_8 : i32 to vector<64x1xi32>
    %19 = arith.cmpi ne, %17, %18 : vector<64x1xi32>
    %c0_i32_9 = arith.constant 0 : i32
    %20 = vector.broadcast %c0_i32_9 : i32 to vector<64x1xi32>
    %21 = arith.cmpi slt, %17, %20 : vector<64x1xi32>
    %c0_i32_10 = arith.constant 0 : i32
    %22 = arith.cmpi slt, %15, %c0_i32_10 : i32
    %23 = vector.broadcast %22 : i1 to vector<64x1xi1>
    %24 = vector.broadcast %23 : vector<64x1xi1> to vector<64x1xi1>
    %25 = arith.xori %21, %24 : vector<64x1xi1>
    %26 = arith.andi %25, %19 : vector<64x1xi1>
    %27 = vector.broadcast %15 : i32 to vector<64x1xi32>
    %28 = arith.addi %17, %27 : vector<64x1xi32>
    %29 = arith.select %26, %28, %17 : vector<64x1xi1>, vector<64x1xi32>
    %c7_i32 = arith.constant 7 : i32
    %30 = vector.broadcast %c7_i32 : i32 to vector<64x1xi32>
    %31 = arith.cmpi slt, %29, %30 : vector<64x1xi32>
    %c1_i32_11 = arith.constant 1 : i32
    %32 = vector.broadcast %c1_i32_11 : i32 to vector<64x1xi32>
    %33 = arith.cmpi sge, %29, %32 : vector<64x1xi32>
    %cst_12 = arith.constant 0.000000e+00 : bf16
    %34 = vector.broadcast %cst_12 : bf16 to vector<9x128xbf16>
    %35 = arith.truncf %12 : vector<64x128xf32> to vector<64x128xbf16>
    %36 = tpu.concatenate %34, %35, %34 in 0 : vector<9x128xbf16>, vector<64x128xbf16>, vector<9x128xbf16> -> vector<82x128xbf16>
    %37 = vector.extract_strided_slice %36 {offsets = [0, 0], sizes = [64, 128], strides = [1, 1]} : vector<82x128xbf16> to vector<64x128xbf16>
    %cst_13 = arith.constant 0.000000e+00 : f32
    %38 = arith.truncf %cst_13 : f32 to bf16
    %39 = vector.shape_cast %33 : vector<64x1xi1> to vector<64x1xi1>
    %40 = vector.broadcast %39 : vector<64x1xi1> to vector<64x128xi1>
    %41 = vector.broadcast %38 : bf16 to vector<64x128xbf16>
    %42 = arith.select %40, %37, %41 : vector<64x128xi1>, vector<64x128xbf16>
    %43 = vector.extract_strided_slice %36 {offsets = [1, 0], sizes = [64, 128], strides = [1, 1]} : vector<82x128xbf16> to vector<64x128xbf16>
    %44 = vector.extract_strided_slice %36 {offsets = [2, 0], sizes = [64, 128], strides = [1, 1]} : vector<82x128xbf16> to vector<64x128xbf16>
    %cst_14 = arith.constant 0.000000e+00 : f32
    %45 = arith.truncf %cst_14 : f32 to bf16
    %46 = vector.shape_cast %31 : vector<64x1xi1> to vector<64x1xi1>
    %47 = vector.broadcast %46 : vector<64x1xi1> to vector<64x128xi1>
    %48 = vector.broadcast %45 : bf16 to vector<64x128xbf16>
    %49 = arith.select %47, %44, %48 : vector<64x128xi1>, vector<64x128xbf16>
    %50 = vector.extract_strided_slice %36 {offsets = [8, 0], sizes = [64, 128], strides = [1, 1]} : vector<82x128xbf16> to vector<64x128xbf16>
    %cst_15 = arith.constant 0.000000e+00 : f32
    %51 = arith.truncf %cst_15 : f32 to bf16
    %52 = vector.shape_cast %33 : vector<64x1xi1> to vector<64x1xi1>
    %53 = vector.broadcast %52 : vector<64x1xi1> to vector<64x128xi1>
    %54 = vector.broadcast %51 : bf16 to vector<64x128xbf16>
    %55 = arith.select %53, %50, %54 : vector<64x128xi1>, vector<64x128xbf16>
    %56 = vector.extract_strided_slice %36 {offsets = [9, 0], sizes = [64, 128], strides = [1, 1]} : vector<82x128xbf16> to vector<64x128xbf16>
    %57 = vector.extract_strided_slice %36 {offsets = [10, 0], sizes = [64, 128], strides = [1, 1]} : vector<82x128xbf16> to vector<64x128xbf16>
    %cst_16 = arith.constant 0.000000e+00 : f32
    %58 = arith.truncf %cst_16 : f32 to bf16
    %59 = vector.shape_cast %31 : vector<64x1xi1> to vector<64x1xi1>
    %60 = vector.broadcast %59 : vector<64x1xi1> to vector<64x128xi1>
    %61 = vector.broadcast %58 : bf16 to vector<64x128xbf16>
    %62 = arith.select %60, %57, %61 : vector<64x128xi1>, vector<64x128xbf16>
    %63 = vector.extract_strided_slice %36 {offsets = [16, 0], sizes = [64, 128], strides = [1, 1]} : vector<82x128xbf16> to vector<64x128xbf16>
    %cst_17 = arith.constant 0.000000e+00 : f32
    %64 = arith.truncf %cst_17 : f32 to bf16
    %65 = vector.shape_cast %33 : vector<64x1xi1> to vector<64x1xi1>
    %66 = vector.broadcast %65 : vector<64x1xi1> to vector<64x128xi1>
    %67 = vector.broadcast %64 : bf16 to vector<64x128xbf16>
    %68 = arith.select %66, %63, %67 : vector<64x128xi1>, vector<64x128xbf16>
    %69 = vector.extract_strided_slice %36 {offsets = [17, 0], sizes = [64, 128], strides = [1, 1]} : vector<82x128xbf16> to vector<64x128xbf16>
    %70 = vector.extract_strided_slice %36 {offsets = [18, 0], sizes = [64, 128], strides = [1, 1]} : vector<82x128xbf16> to vector<64x128xbf16>
    %cst_18 = arith.constant 0.000000e+00 : f32
    %71 = arith.truncf %cst_18 : f32 to bf16
    %72 = vector.shape_cast %31 : vector<64x1xi1> to vector<64x1xi1>
    %73 = vector.broadcast %72 : vector<64x1xi1> to vector<64x128xi1>
    %74 = vector.broadcast %71 : bf16 to vector<64x128xbf16>
    %75 = arith.select %73, %70, %74 : vector<64x128xi1>, vector<64x128xbf16>
    %76 = tpu.concatenate %42, %43, %49, %55, %56, %62, %68, %69, %75 in 1 : vector<64x128xbf16>, vector<64x128xbf16>, vector<64x128xbf16>, vector<64x128xbf16>, vector<64x128xbf16>, vector<64x128xbf16>, vector<64x128xbf16>, vector<64x128xbf16>, vector<64x128xbf16> -> vector<64x1152xbf16>
    %c0_19 = arith.constant 0 : index
    %c0_20 = arith.constant 0 : index
    %c0_21 = arith.constant 0 : index
    %77 = vector.load %arg4[%c0_19, %c0_20, %c0_21] : memref<2x1152x128xbf16, #tpu.memory_space<vmem>>, vector<1x1152x128xbf16>
    %78 = vector.shape_cast %77 : vector<1x1152x128xbf16> to vector<1152x128xbf16>
    %cst_22 = arith.constant dense<0.000000e+00> : vector<64x128xf32>
    %79 = tpu.matmul %76, %78, %cst_22 {dimension_numbers = #tpu.dot_dimension_numbers<[1], [0], [0], [1], [0, 0, 1, 1], [], []>} : vector<64x1152xbf16>, vector<1152x128xbf16>, vector<64x128xf32> -> vector<64x128xf32>
    %c0_23 = arith.constant 0 : index
    %c0_24 = arith.constant 0 : index
    %c0_25 = arith.constant 0 : index
    %80 = vector.load %arg5[%c0_23, %c0_24, %c0_25] : memref<2x1x128xf32, #tpu.memory_space<vmem>>, vector<1x1x128xf32>
    %81 = vector.shape_cast %80 : vector<1x1x128xf32> to vector<1x128xf32>
    %82 = vector.broadcast %81 : vector<1x128xf32> to vector<64x128xf32>
    %83 = arith.addf %79, %82 : vector<64x128xf32>
    %cst_26 = arith.constant 0.000000e+00 : f32
    %84 = vector.broadcast %cst_26 : f32 to vector<64x128xf32>
    %85 = arith.cmpf ogt, %83, %84 : vector<64x128xf32>
    %cst_27 = arith.constant 0.00999999977 : f32
    %86 = vector.broadcast %cst_27 : f32 to vector<64x128xf32>
    %87 = arith.mulf %86, %83 : vector<64x128xf32>
    %88 = arith.select %85, %83, %87 : vector<64x128xi1>, vector<64x128xf32>
    %89 = arith.addf %88, %12 : vector<64x128xf32>
    %90 = arith.truncf %89 : vector<64x128xf32> to vector<64x128xbf16>
    %91 = tpu.concatenate %34, %90, %34 in 0 : vector<9x128xbf16>, vector<64x128xbf16>, vector<9x128xbf16> -> vector<82x128xbf16>
    %92 = vector.extract_strided_slice %91 {offsets = [0, 0], sizes = [64, 128], strides = [1, 1]} : vector<82x128xbf16> to vector<64x128xbf16>
    %cst_28 = arith.constant 0.000000e+00 : f32
    %93 = arith.truncf %cst_28 : f32 to bf16
    %94 = vector.shape_cast %33 : vector<64x1xi1> to vector<64x1xi1>
    %95 = vector.broadcast %94 : vector<64x1xi1> to vector<64x128xi1>
    %96 = vector.broadcast %93 : bf16 to vector<64x128xbf16>
    %97 = arith.select %95, %92, %96 : vector<64x128xi1>, vector<64x128xbf16>
    %98 = vector.extract_strided_slice %91 {offsets = [1, 0], sizes = [64, 128], strides = [1, 1]} : vector<82x128xbf16> to vector<64x128xbf16>
    %99 = vector.extract_strided_slice %91 {offsets = [2, 0], sizes = [64, 128], strides = [1, 1]} : vector<82x128xbf16> to vector<64x128xbf16>
    %cst_29 = arith.constant 0.000000e+00 : f32
    %100 = arith.truncf %cst_29 : f32 to bf16
    %101 = vector.shape_cast %31 : vector<64x1xi1> to vector<64x1xi1>
    %102 = vector.broadcast %101 : vector<64x1xi1> to vector<64x128xi1>
    %103 = vector.broadcast %100 : bf16 to vector<64x128xbf16>
    %104 = arith.select %102, %99, %103 : vector<64x128xi1>, vector<64x128xbf16>
    %105 = vector.extract_strided_slice %91 {offsets = [8, 0], sizes = [64, 128], strides = [1, 1]} : vector<82x128xbf16> to vector<64x128xbf16>
    %cst_30 = arith.constant 0.000000e+00 : f32
    %106 = arith.truncf %cst_30 : f32 to bf16
    %107 = vector.shape_cast %33 : vector<64x1xi1> to vector<64x1xi1>
    %108 = vector.broadcast %107 : vector<64x1xi1> to vector<64x128xi1>
    %109 = vector.broadcast %106 : bf16 to vector<64x128xbf16>
    %110 = arith.select %108, %105, %109 : vector<64x128xi1>, vector<64x128xbf16>
    %111 = vector.extract_strided_slice %91 {offsets = [9, 0], sizes = [64, 128], strides = [1, 1]} : vector<82x128xbf16> to vector<64x128xbf16>
    %112 = vector.extract_strided_slice %91 {offsets = [10, 0], sizes = [64, 128], strides = [1, 1]} : vector<82x128xbf16> to vector<64x128xbf16>
    %cst_31 = arith.constant 0.000000e+00 : f32
    %113 = arith.truncf %cst_31 : f32 to bf16
    %114 = vector.shape_cast %31 : vector<64x1xi1> to vector<64x1xi1>
    %115 = vector.broadcast %114 : vector<64x1xi1> to vector<64x128xi1>
    %116 = vector.broadcast %113 : bf16 to vector<64x128xbf16>
    %117 = arith.select %115, %112, %116 : vector<64x128xi1>, vector<64x128xbf16>
    %118 = vector.extract_strided_slice %91 {offsets = [16, 0], sizes = [64, 128], strides = [1, 1]} : vector<82x128xbf16> to vector<64x128xbf16>
    %cst_32 = arith.constant 0.000000e+00 : f32
    %119 = arith.truncf %cst_32 : f32 to bf16
    %120 = vector.shape_cast %33 : vector<64x1xi1> to vector<64x1xi1>
    %121 = vector.broadcast %120 : vector<64x1xi1> to vector<64x128xi1>
    %122 = vector.broadcast %119 : bf16 to vector<64x128xbf16>
    %123 = arith.select %121, %118, %122 : vector<64x128xi1>, vector<64x128xbf16>
    %124 = vector.extract_strided_slice %91 {offsets = [17, 0], sizes = [64, 128], strides = [1, 1]} : vector<82x128xbf16> to vector<64x128xbf16>
    %125 = vector.extract_strided_slice %91 {offsets = [18, 0], sizes = [64, 128], strides = [1, 1]} : vector<82x128xbf16> to vector<64x128xbf16>
    %cst_33 = arith.constant 0.000000e+00 : f32
    %126 = arith.truncf %cst_33 : f32 to bf16
    %127 = vector.shape_cast %31 : vector<64x1xi1> to vector<64x1xi1>
    %128 = vector.broadcast %127 : vector<64x1xi1> to vector<64x128xi1>
    %129 = vector.broadcast %126 : bf16 to vector<64x128xbf16>
    %130 = arith.select %128, %125, %129 : vector<64x128xi1>, vector<64x128xbf16>
    %131 = tpu.concatenate %97, %98, %104, %110, %111, %117, %123, %124, %130 in 1 : vector<64x128xbf16>, vector<64x128xbf16>, vector<64x128xbf16>, vector<64x128xbf16>, vector<64x128xbf16>, vector<64x128xbf16>, vector<64x128xbf16>, vector<64x128xbf16>, vector<64x128xbf16> -> vector<64x1152xbf16>
    %c1 = arith.constant 1 : index
    %c0_34 = arith.constant 0 : index
    %c0_35 = arith.constant 0 : index
    %132 = vector.load %arg4[%c1, %c0_34, %c0_35] : memref<2x1152x128xbf16, #tpu.memory_space<vmem>>, vector<1x1152x128xbf16>
    %133 = vector.shape_cast %132 : vector<1x1152x128xbf16> to vector<1152x128xbf16>
    %cst_36 = arith.constant dense<0.000000e+00> : vector<64x128xf32>
    %134 = tpu.matmul %131, %133, %cst_36 {dimension_numbers = #tpu.dot_dimension_numbers<[1], [0], [0], [1], [0, 0, 1, 1], [], []>} : vector<64x1152xbf16>, vector<1152x128xbf16>, vector<64x128xf32> -> vector<64x128xf32>
    %c1_37 = arith.constant 1 : index
    %c0_38 = arith.constant 0 : index
    %c0_39 = arith.constant 0 : index
    %135 = vector.load %arg5[%c1_37, %c0_38, %c0_39] : memref<2x1x128xf32, #tpu.memory_space<vmem>>, vector<1x1x128xf32>
    %136 = vector.shape_cast %135 : vector<1x1x128xf32> to vector<1x128xf32>
    %137 = vector.broadcast %136 : vector<1x128xf32> to vector<64x128xf32>
    %138 = arith.addf %134, %137 : vector<64x128xf32>
    %cst_40 = arith.constant 0.000000e+00 : f32
    %139 = vector.broadcast %cst_40 : f32 to vector<64x128xf32>
    %140 = arith.cmpf ogt, %138, %139 : vector<64x128xf32>
    %cst_41 = arith.constant 0.00999999977 : f32
    %141 = vector.broadcast %cst_41 : f32 to vector<64x128xf32>
    %142 = arith.mulf %141, %138 : vector<64x128xf32>
    %143 = arith.select %140, %138, %142 : vector<64x128xi1>, vector<64x128xf32>
    %144 = arith.addf %143, %89 : vector<64x128xf32>
    %145 = arith.truncf %144 : vector<64x128xf32> to vector<64x128xbf16>
    %c0_42 = arith.constant 0 : index
    %c0_43 = arith.constant 0 : index
    %146 = vector.load %arg6[%c0_42, %c0_43] : memref<128x384xbf16, #tpu.memory_space<vmem>>, vector<128x384xbf16>
    %cst_44 = arith.constant dense<0.000000e+00> : vector<64x384xf32>
    %147 = tpu.matmul %145, %146, %cst_44 {dimension_numbers = #tpu.dot_dimension_numbers<[1], [0], [0], [1], [0, 0, 1, 1], [], []>} : vector<64x128xbf16>, vector<128x384xbf16>, vector<64x384xf32> -> vector<64x384xf32>
    %c0_45 = arith.constant 0 : index
    %c0_46 = arith.constant 0 : index
    %148 = vector.load %arg7[%c0_45, %c0_46] : memref<1x384xf32, #tpu.memory_space<vmem>>, vector<1x384xf32>
    %149 = vector.broadcast %148 : vector<1x384xf32> to vector<64x384xf32>
    %150 = arith.addf %147, %149 : vector<64x384xf32>
    %151 = vector.extract_strided_slice %150 {offsets = [0, 0], sizes = [64, 128], strides = [1, 1]} : vector<64x384xf32> to vector<64x128xf32>
    %152 = arith.truncf %151 : vector<64x128xf32> to vector<64x128xbf16>
    %153 = vector.extract_strided_slice %150 {offsets = [0, 128], sizes = [64, 128], strides = [1, 1]} : vector<64x384xf32> to vector<64x128xf32>
    %154 = vector.extract_strided_slice %150 {offsets = [0, 256], sizes = [64, 128], strides = [1, 1]} : vector<64x384xf32> to vector<64x128xf32>
    %155 = tpu.iota {dimensions = array<i32: 1>} : vector<1x128xi32>
    %cst_47 = arith.constant 0.000000e+00 : f32
    %156 = vector.broadcast %cst_47 : f32 to vector<64x128xf32>
    %c0_i32_48 = arith.constant 0 : i32
    %157 = vector.broadcast %c0_i32_48 : i32 to vector<1x128xi32>
    %158 = arith.cmpi sge, %155, %157 : vector<1x128xi32>
    %c32_i32 = arith.constant 32 : i32
    %159 = vector.broadcast %c32_i32 : i32 to vector<1x128xi32>
    %160 = arith.cmpi slt, %155, %159 : vector<1x128xi32>
    %161 = arith.andi %158, %160 : vector<1x128xi1>
    %cst_49 = arith.constant 0.000000e+00 : f32
    %162 = vector.shape_cast %161 : vector<1x128xi1> to vector<1x128xi1>
    %163 = vector.broadcast %162 : vector<1x128xi1> to vector<64x128xi1>
    %164 = vector.broadcast %cst_49 : f32 to vector<64x128xf32>
    %165 = arith.select %163, %153, %164 : vector<64x128xi1>, vector<64x128xf32>
    %166 = arith.truncf %165 : vector<64x128xf32> to vector<64x128xbf16>
    %cst_50 = arith.constant 0.000000e+00 : f32
    %167 = vector.shape_cast %161 : vector<1x128xi1> to vector<1x128xi1>
    %168 = vector.broadcast %167 : vector<1x128xi1> to vector<64x128xi1>
    %169 = vector.broadcast %cst_50 : f32 to vector<64x128xf32>
    %170 = arith.select %168, %154, %169 : vector<64x128xi1>, vector<64x128xf32>
    %171 = arith.truncf %170 : vector<64x128xf32> to vector<64x128xbf16>
    %cst_51 = arith.constant dense<0.000000e+00> : vector<64x64xf32>
    %172 = tpu.matmul %152, %166, %cst_51 {dimension_numbers = #tpu.dot_dimension_numbers<[1], [1], [0], [0], [0, 0, 1, 0], [], []>} : vector<64x128xbf16>, vector<64x128xbf16>, vector<64x64xf32> -> vector<64x64xf32>
    %cst_52 = arith.constant dense<0xFF800000> : vector<64xf32>
    %173 = vector.multi_reduction <maximumf>, %172, %cst_52 [1] : vector<64x64xf32> to vector<64xf32>
    %174 = vector.shape_cast %173 : vector<64xf32> to vector<64x1xf32>
    %175 = vector.broadcast %174 : vector<64x1xf32> to vector<64x64xf32>
    %176 = arith.subf %172, %175 : vector<64x64xf32>
    %177 = math.exp %176 : vector<64x64xf32>
    %cst_53 = arith.constant dense<0.000000e+00> : vector<64xf32>
    %178 = vector.multi_reduction <add>, %177, %cst_53 [1] : vector<64x64xf32> to vector<64xf32>
    %179 = vector.shape_cast %178 : vector<64xf32> to vector<64x1xf32>
    %180 = tpu.reciprocal %179 {approx = true} : vector<64x1xf32> -> vector<64x1xf32>
    %181 = vector.broadcast %180 : vector<64x1xf32> to vector<64x64xf32>
    %182 = arith.mulf %177, %181 : vector<64x64xf32>
    %183 = arith.truncf %182 : vector<64x64xf32> to vector<64x64xbf16>
    %cst_54 = arith.constant dense<0.000000e+00> : vector<64x128xf32>
    %184 = tpu.matmul %183, %171, %cst_54 {dimension_numbers = #tpu.dot_dimension_numbers<[1], [0], [0], [1], [0, 0, 1, 1], [], []>} : vector<64x64xbf16>, vector<64x128xbf16>, vector<64x128xf32> -> vector<64x128xf32>
    %185 = arith.addf %156, %184 : vector<64x128xf32>
    %c32_i32_55 = arith.constant 32 : i32
    %186 = vector.broadcast %c32_i32_55 : i32 to vector<1x128xi32>
    %187 = arith.cmpi sge, %155, %186 : vector<1x128xi32>
    %c64_i32 = arith.constant 64 : i32
    %188 = vector.broadcast %c64_i32 : i32 to vector<1x128xi32>
    %189 = arith.cmpi slt, %155, %188 : vector<1x128xi32>
    %190 = arith.andi %187, %189 : vector<1x128xi1>
    %cst_56 = arith.constant 0.000000e+00 : f32
    %191 = vector.shape_cast %190 : vector<1x128xi1> to vector<1x128xi1>
    %192 = vector.broadcast %191 : vector<1x128xi1> to vector<64x128xi1>
    %193 = vector.broadcast %cst_56 : f32 to vector<64x128xf32>
    %194 = arith.select %192, %153, %193 : vector<64x128xi1>, vector<64x128xf32>
    %195 = arith.truncf %194 : vector<64x128xf32> to vector<64x128xbf16>
    %cst_57 = arith.constant 0.000000e+00 : f32
    %196 = vector.shape_cast %190 : vector<1x128xi1> to vector<1x128xi1>
    %197 = vector.broadcast %196 : vector<1x128xi1> to vector<64x128xi1>
    %198 = vector.broadcast %cst_57 : f32 to vector<64x128xf32>
    %199 = arith.select %197, %154, %198 : vector<64x128xi1>, vector<64x128xf32>
    %200 = arith.truncf %199 : vector<64x128xf32> to vector<64x128xbf16>
    %cst_58 = arith.constant dense<0.000000e+00> : vector<64x64xf32>
    %201 = tpu.matmul %152, %195, %cst_58 {dimension_numbers = #tpu.dot_dimension_numbers<[1], [1], [0], [0], [0, 0, 1, 0], [], []>} : vector<64x128xbf16>, vector<64x128xbf16>, vector<64x64xf32> -> vector<64x64xf32>
    %cst_59 = arith.constant dense<0xFF800000> : vector<64xf32>
    %202 = vector.multi_reduction <maximumf>, %201, %cst_59 [1] : vector<64x64xf32> to vector<64xf32>
    %203 = vector.shape_cast %202 : vector<64xf32> to vector<64x1xf32>
    %204 = vector.broadcast %203 : vector<64x1xf32> to vector<64x64xf32>
    %205 = arith.subf %201, %204 : vector<64x64xf32>
    %206 = math.exp %205 : vector<64x64xf32>
    %cst_60 = arith.constant dense<0.000000e+00> : vector<64xf32>
    %207 = vector.multi_reduction <add>, %206, %cst_60 [1] : vector<64x64xf32> to vector<64xf32>
    %208 = vector.shape_cast %207 : vector<64xf32> to vector<64x1xf32>
    %209 = tpu.reciprocal %208 {approx = true} : vector<64x1xf32> -> vector<64x1xf32>
    %210 = vector.broadcast %209 : vector<64x1xf32> to vector<64x64xf32>
    %211 = arith.mulf %206, %210 : vector<64x64xf32>
    %212 = arith.truncf %211 : vector<64x64xf32> to vector<64x64xbf16>
    %cst_61 = arith.constant dense<0.000000e+00> : vector<64x128xf32>
    %213 = tpu.matmul %212, %200, %cst_61 {dimension_numbers = #tpu.dot_dimension_numbers<[1], [0], [0], [1], [0, 0, 1, 1], [], []>} : vector<64x64xbf16>, vector<64x128xbf16>, vector<64x128xf32> -> vector<64x128xf32>
    %214 = arith.addf %185, %213 : vector<64x128xf32>
    %c64_i32_62 = arith.constant 64 : i32
    %215 = vector.broadcast %c64_i32_62 : i32 to vector<1x128xi32>
    %216 = arith.cmpi sge, %155, %215 : vector<1x128xi32>
    %c96_i32 = arith.constant 96 : i32
    %217 = vector.broadcast %c96_i32 : i32 to vector<1x128xi32>
    %218 = arith.cmpi slt, %155, %217 : vector<1x128xi32>
    %219 = arith.andi %216, %218 : vector<1x128xi1>
    %cst_63 = arith.constant 0.000000e+00 : f32
    %220 = vector.shape_cast %219 : vector<1x128xi1> to vector<1x128xi1>
    %221 = vector.broadcast %220 : vector<1x128xi1> to vector<64x128xi1>
    %222 = vector.broadcast %cst_63 : f32 to vector<64x128xf32>
    %223 = arith.select %221, %153, %222 : vector<64x128xi1>, vector<64x128xf32>
    %224 = arith.truncf %223 : vector<64x128xf32> to vector<64x128xbf16>
    %cst_64 = arith.constant 0.000000e+00 : f32
    %225 = vector.shape_cast %219 : vector<1x128xi1> to vector<1x128xi1>
    %226 = vector.broadcast %225 : vector<1x128xi1> to vector<64x128xi1>
    %227 = vector.broadcast %cst_64 : f32 to vector<64x128xf32>
    %228 = arith.select %226, %154, %227 : vector<64x128xi1>, vector<64x128xf32>
    %229 = arith.truncf %228 : vector<64x128xf32> to vector<64x128xbf16>
    %cst_65 = arith.constant dense<0.000000e+00> : vector<64x64xf32>
    %230 = tpu.matmul %152, %224, %cst_65 {dimension_numbers = #tpu.dot_dimension_numbers<[1], [1], [0], [0], [0, 0, 1, 0], [], []>} : vector<64x128xbf16>, vector<64x128xbf16>, vector<64x64xf32> -> vector<64x64xf32>
    %cst_66 = arith.constant dense<0xFF800000> : vector<64xf32>
    %231 = vector.multi_reduction <maximumf>, %230, %cst_66 [1] : vector<64x64xf32> to vector<64xf32>
    %232 = vector.shape_cast %231 : vector<64xf32> to vector<64x1xf32>
    %233 = vector.broadcast %232 : vector<64x1xf32> to vector<64x64xf32>
    %234 = arith.subf %230, %233 : vector<64x64xf32>
    %235 = math.exp %234 : vector<64x64xf32>
    %cst_67 = arith.constant dense<0.000000e+00> : vector<64xf32>
    %236 = vector.multi_reduction <add>, %235, %cst_67 [1] : vector<64x64xf32> to vector<64xf32>
    %237 = vector.shape_cast %236 : vector<64xf32> to vector<64x1xf32>
    %238 = tpu.reciprocal %237 {approx = true} : vector<64x1xf32> -> vector<64x1xf32>
    %239 = vector.broadcast %238 : vector<64x1xf32> to vector<64x64xf32>
    %240 = arith.mulf %235, %239 : vector<64x64xf32>
    %241 = arith.truncf %240 : vector<64x64xf32> to vector<64x64xbf16>
    %cst_68 = arith.constant dense<0.000000e+00> : vector<64x128xf32>
    %242 = tpu.matmul %241, %229, %cst_68 {dimension_numbers = #tpu.dot_dimension_numbers<[1], [0], [0], [1], [0, 0, 1, 1], [], []>} : vector<64x64xbf16>, vector<64x128xbf16>, vector<64x128xf32> -> vector<64x128xf32>
    %243 = arith.addf %214, %242 : vector<64x128xf32>
    %c96_i32_69 = arith.constant 96 : i32
    %244 = vector.broadcast %c96_i32_69 : i32 to vector<1x128xi32>
    %245 = arith.cmpi sge, %155, %244 : vector<1x128xi32>
    %c128_i32 = arith.constant 128 : i32
    %246 = vector.broadcast %c128_i32 : i32 to vector<1x128xi32>
    %247 = arith.cmpi slt, %155, %246 : vector<1x128xi32>
    %248 = arith.andi %245, %247 : vector<1x128xi1>
    %cst_70 = arith.constant 0.000000e+00 : f32
    %249 = vector.shape_cast %248 : vector<1x128xi1> to vector<1x128xi1>
    %250 = vector.broadcast %249 : vector<1x128xi1> to vector<64x128xi1>
    %251 = vector.broadcast %cst_70 : f32 to vector<64x128xf32>
    %252 = arith.select %250, %153, %251 : vector<64x128xi1>, vector<64x128xf32>
    %253 = arith.truncf %252 : vector<64x128xf32> to vector<64x128xbf16>
    %cst_71 = arith.constant 0.000000e+00 : f32
    %254 = vector.shape_cast %248 : vector<1x128xi1> to vector<1x128xi1>
    %255 = vector.broadcast %254 : vector<1x128xi1> to vector<64x128xi1>
    %256 = vector.broadcast %cst_71 : f32 to vector<64x128xf32>
    %257 = arith.select %255, %154, %256 : vector<64x128xi1>, vector<64x128xf32>
    %258 = arith.truncf %257 : vector<64x128xf32> to vector<64x128xbf16>
    %cst_72 = arith.constant dense<0.000000e+00> : vector<64x64xf32>
    %259 = tpu.matmul %152, %253, %cst_72 {dimension_numbers = #tpu.dot_dimension_numbers<[1], [1], [0], [0], [0, 0, 1, 0], [], []>} : vector<64x128xbf16>, vector<64x128xbf16>, vector<64x64xf32> -> vector<64x64xf32>
    %cst_73 = arith.constant dense<0xFF800000> : vector<64xf32>
    %260 = vector.multi_reduction <maximumf>, %259, %cst_73 [1] : vector<64x64xf32> to vector<64xf32>
    %261 = vector.shape_cast %260 : vector<64xf32> to vector<64x1xf32>
    %262 = vector.broadcast %261 : vector<64x1xf32> to vector<64x64xf32>
    %263 = arith.subf %259, %262 : vector<64x64xf32>
    %264 = math.exp %263 : vector<64x64xf32>
    %cst_74 = arith.constant dense<0.000000e+00> : vector<64xf32>
    %265 = vector.multi_reduction <add>, %264, %cst_74 [1] : vector<64x64xf32> to vector<64xf32>
    %266 = vector.shape_cast %265 : vector<64xf32> to vector<64x1xf32>
    %267 = tpu.reciprocal %266 {approx = true} : vector<64x1xf32> -> vector<64x1xf32>
    %268 = vector.broadcast %267 : vector<64x1xf32> to vector<64x64xf32>
    %269 = arith.mulf %264, %268 : vector<64x64xf32>
    %270 = arith.truncf %269 : vector<64x64xf32> to vector<64x64xbf16>
    %cst_75 = arith.constant dense<0.000000e+00> : vector<64x128xf32>
    %271 = tpu.matmul %270, %258, %cst_75 {dimension_numbers = #tpu.dot_dimension_numbers<[1], [0], [0], [1], [0, 0, 1, 1], [], []>} : vector<64x64xbf16>, vector<64x128xbf16>, vector<64x128xf32> -> vector<64x128xf32>
    %272 = arith.addf %243, %271 : vector<64x128xf32>
    %273 = arith.truncf %272 : vector<64x128xf32> to vector<64x128xbf16>
    %c0_76 = arith.constant 0 : index
    %c0_77 = arith.constant 0 : index
    %274 = vector.load %arg8[%c0_76, %c0_77] : memref<128x128xbf16, #tpu.memory_space<vmem>>, vector<128x128xbf16>
    %cst_78 = arith.constant dense<0.000000e+00> : vector<64x128xf32>
    %275 = tpu.matmul %273, %274, %cst_78 {dimension_numbers = #tpu.dot_dimension_numbers<[1], [0], [0], [1], [0, 0, 1, 1], [], []>} : vector<64x128xbf16>, vector<128x128xbf16>, vector<64x128xf32> -> vector<64x128xf32>
    %c0_79 = arith.constant 0 : index
    %c0_80 = arith.constant 0 : index
    %276 = vector.load %arg9[%c0_79, %c0_80] : memref<1x128xf32, #tpu.memory_space<vmem>>, vector<1x128xf32>
    %277 = vector.broadcast %276 : vector<1x128xf32> to vector<64x128xf32>
    %278 = arith.addf %275, %277 : vector<64x128xf32>
    %c0_81 = arith.constant 0 : index
    %c0_82 = arith.constant 0 : index
    %279 = vector.load %arg10[%c0_81, %c0_82] : memref<128x128xf32, #tpu.memory_space<vmem>>, vector<128x128xf32>
    %cst_83 = arith.constant dense<0.000000e+00> : vector<64x128xf32>
    %280 = tpu.matmul %278, %279, %cst_83 {dimension_numbers = #tpu.dot_dimension_numbers<[1], [0], [0], [1], [0, 0, 1, 1], [], []>} : vector<64x128xf32>, vector<128x128xf32>, vector<64x128xf32> -> vector<64x128xf32>
    %c0_84 = arith.constant 0 : index
    %c0_85 = arith.constant 0 : index
    %281 = vector.load %arg11[%c0_84, %c0_85] : memref<1x128xf32, #tpu.memory_space<vmem>>, vector<1x128xf32>
    %282 = vector.broadcast %281 : vector<1x128xf32> to vector<64x128xf32>
    %283 = arith.addf %280, %282 : vector<64x128xf32>
    %c0_86 = arith.constant 0 : index
    %c0_87 = arith.constant 0 : index
    %c0_88 = arith.constant 0 : index
    %284 = vector.load %arg16[%c0_86, %c0_87, %c0_88] : memref<1x64x128xf32, #tpu.memory_space<vmem>>, vector<1x64x128xf32>
    %285 = vector.shape_cast %284 : vector<1x64x128xf32> to vector<64x128xf32>
    %286 = vector.shape_cast %283 : vector<64x128xf32> to vector<1x64x128xf32>
    tpu.vector_store %arg16[%c0_86, %c0_87, %c0_88], %286 {strides = array<i32>} : memref<1x64x128xf32, #tpu.memory_space<vmem>>, vector<1x64x128xf32>,
    %cst_89 = arith.constant dense<0.000000e+00> : vector<128xf32>
    %287 = vector.multi_reduction <add>, %278, %cst_89 [0] : vector<64x128xf32> to vector<128xf32>
    %288 = vector.shape_cast %287 : vector<128xf32> to vector<1x128xf32>
    %cst_90 = arith.constant 6.400000e+01 : f32
    %289 = vector.broadcast %cst_90 : f32 to vector<1x128xf32>
    %290 = arith.divf %288, %289 : vector<1x128xf32>
    %c0_91 = arith.constant 0 : index
    %c0_92 = arith.constant 0 : index
    %291 = vector.load %arg12[%c0_91, %c0_92] : memref<128x65xf32, #tpu.memory_space<vmem>>, vector<128x65xf32>
    %cst_93 = arith.constant dense<0.000000e+00> : vector<1x65xf32>
    %292 = tpu.matmul %290, %291, %cst_93 {dimension_numbers = #tpu.dot_dimension_numbers<[1], [0], [0], [1], [0, 0, 1, 1], [], []>} : vector<1x128xf32>, vector<128x65xf32>, vector<1x65xf32> -> vector<1x65xf32>
    %c0_94 = arith.constant 0 : index
    %c0_95 = arith.constant 0 : index
    %293 = vector.load %arg13[%c0_94, %c0_95] : memref<1x65xf32, #tpu.memory_space<vmem>>, vector<1x65xf32>
    %294 = arith.addf %292, %293 : vector<1x65xf32>
    %295 = tpu.iota {dimensions = array<i32: 1>} : vector<1x65xi32>
    %c0_i32_96 = arith.constant 0 : i32
    %296 = vector.broadcast %c0_i32_96 : i32 to vector<1x65xi32>
    %297 = arith.cmpi eq, %295, %296 : vector<1x65xi32>
    %cst_97 = arith.constant 0.000000e+00 : f32
    %298 = vector.broadcast %cst_97 : f32 to vector<1x65xf32>
    %299 = arith.cmpf ogt, %294, %298 : vector<1x65xf32>
    %cst_98 = arith.constant 0.00999999977 : f32
    %300 = vector.broadcast %cst_98 : f32 to vector<1x65xf32>
    %301 = arith.mulf %300, %294 : vector<1x65xf32>
    %302 = arith.select %299, %294, %301 : vector<1x65xi1>, vector<1x65xf32>
    %303 = arith.select %297, %294, %302 : vector<1x65xi1>, vector<1x65xf32>
    %c0_99 = arith.constant 0 : index
    %c0_100 = arith.constant 0 : index
    %304 = vector.load %arg14[%c0_99, %c0_100] : memref<65x128xf32, #tpu.memory_space<vmem>>, vector<65x128xf32>
    %cst_101 = arith.constant dense<0.000000e+00> : vector<1x128xf32>
    %305 = tpu.matmul %303, %304, %cst_101 {dimension_numbers = #tpu.dot_dimension_numbers<[1], [0], [0], [1], [0, 0, 1, 1], [], []>} : vector<1x65xf32>, vector<65x128xf32>, vector<1x128xf32> -> vector<1x128xf32>
    %c0_102 = arith.constant 0 : index
    %c0_103 = arith.constant 0 : index
    %306 = vector.load %arg15[%c0_102, %c0_103] : memref<1x128xf32, #tpu.memory_space<vmem>>, vector<1x128xf32>
    %307 = arith.addf %305, %306 : vector<1x128xf32>
    %c0_104 = arith.constant 0 : index
    %c0_105 = arith.constant 0 : index
    %c0_106 = arith.constant 0 : index
    %308 = vector.load %arg17[%c0_104, %c0_105, %c0_106] : memref<1x1x128xf32, #tpu.memory_space<vmem>>, vector<1x1x128xf32>
    %309 = vector.shape_cast %308 : vector<1x1x128xf32> to vector<1x128xf32>
    %310 = vector.shape_cast %307 : vector<1x128xf32> to vector<1x1x128xf32>
    tpu.vector_store %arg17[%c0_104, %c0_105, %c0_106], %310 {strides = array<i32>} : memref<1x1x128xf32, #tpu.memory_space<vmem>>, vector<1x1x128xf32>,
    return
  }
  func.func @transform_0(%arg0: i32) -> (i32, i32, i32) {
    %c0_i32 = arith.constant 0 : i32
    %c0_i32_0 = arith.constant 0 : i32
    %c0_i32_1 = arith.constant 0 : i32
    return %arg0, %c0_i32, %c0_i32_0 : i32, i32, i32
  }
  func.func @transform_1(%arg0: i32) -> (i32, i32) {
    %c0_i32 = arith.constant 0 : i32
    %c0_i32_0 = arith.constant 0 : i32
    %c0_i32_1 = arith.constant 0 : i32
    return %c0_i32, %c0_i32_0 : i32, i32
  }
  func.func @transform_2(%arg0: i32) -> (i32, i32) {
    %c0_i32 = arith.constant 0 : i32
    %c0_i32_0 = arith.constant 0 : i32
    %c0_i32_1 = arith.constant 0 : i32
    return %c0_i32, %c0_i32_0 : i32, i32
  }
  func.func @transform_3(%arg0: i32) -> (i32, i32, i32) {
    %c0_i32 = arith.constant 0 : i32
    %c0_i32_0 = arith.constant 0 : i32
    %c0_i32_1 = arith.constant 0 : i32
    %c0_i32_2 = arith.constant 0 : i32
    return %c0_i32, %c0_i32_0, %c0_i32_1 : i32, i32, i32
  }
  func.func @transform_4(%arg0: i32) -> (i32, i32, i32) {
    %c0_i32 = arith.constant 0 : i32
    %c0_i32_0 = arith.constant 0 : i32
    %c0_i32_1 = arith.constant 0 : i32
    %c0_i32_2 = arith.constant 0 : i32
    return %c0_i32, %c0_i32_0, %c0_i32_1 : i32, i32, i32
  }
  func.func @transform_5(%arg0: i32) -> (i32, i32) {
    %c0_i32 = arith.constant 0 : i32
    %c0_i32_0 = arith.constant 0 : i32
    %c0_i32_1 = arith.constant 0 : i32
    return %c0_i32, %c0_i32_0 : i32, i32
  }
  func.func @transform_6(%arg0: i32) -> (i32, i32) {
    %c0_i32 = arith.constant 0 : i32
    %c0_i32_0 = arith.constant 0 : i32
    %c0_i32_1 = arith.constant 0 : i32
    return %c0_i32, %c0_i32_0 : i32, i32
  }
  func.func @transform_7(%arg0: i32) -> (i32, i32) {
    %c0_i32 = arith.constant 0 : i32
    %c0_i32_0 = arith.constant 0 : i32
    %c0_i32_1 = arith.constant 0 : i32
    return %c0_i32, %c0_i32_0 : i32, i32
  }
  func.func @transform_8(%arg0: i32) -> (i32, i32) {
    %c0_i32 = arith.constant 0 : i32
    %c0_i32_0 = arith.constant 0 : i32
    %c0_i32_1 = arith.constant 0 : i32
    return %c0_i32, %c0_i32_0 : i32, i32
  }
  func.func @transform_9(%arg0: i32) -> (i32, i32) {
    %c0_i32 = arith.constant 0 : i32
    %c0_i32_0 = arith.constant 0 : i32
    %c0_i32_1 = arith.constant 0 : i32
    return %c0_i32, %c0_i32_0 : i32, i32
  }
  func.func @transform_10(%arg0: i32) -> (i32, i32) {
    %c0_i32 = arith.constant 0 : i32
    %c0_i32_0 = arith.constant 0 : i32
    %c0_i32_1 = arith.constant 0 : i32
    return %c0_i32, %c0_i32_0 : i32, i32
  }
  func.func @transform_11(%arg0: i32) -> (i32, i32) {
    %c0_i32 = arith.constant 0 : i32
    %c0_i32_0 = arith.constant 0 : i32
    %c0_i32_1 = arith.constant 0 : i32
    return %c0_i32, %c0_i32_0 : i32, i32
  }
  func.func @transform_12(%arg0: i32) -> (i32, i32) {
    %c0_i32 = arith.constant 0 : i32
    %c0_i32_0 = arith.constant 0 : i32
    %c0_i32_1 = arith.constant 0 : i32
    return %c0_i32, %c0_i32_0 : i32, i32
  }
  func.func @transform_13(%arg0: i32) -> (i32, i32) {
    %c0_i32 = arith.constant 0 : i32
    %c0_i32_0 = arith.constant 0 : i32
    %c0_i32_1 = arith.constant 0 : i32
    return %c0_i32, %c0_i32_0 : i32, i32
  }
  func.func @transform_14(%arg0: i32) -> (i32, i32) {
    %c0_i32 = arith.constant 0 : i32
    %c0_i32_0 = arith.constant 0 : i32
    %c0_i32_1 = arith.constant 0 : i32
    return %c0_i32, %c0_i32_0 : i32, i32
  }
  func.func @transform_15(%arg0: i32) -> (i32, i32, i32) {
    %c0_i32 = arith.constant 0 : i32
    %c0_i32_0 = arith.constant 0 : i32
    %c0_i32_1 = arith.constant 0 : i32
    return %arg0, %c0_i32, %c0_i32_0 : i32, i32, i32
  }
  func.func @transform_16(%arg0: i32) -> (i32, i32, i32) {
    %c0_i32 = arith.constant 0 : i32
    %c0_i32_0 = arith.constant 0 : i32
    %c0_i32_1 = arith.constant 0 : i32
    return %arg0, %c0_i32, %c0_i32_0 : i32, i32, i32
  }
}

</mosaic_0001>

<bundles_post_ra>
// kernel: forward.1
= control target key start
LH: loop header
LB: loop body
LE: loop exit
PB: predicated region body
PF: predicated region fallthrough
CT: control target
= control target key end

     0   :  { %s8127_s0 = inlined_call_operand.vmem [shape: f32[2,64,9], index: 0, kind: input, shape index: {}]   ;;  %s8128_s1 = inlined_call_operand.vmem [shape: bf16[9,128], index: 1, kind: input, shape index: {}]   ;;  %s8129_s2 = inlined_call_operand.vmem [shape: f32[1,128], index: 2, kind: input, shape index: {}]   ;;  %s8130_s3 = inlined_call_operand.hbm [shape: bf16[2,1152,128], index: 3, kind: input, shape index: {}]   ;;  %s8131_s4 = inlined_call_operand.vmem [shape: f32[2,1,128], index: 4, kind: input, shape index: {}]   ;;  %s8132_s5 = inlined_call_operand.vmem [shape: bf16[128,384], index: 5, kind: input, shape index: {}]   ;;  %s8133_s6 = inlined_call_operand.vmem [shape: f32[1,384], index: 6, kind: input, shape index: {}]   ;;  %s8134_s7 = inlined_call_operand.vmem [shape: bf16[128,128], index: 7, kind: input, shape index: {}]   ;;  %s8135_s8 = inlined_call_operand.vmem [shape: f32[1,128], index: 8, kind: input, shape index: {}]   ;;  %s8136_s9 = inlined_call_operand.vmem [shape: f32[128,128], index: 9, kind: input, shape index: {}]   ;;  %s8137_s10 = inlined_call_operand.vmem [shape: f32[1,128], index: 10, kind: input, shape index: {}]   ;;  %s8138_s11 = inlined_call_operand.vmem [shape: f32[128,65], index: 11, kind: input, shape index: {}]   ;;  %s8139_s12 = inlined_call_operand.vmem [shape: f32[1,65], index: 12, kind: input, shape index: {}]   ;;  %s8140_s13 = inlined_call_operand.vmem [shape: f32[65,128], index: 13, kind: input, shape index: {}]   ;;  %s8141_s14 = inlined_call_operand.vmem [shape: f32[1,128], index: 14, kind: input, shape index: {}]   ;;  %s8142_s15 = inlined_call_operand.vmem [shape: f32[2,64,128], index: 15, kind: output, shape index: {0}]   ;;  %s8143_s16 = inlined_call_operand.vmem [shape: f32[2,1,128], index: 16, kind: output, shape index: {1}]  }
   0x1   :  { %8201 = sst [smem:[#allocation21_spill]] %s8127_s0 }
   0x2   :  { %22 = vsyncpa [#allocation3], 0  ;;  %s5980_s21 = smov 0  }
   0x3 LB: > { %s422_s24 = sshll.u32 %s8130_s3, 4  ;;  %s4651_s25 = sadd.s32 4294967295, %s5887_s21   ;;  %s5887_s21 = sphi %s5980_s21, %s28_s21   ;;  %s423_s24 = int_to_ptr.hbm [resolvable:$true] %s422_s24 }
   0x4   : > { %p4653_p0 = scmp.ge.s32.totalorder %s5887_s21, 1  ;;  %p405_p1 = scmp.lt.s32.totalorder %s5887_s21, 3 }
   0x5   : > { %p5696_p2 = scmp.eq.s32.totalorder %s4651_s25, 0  ;;  %s5889_s26 = smov [#allocation2]  }
   0x6   : > { %p406_p3 = pnand %p4653_p0, %p405_p1  ;;  %s424_s27 = sshll.u32 %s5889_s26, 4  ;;  %s425_s27 = int_to_ptr.vmem [resolvable:$true] %s424_s27 }
   0x7   : > { %s5890_s28 = smov 64   ;;  %s5891_s29 = smov 4  }
   0x8   : > { %p5692_p4 = pneg %p406_p3  ;;  %481 = sbr.rel (%p406_p3) target bundleno = 2413 (0x96d), region = 80 }
   0xa   : > { %p5693_p5 = pnand %p5696_p2, %p5692_p4 }
   0xc   : > { %5695 = dma.hbm_to_vmem [thread:$0]  (!%p5693_p5), %s423_s24, 18432, %s425_s27, [#allocation3], %s5890_s28, %s5890_s28, %s5891_s29  }
   0xd   : > { %5882 = dma.done.wait (%p5696_p2), [#allocation3], 18432  }
   0xe   : > { %5884 = vsyncadd (%p5696_p2), [#allocation3], 4294948864  ;;  %p535_p6 = scmp.lt.s32.totalorder %s4651_s25, 1  ;;  %vm8144_vm0 = vcmask 1043456   ;;  %vm8147_vm1 = vcmask 1044480   ;;  %v5892_v0 = vmov 65535   ;;  %v8154_v24 = vlaneseq }
   0xf   : > { %v589_v1 = vsel %vm8144_vm0, 4294967295, %v5892_v0  ;;  %s8202_s18 = sld [smem:[#allocation21_spill]]  ;;  %v4664_v2 = vld [vmem:[%s8128_s1] sm:$0xf]  ;;  %v5511_v3 = vld [vmem:[%s8128_s1] sm:$0x10] }
  0x10   : > { %s8442_s25 = smov (!%p535_p6, %s4651_s25), 1  ;;  %v590_v4 = vsel %vm8147_vm1, %v589_v1, 0  ;;  %v4665_v5 = vor.u32 %v5511_v3, %v4664_v2  ;;  %vm574_vm2 = vcmask 72704   ;;  %v5519_v13 = vld [vmem:[#allocation2 + $0x38] sm:$0xff]  ;;  %v5518_v20 = vld [vmem:[#allocation2 + $0x30] sm:$0xff]  ;;  %v5517_v21 = vld [vmem:[#allocation2 + $0x28] sm:$0xff] }
  0x11   : > { %s5509_s30 = sshll.u32 %s8442_s25, 6  ;;  %1838 = vmatpush.bf16.msra.mxu1 %v5519_v13  ;;  %v5516_v22 = vld [vmem:[#allocation2 + $0x20] sm:$0xff]  ;;  %v5515_v23 = vld [vmem:[#allocation2 + $0x18] sm:$0xff]  ;;  %v5514_v27 = vld [vmem:[#allocation2 + $0x10] sm:$0xff]  ;;  %v6008_v29 = vshrl.u32 %v8154_v24, 7  ;;  %v8155_v59 = vmov 0   ;;  %s547_s22 = scalar_lea.vmem %s8143_s16, %s8442_s25 }
  0x12   : > { %v592_v8 = vand.u32 %v4665_v5, %v590_v4  ;;  %v5535_v25 = vld [vmem:[#allocation2 + $0xb8] sm:$0xff]  ;;  %v5534_v30 = vld [vmem:[#allocation2 + $0xb0] sm:$0xff]  ;;  %v5513_v32 = vld [vmem:[#allocation2 + $0x8] sm:$0xff]  ;;  %v8225_v3 = vmov 0  ;;  %s8075_s23 = scalar_lea.vmem %s8142_s15, %s5509_s30 }
  0x13   : > { %v5543_v26 = vld [vmem:[#allocation2 + $0xf8] sm:$0xff]  ;;  %1896 = vmatpush.bf16.msra.mxu3 %v5535_v25  ;;  %v5542_v31 = vld [vmem:[#allocation2 + $0xf0] sm:$0xff]  ;;  %v649_v34 = vadd.s32 8, %v6008_v29  ;;  %v5533_v35 = vld [vmem:[#allocation2 + $0xa8] sm:$0xff]  ;;  %v660_v37 = vand.u32 7, %v6008_v29  ;;  %v6013_v41 = vadd.s32 16, %v6008_v29 }
  0x14   : > { %601 = vmatpush.bf16.msra.mxu0 %v592_v8  ;;  %v5527_v28 = vld [vmem:[#allocation2 + $0x78] sm:$0xff]  ;;  %v5526_v33 = vld [vmem:[#allocation2 + $0x70] sm:$0xff]  ;;  %v5541_v36 = vld [vmem:[#allocation2 + $0xe8] sm:$0xff]  ;;  %v6016_v42 = vadd.s32 24, %v6008_v29 }
  0x15   : > { %s539_s19 = scalar_lea.vmem %s8202_s18, %s5509_s30  ;;  %1839 = vmatpush.bf16.msra.mxu1 %v5518_v20  ;;  %1867 = vmatpush.bf16.msra.mxu2 %v5527_v28  ;;  %v5512_v38 = vld [vmem:[#allocation2] sm:$0xff]  ;;  %v5525_v39 = vld [vmem:[#allocation2 + $0x68] sm:$0xff]  ;;  %v667_v40 = vand.u32 7, %v649_v34  ;;  %vm6018_vm3 = vcmp.lt.s32.totalorder %v660_v37, 7  ;;  %v674_v48 = vand.u32 7, %v6013_v41  ;;  %v5531_v53 = vld [vmem:[#allocation2 + $0x98] sm:$0xff] }
  0x16   : > { %v551_v6 = vld [vmem:[%s539_s19] sm:$0xff]  ;;  %v552_v7 = vld [vmem:[%s539_s19 + $0x8] sm:$0xff]  ;;  %v553_v10 = vld [vmem:[%s539_s19 + $0x10] sm:$0xff]  ;;  %v681_v49 = vand.u32 7, %v6016_v42  ;;  %vm6056_vm11 = vcmp.ge.s32.totalorder %v660_v37, 1  ;;  %v653_v28 = vadd.s32 40, %v6008_v29  ;;  %v6118_v37 = vunpack.c.l.b16 %v8155_v59 }
  0x17   : > { %v559_v9 = vpack.c.bf16 %v552_v7, %v551_v6  ;;  %v554_v11 = vld [vmem:[%s539_s19 + $0x18] sm:$0xff]  ;;  %v555_v14 = vld [vmem:[%s539_s19 + $0x20] sm:$0xff]  ;;  %v556_v15 = vld [vmem:[%s539_s19 + $0x28] sm:$0xff]  ;;  %1897 = vmatpush.bf16.msra.mxu3 %v5534_v30  ;;  %vm6022_vm4 = vcmp.lt.s32.totalorder %v667_v40, 7  ;;  %vm6036_vm6 = vcmp.lt.s32.totalorder %v674_v48, 7  ;;  %vm6074_vm12 = vcmp.ge.s32.totalorder %v667_v40, 1 }
  0x18   : > { %v560_v12 = vpack.c.bf16 %v554_v11, %v553_v10  ;;  %v561_v16 = vpack.c.bf16 %v556_v15, %v555_v14  ;;  %v557_v17 = vld [vmem:[%s539_s19 + $0x30] sm:$0xff]  ;;  %v558_v18 = vld [vmem:[%s539_s19 + $0x38] sm:$0xff]  ;;  %1925 = vmatpush.bf16.msrb.mxu0 %v5543_v26  ;;  %v5532_v44 = vld [vmem:[#allocation2 + $0xa0] sm:$0xff]  ;;  %vm6042_vm7 = vcmp.lt.s32.totalorder %v681_v49, 7  ;;  %v652_v26 = vadd.s32 32, %v6008_v29 }
  0x19   : > { %4666 = vmatmul.msk.bf16.vlgmr.msra.gmra.mxu0 %vm574_vm2, %v559_v9  ;;  %v562_v19 = vpack.c.bf16 %v558_v18, %v557_v17  ;;  %1840 = vmatpush.bf16.msra.mxu1 %v5517_v21  ;;  %v5540_v45 = vld [vmem:[#allocation2 + $0xe0] sm:$0xff]  ;;  %vm933_vm5 = vmpackc.low %vm6018_vm3, %vm6018_vm3  ;;  %v5539_v54 = vld [vmem:[#allocation2 + $0xd8] sm:$0xff]  ;;  %vm6091_vm3 = vcmp.ge.s32.totalorder %v674_v48, 1  ;;  %v695_v43 = vand.u32 7, %v653_v28 }
  0x1a   : > { %1868 = vmatpush.bf16.msra.mxu2 %v5526_v33  ;;  %v5524_v47 = vld [vmem:[#allocation2 + $0x60] sm:$0xff]  ;;  %vm934_vm8 = vmpackc.low %vm6022_vm4, %vm6022_vm4  ;;  %v5523_v55 = vld [vmem:[#allocation2 + $0x58] sm:$0xff]  ;;  %v941_v60 = vsel %vm933_vm5, 65537, %v8155_v59  ;;  %vm6103_vm4 = vcmp.ge.s32.totalorder %v681_v49, 1 }
  0x1b   : > { %1898 = vmatpush.bf16.msra.mxu3 %v5533_v35  ;;  %v6031_v50 = vld [vmem:[%s8129_s2] ss:$0 sm:$0xff]  ;;  %vm935_vm9 = vmpackc.low %vm6036_vm6, %vm6036_vm6  ;;  %v5530_v61 = vld [vmem:[#allocation2 + $0x90] sm:$0xff]  ;;  %v942_v63 = vsel %vm934_vm8, 65537, %v8155_v59  ;;  %v949_v5 = vunpack.c.l.b16 %v941_v60 }
  0x1c   : > { %1926 = vmatpush.bf16.msrb.mxu0 %v5542_v31  ;;  %vm936_vm10 = vmpackc.low %vm6042_vm7, %vm6042_vm7  ;;  %v5538_v62 = vld [vmem:[#allocation2 + $0xd0] sm:$0xff]  ;;  %v943_v1 = vsel %vm935_vm9, 65537, %v8155_v59  ;;  %v950_v6 = vunpack.c.l.b16 %v942_v63  ;;  %v5529_v7 = vld [vmem:[#allocation2 + $0x88] sm:$0xff]  ;;  %vm8145_vm7 = vsmask.f32 4352  ;;  %vm6146_vm9 = vcmp.lt.s32.totalorder %v695_v43, 7 }
  0x1d   : > { %1841 = vmatpush.bf16.msra.mxu1 %v5516_v22  ;;  %v5522_v0 = vld [vmem:[#allocation2 + $0x50] sm:$0xff]  ;;  %v944_v2 = vsel %vm936_vm10, 65537, %v8155_v59  ;;  %vm857_vm13 = vmpackc.low %vm6056_vm11, %vm6056_vm11  ;;  %v5537_v8 = vld [vmem:[#allocation2 + $0xc8] sm:$0xff]  ;;  %v951_v9 = vunpack.c.l.b16 %v943_v1 }
  0x1e   : > { %1869 = vmatpush.bf16.msra.mxu2 %v5525_v39  ;;  %v952_v10 = vunpack.c.l.b16 %v944_v2  ;;  %vm858_vm15 = vmpackc.low %vm6074_vm12, %vm6074_vm12  ;;  %v865_v11 = vsel %vm857_vm13, 65537, %v8155_v59  ;;  %v957_v18 = vpack.c.b16 %v950_v6, %v949_v5  ;;  %v5528_v20 = vld [vmem:[#allocation2 + $0x80] sm:$0xff]  ;;  %v688_v39 = vand.u32 7, %v652_v26 }
  0x1f   : > { %1899 = vmatpush.bf16.msra.mxu3 %v5532_v44  ;;  %v873_v17 = vunpack.c.l.b16 %v865_v11  ;;  %v5536_v21 = vld [vmem:[#allocation2 + $0xc0] sm:$0xff]  ;;  %vm859_vm5 = vmpackc.low %vm6091_vm3, %vm6091_vm3 }
  0x20   : > { %1927 = vmatpush.bf16.msrb.mxu0 %v5541_v36  ;;  %v5520_v25 = vld [vmem:[#allocation2 + $0x40] sm:$0xff]  ;;  %v6112_v34 = vrot.slane %v957_v18, 3  ;;  %vm860_vm6 = vmpackc.low %vm6103_vm4, %vm6103_vm4  ;;  %v867_v48 = vsel %vm859_vm5, 65537, %v8155_v59  ;;  %vm6142_vm8 = vcmp.lt.s32.totalorder %v688_v39, 7 }
  0x21   : > { %1842 = vmatpush.bf16.msra.mxu1 %v5515_v23  ;;  %v6115_v36 = vunpack.i.l.s16 %v873_v17  ;;  %v868_v51 = vsel %vm860_vm6, 65537, %v8155_v59  ;;  %vm6152_vm10 = vmand %vm8147_vm1, %vm8145_vm7  ;;  %vm6191_vm6 = vcmp.ge.s32.totalorder %v688_v39, 1  ;;  %v6227_v23 = vadd.s32 48, %v6008_v29 }
  0x22   : > { %1870 = vmatpush.bf16.msra.mxu2 %v5524_v47  ;;  %v6133_v47 = vunpack.c.h.b16 %v8155_v59  ;;  %v1062_v39 = vunpack.c.h.b16 %v6112_v34 }
  0x23   : > { %1900 = vmatpush.bf16.msra.mxu3 %v5531_v53  ;;  %vm889_vm11 = vcmp.ne.s32.totalorder %v6115_v36, %v6118_v37  ;;  %v8237_v53 = vmov 0 }
  0x24   : > { %1928 = vmatpush.bf16.msrb.mxu0 %v5540_v45  ;;  %vm1019_vm5 = vcmp.ne.s32.totalorder %v6115_v36, %v6133_v47 }
  0x25   : > { %1843 = vmatpush.bf16.msra.mxu1 %v5514_v27 }
  0x26   : > { %1871 = vmatpush.bf16.msra.mxu2 %v5523_v55 }
  0x27   : > { %1901 = vmatpush.bf16.msra.mxu3 %v5530_v61 }
  0x28   : > { %1929 = vmatpush.bf16.msrb.mxu0 %v5539_v54 }
  0x29   : > { %4667 = vmatmul.msk.bf16.gmra.mxu0 %vm574_vm2, %v560_v12  ;;  %1844 = vmatpush.bf16.msra.mxu1 %v5513_v32  ;;  %v5521_v12 = vld [vmem:[#allocation2 + $0x48] sm:$0xff] }
  0x2a   : > { %1872 = vmatpush.bf16.msra.mxu2 %v5522_v0  ;;  %v876_v0 = vunpack.c.l.b16 %v868_v51 }
  0x2b   : > { %1902 = vmatpush.bf16.msra.mxu3 %v5529_v7 }
  0x2c   : > { %1930 = vmatpush.bf16.msrb.mxu0 %v5538_v62 }
  0x2d   : > { %1845 = vmatpush.bf16.msra.mxu1 %v5512_v38  ;;  %v962_v38 = vrot.slane %v957_v18, 7  ;;  %v6214_v18 = vunpack.i.l.s16 %v876_v0  ;;  %v8243_v0 = vmov 0 }
  0x2e   : > { %1873 = vmatpush.bf16.msra.mxu2 %v5521_v12 }
  0x2f   : > { %1903 = vmatpush.bf16.msra.mxu3 %v5528_v20  ;;  %v969_v52 = vunpack.c.l.b16 %v962_v38  ;;  %v970_v5 = vunpack.c.h.b16 %v962_v38 }
  0x30   : > { %1931 = vmatpush.bf16.msrb.mxu0 %v5537_v8 }
  0x31   : > { %vm6179_vm4 = vcmp.ne.s32.totalorder %v969_v52, %v6118_v37 }
  0x32   : > { %1874 = vmatpush.bf16.msra.mxu2 %v5520_v25  ;;  %v1061_v25 = vunpack.c.l.b16 %v6112_v34 }
  0x34   : > { %1932 = vmatpush.bf16.msrb.mxu0 %v5536_v21 }
  0x39   : > { %4668 = vmatmul.msk.bf16.gmra.mxu0 %vm574_vm2, %v561_v16  ;;  %v866_v16 = vsel %vm858_vm15, 65537, %v8155_v59  ;;  %vm937_vm15 = vmpackc.low %vm6142_vm8, %vm6142_vm8 }
  0x3a   : > { %v874_v31 = vunpack.c.l.b16 %v866_v16  ;;  %vm861_vm8 = vmpackc.low %vm6191_vm6, %vm6191_vm6 }
  0x3c   : > { %v6130_v46 = vunpack.i.l.s16 %v874_v31 }
  0x3e   : > { %vm890_vm12 = vcmp.ne.s32.totalorder %v6130_v46, %v6133_v47 }
  0x3f   : > { %vm6172_vm3 = vmpackc.low %vm890_vm12, %vm889_vm11 }
  0x40   : > { %v8226_v3 = vsel %vm6172_vm3, 4294967295, %v8225_v3 }
  0x49   : > { %4669 = vmatmul.msk.bf16.gmra.mxu0 %vm574_vm2, %v562_v19  ;;  %v6089_v19 = vpack.c.b16 %v952_v10, %v951_v9 }
  0x4b   : > { %v1055_v35 = vrot.slane %v6089_v19, 3  ;;  %v963_v61 = vrot.slane %v6089_v19, 7 }
  0x4d   : > { %v6127_v44 = vsel %vm8147_vm1, %v6112_v34, %v1055_v35 }
  0x96   : > { %v603_v56 = vpop.f32.mrf.mxu0 }
  0x97   : > { %v604_v57 = vadd.f32 %v6031_v50, %v603_v56  ;;  %v875_v56 = vunpack.c.l.b16 %v867_v48 }
  0x99   : > { %v631_v4 = vmul.f32 0.01, %v604_v57  ;;  %vm623_vm14 = vcmp.gt.f32.partialorder %v604_v57, 0.0 }
  0x9b   : > { %v6085_v14 = vsel %vm623_vm14, %v604_v57, %v631_v4  ;;  %vm8146_vm14 = vcmask 1040384   ;;  %v6176_v4 = vunpack.i.l.s16 %v875_v56  ;;  %v1068_v56 = vunpack.c.l.b16 %v6127_v44 }
  0x9c   : > { %v768_v27 = vpack.c.bf16 %v6085_v14, %v6085_v14  ;;  %v964_v9 = vsel %vm8146_vm14, %v962_v38, %v963_v61  ;;  %v6238_v38 = vadd.s32 56, %v6008_v29  ;;  %vm6281_vm14 = vcmp.ne.s32.totalorder %v1061_v25, %v6118_v37 }
  0x9e   : > { %v605_v13 = vpop.f32.mrf.mxu0  ;;  %v784_v40 = vunpack.c.l.b16 %v768_v27  ;;  %v976_v27 = vunpack.c.l.b16 %v964_v9 }
  0x9f   : > { %v606_v15 = vadd.f32 %v6031_v50, %v605_v13  ;;  %v945_v13 = vsel %vm937_vm15, 65537, %v8155_v59 }
  0xa0   : > { %v953_v28 = vunpack.c.l.b16 %v945_v13  ;;  %vm6257_vm0 = vcmp.ne.s32.totalorder %v976_v27, %v6118_v37  ;;  %v8257_v27 = vmov 0 }
  0xa1   : > { %vm624_vm2 = vcmp.gt.f32.partialorder %v606_v15, 0.0  ;;  %v632_v22 = vmul.f32 0.01, %v606_v15 }
  0xa3   : > { %v6099_v30 = vsel %vm624_vm2, %v606_v15, %v632_v22  ;;  %vm938_vm2 = vmpackc.low %vm6146_vm9, %vm6146_vm9  ;;  %vm6200_vm9 = vcmp.ge.s32.totalorder %v695_v43, 1  ;;  %v5551_v22 = vld [vmem:[#allocation2 + $0x138] sm:$0xff]  ;;  %v5550_v43 = vld [vmem:[#allocation2 + $0x130] sm:$0xff] }
  0xa4   : > { %v769_v33 = vpack.c.bf16 %v6099_v30, %v6099_v30  ;;  %v946_v15 = vsel %vm938_vm2, 65537, %v8155_v59  ;;  %vm862_vm15 = vmpackc.low %vm6200_vm9, %vm6200_vm9  ;;  %1954 = vmatpush.bf16.msrb.mxu1 %v5551_v22  ;;  %vm896_vm2 = vcmp.ne.s32.totalorder %v6176_v4, %v6118_v37  ;;  %v8255_v22 = vmov 0 }
  0xa5   : > { %v954_v31 = vunpack.c.l.b16 %v946_v15  ;;  %v870_v34 = vsel %vm862_vm15, 65537, %v8155_v59 }
  0xa6   : > { %v785_v41 = vunpack.c.l.b16 %v769_v33  ;;  %v608_v42 = vpop.f32.mrf.mxu0  ;;  %v977_v33 = vunpack.c.h.b16 %v964_v9  ;;  %v5549_v9 = vld [vmem:[#allocation2 + $0x128] sm:$0xff] }
  0xa7   : > { %v609_v45 = vadd.f32 %v6031_v50, %v608_v42  ;;  %v6263_v51 = vpack.c.b16 %v954_v31, %v953_v28 }
  0xa8   : > { %v792_v49 = vpack.c.b16 %v785_v41, %v784_v40  ;;  %v869_v40 = vsel %vm861_vm8, 65537, %v8155_v59  ;;  %vm6274_vm8 = vcmp.ne.s32.totalorder %v977_v33, %v6133_v47  ;;  %1955 = vmatpush.bf16.msrb.mxu1 %v5550_v43 }
  0xa9   : > { %v633_v58 = vmul.f32 0.01, %v609_v45  ;;  %vm625_vm13 = vcmp.gt.f32.partialorder %v609_v45, 0.0  ;;  %v965_v13 = vrot.slane %v6263_v51, 7  ;;  %v1057_v15 = vrot.slane %v6263_v51, 3 }
  0xaa   : > { %v798_v54 = vshrl.u32 %v792_v49, 16  ;;  %v801_v55 = vshll.u32 %v792_v49, 16 }
  0xab   : > { %v6183_v7 = vsel %vm625_vm13, %v609_v45, %v633_v58  ;;  %vm6219_vm13 = vcmp.ne.s32.totalorder %v970_v5, %v6133_v47  ;;  %v702_v45 = vand.u32 7, %v6227_v23  ;;  %v877_v58 = vunpack.c.l.b16 %v869_v40 }
  0xac   : > { %v800_v62 = vrot.slane %v798_v54, 3  ;;  %v803_v63 = vrot.slane %v801_v55, 4  ;;  %v770_v20 = vpack.c.bf16 %v6183_v7, %v6183_v7  ;;  %vm6269_vm6 = vmpackc.low %vm6219_vm13, %vm6179_vm4  ;;  %v709_v55 = vand.u32 7, %v6238_v38  ;;  %1956 = vmatpush.bf16.msrb.mxu1 %v5549_v9 }
  0xad   : > { %v8238_v53 = vsel %vm6269_vm6, 4294967295, %v8237_v53  ;;  %vm6286_vm4 = vcmp.ne.s32.totalorder %v1062_v39, %v6133_v47  ;;  %vm6297_vm13 = vmpackc.low %vm1019_vm5, %vm889_vm11  ;;  %vm6301_vm7 = vcmp.lt.s32.totalorder %v702_v45, 7  ;;  %v6342_v25 = vunpack.i.l.s16 %v877_v58 }
  0xae   : > { %v610_v1 = vpop.f32.mrf.mxu0  ;;  %v6167_v2 = vor.u32 %v803_v63, %v800_v62  ;;  %v786_v29 = vunpack.c.l.b16 %v770_v20  ;;  %v878_v62 = vunpack.c.l.b16 %v870_v34  ;;  %v8241_v63 = vmov 0  ;;  %vm6325_vm5 = vmpackc.low %vm6274_vm8, %vm6257_vm0 }
  0xaf   : > { %v611_v8 = vadd.f32 %v6031_v50, %v610_v1  ;;  %v8242_v63 = vsel %vm6281_vm14, 4294967295, %v8241_v63  ;;  %v8244_v0 = vsel %vm6286_vm4, 4294967295, %v8243_v0  ;;  %v1069_v1 = vunpack.c.h.b16 %v6127_v44 }
  0xb0   : > { %v6198_v11 = vsel %vm6152_vm10, 0, %v6167_v2  ;;  %v8251_v20 = vmov 0  ;;  %v6357_v28 = vsel %vm8147_vm1, %v1055_v35, %v1057_v15  ;;  %vm8260_vm11 = vcmp.ne.s32.totalorder %v6176_v4, %v6133_v47 }
  0xb1   : > { %vm626_vm12 = vcmp.gt.f32.partialorder %v611_v8, 0.0  ;;  %v634_v16 = vmul.f32 0.01, %v611_v8  ;;  %v913_v17 = vsel %vm6172_vm3, %v6198_v11, 0  ;;  %v1004_v36 = vsel %vm6269_vm6, %v6198_v11, 0 }
  0xb2   : > { %1846 = vmatmul.bf16.vlgmr.msra.gmra.mxu1 %v913_v17  ;;  %v8161_v12 = vshll.u32 %v6198_v11, 16  ;;  %v8252_v20 = vsel %vm6325_vm5, 4294967295, %v8251_v20  ;;  %vm6348_vm8 = vcmp.ne.s32.totalorder %v1069_v1, %v6133_v47  ;;  %v1156_v33 = vrot.slane %v1004_v36, 1 }
  0xb3   : > { %v6230_v26 = vsel %vm626_vm12, %v611_v8, %v634_v16  ;;  %vm897_vm12 = vcmp.ne.s32.totalorder %v6214_v18, %v6133_v47  ;;  %v8245_v8 = vmov 0  ;;  %v8258_v27 = vsel %vm6348_vm8, 4294967295, %v8257_v27 }
  0xb4   : > { %v771_v32 = vpack.c.bf16 %v6230_v26, %v6230_v26  ;;  %v8246_v8 = vsel %vm6297_vm13, 4294967295, %v8245_v8  ;;  %vm6311_vm9 = vmpackc.low %vm897_vm12, %vm896_vm2  ;;  %vm6331_vm2 = vcmp.lt.s32.totalorder %v709_v55, 7  ;;  %vm6336_vm12 = vcmp.ne.s32.totalorder %v1068_v56, %v6118_v37 }
  0xb5   : > { %v8256_v22 = vsel %vm6336_vm12, 4294967295, %v8255_v22  ;;  %v8261_v39 = vmov 0  ;;  %v1049_v40 = vsel %vm6297_vm13, %v6198_v11, 0  ;;  %v6374_v35 = vunpack.i.l.s16 %v878_v62 }
  0xb6   : > { %v787_v41 = vunpack.c.l.b16 %v771_v32  ;;  %v613_v42 = vpop.f32.mrf.mxu0  ;;  %vm8264_vm1 = vsmask.f32 4352  ;;  %vm6397_vm13 = vcmp.ge.s32.totalorder %v702_v45, 1  ;;  %v1175_v62 = vrot.slane %v1049_v40, 4  ;;  %v5575_v40 = vld [vmem:[#allocation2 + $0x1f8] sm:$0xff] }
  0xb7   : > { %v614_v48 = vadd.f32 %v6031_v50, %v613_v42  ;;  %v8162_v42 = vshrl.u32 %v6198_v11, 16  ;;  %2041 = vmatpush.bf16.msra.mxu0 %v5575_v40 }
  0xb8   : > { %v793_v52 = vpack.c.b16 %v787_v41, %v786_v29  ;;  %v5548_v29 = vld [vmem:[#allocation2 + $0x120] sm:$0xff] }
  0xb9   : > { %v635_v57 = vmul.f32 0.01, %v614_v48  ;;  %vm627_vm15 = vcmp.gt.f32.partialorder %v614_v48, 0.0  ;;  %1957 = vmatpush.bf16.msrb.mxu1 %v5548_v29 }
  0xba   : > { %v806_v5 = vshrl.u32 %v793_v52, 16  ;;  %v809_v6 = vshll.u32 %v793_v52, 16 }
  0xbb   : > { %v6340_v23 = vsel %vm627_vm15, %v614_v48, %v635_v57  ;;  %vm8259_vm15 = vcmp.ne.s32.totalorder %v6130_v46, %v6118_v37  ;;  %v1115_v46 = vrot.slane %v8161_v12, 1  ;;  %v5547_v57 = vld [vmem:[#allocation2 + $0x118] sm:$0xff]  ;;  %v8317_v12 = vmov 0 }
  0xbc   : > { %v808_v16 = vrot.slane %v806_v5, 3  ;;  %v811_v17 = vrot.slane %v809_v6, 4  ;;  %vm6367_vm0 = vmpackc.low %vm8260_vm11, %vm8259_vm15  ;;  %vm8263_vm11 = vcmask 1040384   ;;  %v772_v43 = vpack.c.bf16 %v6340_v23, %v6340_v23 }
  0xbd   : > { %v8262_v39 = vsel %vm6367_vm0, 4294967295, %v8261_v39  ;;  %v6385_v4 = vsel %vm8263_vm11, %v963_v61, %v965_v13  ;;  %vm940_vm15 = vmpackc.low %vm6331_vm2, %vm6331_vm2  ;;  %v1116_v10 = vor.u32 %v1115_v46, %v8162_v42  ;;  %1958 = vmatpush.bf16.msrb.mxu1 %v5547_v57  ;;  %v5545_v57 = vld [vmem:[#allocation2 + $0x108] sm:$0xff] }
  0xbe   : > { %v6359_v31 = vor.u32 %v811_v17, %v808_v16  ;;  %v615_v32 = vpop.f32.mrf.mxu0  ;;  %vm8267_vm11 = vmpackc.low %vm6301_vm7, %vm6301_vm7  ;;  %v948_v56 = vsel %vm940_vm15, 65537, %v8155_v59  ;;  %v983_v5 = vunpack.c.l.b16 %v6385_v4  ;;  %vm8268_vm7 = vcmask 1046528   ;;  %v5544_v17 = vld [vmem:[#allocation2 + $0x100] sm:$0xff] }
  0xbf   : > { %v616_v41 = vadd.f32 %v6031_v50, %v615_v32  ;;  %v947_v19 = vsel %vm8267_vm11, 65537, %v8155_v59  ;;  %vm8150_vm15 = vmpackc.low %vm6286_vm4, %vm6281_vm14  ;;  %vm8269_vm11 = vcmask 1043456   ;;  %v956_v32 = vunpack.c.l.b16 %v948_v56  ;;  %v5574_v56 = vld [vmem:[#allocation2 + $0x1f0] sm:$0xff] }
  0xc0   : > { %v6393_v34 = vsel %vm8264_vm1, %v6167_v2, %v6359_v31  ;;  %v955_v21 = vunpack.c.l.b16 %v947_v19  ;;  %v788_v29 = vunpack.c.l.b16 %v772_v43  ;;  %v984_v38 = vunpack.c.h.b16 %v6385_v4  ;;  %v5566_v43 = vld [vmem:[#allocation2 + $0x1b0] sm:$0xff]  ;;  %2042 = vmatpush.bf16.msra.mxu0 %v5574_v56 }
  0xc1   : > { %vm628_vm2 = vcmp.gt.f32.partialorder %v616_v41, 0.0  ;;  %v636_v61 = vmul.f32 0.01, %v616_v41  ;;  %v914_v2 = vsel %vm6311_vm9, %v6393_v34, 0  ;;  %v1005_v45 = vsel %vm6325_vm5, %v6393_v34, 0 }
  0xc2   : > { %1851 = vmatmul.bf16.gmra.mxu1 %v914_v2  ;;  %v6413_v49 = vrot.slane %v1005_v45, 1  ;;  %v1050_v52 = vsel %vm6367_vm0, %v6393_v34, 0  ;;  %v8164_v54 = vshll.u32 %v6393_v34, 16  ;;  %v5559_v2 = vld [vmem:[#allocation2 + $0x178] sm:$0xff]  ;;  %v1096_v4 = vsel %vm8150_vm15, %v6198_v11, 0 }
  0xc3   : > { %v6420_v58 = vsel %vm628_vm2, %v616_v41, %v636_v61  ;;  %v6422_v1 = vrot.slane %v1050_v52, 4  ;;  %vm6443_vm2 = vcmp.ge.s32.totalorder %v709_v55, 1  ;;  %v5546_v55 = vld [vmem:[#allocation2 + $0x110] sm:$0xff]  ;;  %vm904_vm1 = vcmp.ne.s32.totalorder %v6374_v35, %v6133_v47  ;;  %1983 = vmatpush.bf16.msrb.mxu2 %v5559_v2 }
  0xc4   : > { %v773_v6 = vpack.c.bf16 %v6420_v58, %v6420_v58  ;;  %v1158_v9 = vsel %vm8268_vm7, %v1156_v33, %v6413_v49  ;;  %v6433_v36 = vrot.slane %v8164_v54, 1  ;;  %v5567_v33 = vld [vmem:[#allocation2 + $0x1b8] sm:$0xff]  ;;  %vm864_vm0 = vmpackc.low %vm6443_vm2, %vm6443_vm2  ;;  %1959 = vmatpush.bf16.msrb.mxu1 %v5546_v55  ;;  %vm6482_vm15 = vcmp.ne.s32.totalorder %v983_v5, %v6118_v37 }
  0xc5   : > { %1904 = vmatmul.bf16.vlgmr.msra.gmra.mxu3 %v1158_v9  ;;  %v1177_v16 = vsel %vm8269_vm11, %v1175_v62, %v6422_v1  ;;  %vm8272_vm11 = vsmask.f32 7424  ;;  %v5558_v9 = vld [vmem:[#allocation2 + $0x170] sm:$0xff]  ;;  %v872_v5 = vsel %vm864_vm0, 65537, %v8155_v59  ;;  %vm8279_vm0 = vcmp.ne.s32.totalorder %v6342_v25, %v6118_v37 }
  0xc6   : > { %v789_v41 = vunpack.c.l.b16 %v773_v6  ;;  %1933 = vmatmul.bf16.vlgmr.msrb.gmra.mxu0 %v1177_v16  ;;  %v618_v46 = vpop.f32.mrf.mxu0  ;;  %v1121_v61 = vsel %vm8272_vm11, %v1116_v10, %v6433_v36  ;;  %2012 = vmatpush.bf16.msrb.mxu3 %v5567_v33  ;;  %vm8273_vm11 = vmpackc.low %vm6397_vm13, %vm6397_vm13  ;;  %v960_v6 = vpack.c.b16 %v956_v32, %v955_v21  ;;  %v1075_v10 = vunpack.c.l.b16 %v6357_v28  ;;  %v5565_v32 = vld [vmem:[#allocation2 + $0x1a8] sm:$0xff] }
  0xc7   : > { %v619_v45 = vadd.f32 %v6031_v50, %v618_v46  ;;  %1875 = vmatmul.bf16.vlgmr.msra.gmra.mxu2 %v1121_v61  ;;  %v871_v52 = vsel %vm8273_vm11, 65537, %v8155_v59  ;;  %v1076_v16 = vunpack.c.h.b16 %v6357_v28  ;;  %vm6489_vm13 = vcmp.ne.s32.totalorder %v984_v38, %v6133_v47  ;;  %vm8278_vm11 = vmpackc.low %vm6348_vm8, %vm6336_vm12  ;;  %v5573_v38 = vld [vmem:[#allocation2 + $0x1e8] sm:$0xff] }
  0xc8   : > { %v794_v19 = vpack.c.b16 %v789_v41, %v788_v29  ;;  %v1220_v29 = vrot.slane %v1096_v4, 5  ;;  %v879_v21 = vunpack.c.l.b16 %v871_v52  ;;  %v6505_v28 = vsel %vm8278_vm11, %v6393_v34, 0  ;;  %1960 = vmatpush.bf16.msrb.mxu1 %v5545_v57  ;;  %vm6514_vm2 = vmpackc.low %vm904_vm1, %vm8279_vm0  ;;  %1984 = vmatpush.bf16.msrb.mxu2 %v5558_v9 }
  0xc9   : > { %v637_v41 = vmul.f32 0.01, %v619_v45  ;;  %v1221_v55 = vrot.slane %v6505_v28, 5  ;;  %vm6519_vm11 = vcmp.ne.s32.totalorder %v1075_v10, %v6118_v37  ;;  %v8282_v4 = vmov 0  ;;  %vm6536_vm1 = vmpackc.low %vm6489_vm13, %vm6482_vm15  ;;  %2043 = vmatpush.bf16.msra.mxu0 %v5573_v38  ;;  %v5562_v28 = vld [vmem:[#allocation2 + $0x190] sm:$0xff] }
  0xca   : > { %v815_v33 = vshrl.u32 %v794_v19, 16  ;;  %v818_v48 = vshll.u32 %v794_v19, 16  ;;  %2013 = vmatpush.bf16.msrb.mxu3 %v5566_v43  ;;  %v5557_v43 = vld [vmem:[#allocation2 + $0x168] sm:$0xff]  ;;  %v8283_v4 = vsel %vm6519_vm11, 4294967295, %v8282_v4  ;;  %vm6524_vm7 = vcmp.ne.s32.totalorder %v1076_v16, %v6133_v47 }
  0xcb   : > { %8284 = vst [vmem:[#allocation5_spill] sm:$0xff] %v8283_v4  ;;  %v8285_v19 = vmov 0  ;;  %v6528_v52 = vrot.slane %v960_v6, 3  ;;  %v8288_v9 = vmov 0  ;;  %vm8291_vm0 = vcmask 1042432  }
  0xcc   : > { %v817_v46 = vrot.slane %v815_v33, 3  ;;  %v820_v61 = vrot.slane %v818_v48, 4  ;;  %v8286_v19 = vsel %vm6524_vm7, 4294967295, %v8285_v19  ;;  %v8289_v9 = vsel %vm6536_vm1, 4294967295, %v8288_v9  ;;  %1961 = vmatpush.bf16.msrb.mxu1 %v5544_v17  ;;  %1985 = vmatpush.bf16.msrb.mxu2 %v5557_v43  ;;  %v5556_v43 = vld [vmem:[#allocation2 + $0x160] sm:$0xff] }
  0xcd   : > { %8287 = vst [vmem:[#allocation6_spill] sm:$0xff] %v8286_v19  ;;  %v6543_v10 = vsel %vm8291_vm0, %v1220_v29, %v1221_v55  ;;  %vm8292_vm12 = vcmp.gt.f32.partialorder %v619_v45, 0.0  ;;  %vm8293_vm8 = vcmp.ne.s32.totalorder %v6214_v18, %v6118_v37  ;;  %vm8294_vm14 = vcmp.ne.s32.totalorder %v6342_v25, %v6133_v47  ;;  %v5607_v19 = vld [vmem:[#allocation2 + $0x2f8] sm:$0xff] }
  0xce   : > { %v6530_v56 = vor.u32 %v820_v61, %v817_v46  ;;  %v620_v57 = vpop.f32.mrf.mxu0  ;;  %8290 = vst [vmem:[#allocation7_spill] sm:$0xff] %v8289_v9  ;;  %v6546_v16 = vsel %vm8292_vm12, %v619_v45, %v637_v41  ;;  %vm6555_vm15 = vmpackc.low %vm8294_vm14, %vm8293_vm8  ;;  %v8295_v62 = vmov 0  ;;  %v880_v48 = vunpack.c.l.b16 %v872_v5  ;;  %2014 = vmatpush.bf16.msrb.mxu3 %v5565_v32  ;;  %v5564_v32 = vld [vmem:[#allocation2 + $0x1a0] sm:$0xff] }
  0xcf   : > { %v621_v33 = vadd.f32 %v6031_v50, %v620_v57  ;;  %v8296_v62 = vsel %vm6555_vm15, 4294967295, %v8295_v62  ;;  %vm8298_vm13 = vcmask 1044480   ;;  %vm8299_vm12 = vsmask.f32 4352  ;;  %vm8157_vm14 = vmpackc.low %vm6524_vm7, %vm6519_vm11  ;;  %v5572_v46 = vld [vmem:[#allocation2 + $0x1e0] sm:$0xff] }
  0xd0   : > { %8297 = vst [vmem:[#allocation8_spill] sm:$0xff] %v8296_v62  ;;  %v6563_v45 = vsel %vm8298_vm13, %v1057_v15, %v6528_v52  ;;  %v6568_v50 = vsel %vm8299_vm12, %v6359_v31, %v6530_v56  ;;  %v8165_v18 = vshrl.u32 %v6393_v34, 16  ;;  %v6571_v25 = vunpack.i.l.s16 %v879_v21  ;;  %2044 = vmatpush.bf16.msra.mxu0 %v5572_v46  ;;  %1986 = vmatpush.bf16.msrb.mxu2 %v5556_v43  ;;  %v5571_v46 = vld [vmem:[#allocation2 + $0x1d8] sm:$0xff] }
  0xd1   : > { %v6573_v40 = vrot.slane %v960_v6, 7  ;;  %vm630_vm8 = vcmp.gt.f32.partialorder %v621_v33, 0.0  ;;  %v638_v15 = vmul.f32 0.01, %v621_v33  ;;  %v915_v31 = vsel %vm6514_vm2, %v6568_v50, 0  ;;  %v5555_v43 = vld [vmem:[#allocation2 + $0x158] sm:$0xff] }
  0xd2   : > { %v1006_v29 = vsel %vm6536_vm1, %v6568_v50, 0  ;;  %v774_v6 = vpack.c.bf16 %v6546_v16, %v6546_v16  ;;  %1856 = vmatmul.bf16.gmra.mxu1 %v915_v31  ;;  %v1051_v5 = vsel %vm6555_vm15, %v6568_v50, 0  ;;  %v8156_v21 = vshll.u32 %v6568_v50, 16  ;;  %2015 = vmatpush.bf16.msrb.mxu3 %v5564_v32 }
  0xd3   : > { %v6587_v41 = vrot.slane %v1006_v29, 1  ;;  %v6593_v61 = vsel %vm630_vm8, %v621_v33, %v638_v15  ;;  %v6595_v38 = vrot.slane %v1051_v5, 4  ;;  %v1124_v17 = vor.u32 %v8165_v18, %v6433_v36 }
  0xd4   : > { %8300 = vst [vmem:[#allocation9_spill] sm:$0xff] %v6593_v61  ;;  %v6606_v57 = vsel %vm8157_vm14, %v6568_v50, 0  ;;  %v775_v31 = vpack.c.bf16 %v6593_v61, %v6593_v61  ;;  %vm8301_vm0 = vcmask 1046528   ;;  %v6615_v15 = vrot.slane %v8156_v21, 1  ;;  %2045 = vmatpush.bf16.msra.mxu0 %v5571_v46  ;;  %1987 = vmatpush.bf16.msrb.mxu2 %v5555_v43  ;;  %v5615_v61 = vld [vmem:[#allocation2 + $0x338] sm:$0xff] }
  0xd5   : > { %v1160_v33 = vsel %vm8301_vm0, %v6413_v49, %v6587_v41  ;;  %vm8302_vm13 = vcmask 1040384   ;;  %vm8303_vm12 = vcmask 1043456   ;;  %v6624_v5 = vunpack.i.l.s16 %v880_v48  ;;  %v5563_v48 = vld [vmem:[#allocation2 + $0x198] sm:$0xff] }
  0xd6   : > { %v968_v36 = vsel %vm8302_vm13, %v965_v13, %v6573_v40  ;;  %1909 = vmatmul.bf16.gmra.mxu3 %v1160_v33  ;;  %v1179_v29 = vsel %vm8303_vm12, %v6422_v1, %v6595_v38  ;;  %v8163_v49 = vrot.slane %v6606_v57, 5  ;;  %v1105_v24 = vsel %vm6269_vm6, %v6393_v34, 0 }
  0xd7   : > { %v790_v59 = vunpack.c.l.b16 %v774_v6  ;;  %v791_v51 = vunpack.c.l.b16 %v775_v31  ;;  %1938 = vmatmul.bf16.gmra.mxu0 %v1179_v29  ;;  %vm8304_vm8 = vsmask.f32 7424  ;;  %v990_v32 = vunpack.c.l.b16 %v968_v36  ;;  %2016 = vmatpush.bf16.msrb.mxu3 %v5563_v48 }
  0xd8   : > { %v6632_v13 = vsel %vm8304_vm8, %v1124_v17, %v6615_v15  ;;  %v991_v1 = vunpack.c.h.b16 %v968_v36  ;;  %vm8305_vm0 = vcmask 1042432   ;;  %v1106_v6 = vsel %vm6325_vm5, %v6568_v50, 0 }
  0xd9   : > { %1880 = vmatmul.bf16.gmra.mxu2 %v6632_v13  ;;  %v6640_v33 = vsel %vm8305_vm0, %v1221_v55, %v8163_v49  ;;  %v795_v17 = vpack.c.b16 %v791_v51, %v790_v59  ;;  %v1245_v31 = vrot.slane %v1105_v24, 1  ;;  %v6645_v29 = vrot.slane %v1106_v6, 1  ;;  %v5570_v55 = vld [vmem:[#allocation2 + $0x1d0] sm:$0xff] }
  0xda   : > { %vm910_vm13 = vcmp.ne.s32.totalorder %v6571_v25, %v6118_v37  ;;  %vm1040_vm0 = vcmp.ne.s32.totalorder %v6571_v25, %v6133_v47  ;;  %v5554_v24 = vld [vmem:[#allocation2 + $0x150] sm:$0xff]  ;;  %vm8306_vm14 = vcmask 1046528   ;;  %vm6660_vm12 = vcmp.ne.s32.totalorder %v990_v32, %v6118_v37  ;;  %2046 = vmatpush.bf16.msra.mxu0 %v5570_v55  ;;  %v5561_v25 = vld [vmem:[#allocation2 + $0x188] sm:$0xff] }
  0xdb   : > { %v824_v36 = vshrl.u32 %v795_v17, 16  ;;  %v827_v21 = vshll.u32 %v795_v17, 16  ;;  %v6657_v59 = vsel %vm8306_vm14, %v1245_v31, %v6645_v29  ;;  %vm995_vm8 = vcmp.ne.s32.totalorder %v991_v1, %v6133_v47  ;;  %2017 = vmatpush.bf16.msrb.mxu3 %v5562_v28  ;;  %1988 = vmatpush.bf16.msrb.mxu2 %v5554_v24 }
  0xdc   : > { %v1082_v48 = vunpack.c.l.b16 %v6563_v45  ;;  %v1089_v46 = vunpack.c.l.b16 %v6528_v52  ;;  %vm8309_vm14 = vcmp.ne.s32.totalorder %v6624_v5, %v6133_v47  ;;  %v8310_v43 = vmov 0 }
  0xdd   : > { %v826_v6 = vrot.slane %v824_v36, 3  ;;  %v829_v17 = vrot.slane %v827_v21, 4  ;;  %vm6673_vm11 = vmpackc.low %vm8309_vm14, %vm910_vm13  ;;  %v1083_v32 = vunpack.c.h.b16 %v6563_v45  ;;  %v1090_v1 = vunpack.c.h.b16 %v6528_v52  ;;  %v5569_v21 = vld [vmem:[#allocation2 + $0x1c8] sm:$0xff] }
  0xde   : > { %v8311_v43 = vsel %vm6673_vm11, 4294967295, %v8310_v43  ;;  %vm8313_vm7 = vcmp.ne.s32.totalorder %v6374_v35, %v6118_v37  ;;  %v8314_v31 = vmov 0  ;;  %vm6688_vm13 = vmpackc.low %vm995_vm8, %vm6660_vm12  ;;  %v5553_v52 = vld [vmem:[#allocation2 + $0x148] sm:$0xff]  ;;  %v8177_v45 = vshrl.u32 %v6568_v50, 16  ;;  %2047 = vmatpush.bf16.msra.mxu0 %v5569_v21 }
  0xdf   : > { %8312 = vst [vmem:[#allocation10_spill] sm:$0xff] %v8311_v43  ;;  %vm6682_vm15 = vmpackc.low %vm1040_vm0, %vm8313_vm7  ;;  %v830_v36 = vor.u32 %v829_v17, %v826_v6  ;;  %v8318_v12 = vsel %vm6688_vm13, 4294967295, %v8317_v12  ;;  %vm6694_vm7 = vcmp.ne.s32.totalorder %v1082_v48, %v6118_v37  ;;  %v8320_v35 = vmov 0  ;;  %2018 = vmatpush.bf16.msrb.mxu3 %v5561_v25  ;;  %1989 = vmatpush.bf16.msrb.mxu2 %v5553_v52  ;;  %v5552_v52 = vld [vmem:[#allocation2 + $0x140] sm:$0xff] }
  0xe0   : > { %v8315_v31 = vsel %vm6682_vm15, 4294967295, %v8314_v31  ;;  %8319 = vst [vmem:[#allocation12_spill] sm:$0xff] %v8318_v12  ;;  %v8321_v35 = vsel %vm6694_vm7, 4294967295, %v8320_v35  ;;  %vm8323_vm0 = vsmask.f32 4352  ;;  %vm6703_vm14 = vcmp.ne.s32.totalorder %v1083_v32, %v6133_v47 }
  0xe1   : > { %8316 = vst [vmem:[#allocation11_spill] sm:$0xff] %v8315_v31  ;;  %v6700_v28 = vsel %vm8323_vm0, %v6530_v56, %v830_v36  ;;  %v8324_v55 = vmov 0  ;;  %vm6708_vm12 = vcmp.ne.s32.totalorder %v1089_v46, %v6118_v37  ;;  %v8327_v24 = vmov 0  ;;  %v5568_v31 = vld [vmem:[#allocation2 + $0x1c0] sm:$0xff] }
  0xe2   : > { %8322 = vst [vmem:[#allocation13_spill] sm:$0xff] %v8321_v35  ;;  %v8325_v55 = vsel %vm6703_vm14, 4294967295, %v8324_v55  ;;  %v8328_v24 = vsel %vm6708_vm12, 4294967295, %v8327_v24  ;;  %vm6713_vm8 = vcmp.ne.s32.totalorder %v1090_v1, %v6133_v47  ;;  %v8330_v51 = vmov 0  ;;  %v5560_v1 = vld [vmem:[#allocation2 + $0x180] sm:$0xff]  ;;  %2048 = vmatpush.bf16.msra.mxu0 %v5568_v31 }
  0xe3   : > { %8326 = vst [vmem:[#allocation14_spill] sm:$0xff] %v8325_v55  ;;  %v8331_v51 = vsel %vm6713_vm8, 4294967295, %v8330_v51  ;;  %v916_v56 = vsel %vm6673_vm11, %v6700_v28, 0  ;;  %v1007_v48 = vsel %vm6688_vm13, %v6700_v28, 0  ;;  %v1052_v46 = vsel %vm6682_vm15, %v6700_v28, 0  ;;  %vm8173_vm4 = vmpackc.low %vm6713_vm8, %vm6708_vm12  ;;  %2019 = vmatpush.bf16.msrb.mxu3 %v5560_v1  ;;  %1990 = vmatpush.bf16.msrb.mxu2 %v5552_v52 }
  0xe4   : > { %8329 = vst [vmem:[#allocation15_spill] sm:$0xff] %v8328_v24  ;;  %v8176_v6 = vshll.u32 %v6700_v28, 16  ;;  %1861 = vmatmul.bf16.gmra.mxu1 %v916_v56  ;;  %v1161_v17 = vrot.slane %v1007_v48, 1  ;;  %v1180_v32 = vrot.slane %v1052_v46, 4  ;;  %v1132_v42 = vor.u32 %v8177_v45, %v6615_v15  ;;  %v5588_v24 = vld [vmem:[#allocation2 + $0x260] sm:$0xff] }
  0xe5   : > { %8332 = vst [vmem:[#allocation16_spill] sm:$0xff] %v8331_v51  ;;  %v997_v54 = vunpack.c.l.b16 %v6573_v40  ;;  %v998_v18 = vunpack.c.h.b16 %v6573_v40  ;;  %v6740_v25 = vsel %vm6152_vm10, %v830_v36, 0  ;;  %vm8333_vm15 = vcmask 1046528  }
  0xe6   : > { %v1136_v49 = vrot.slane %v8176_v6, 1  ;;  %v1162_v15 = vsel %vm8333_vm15, %v6587_v41, %v1161_v17  ;;  %vm8334_vm5 = vcmask 1043456   ;;  %vm8335_vm6 = vsmask.f32 7424  ;;  %3006 = vmatpush.bf16.msrb.mxu0 %v5607_v19 }
  0xe7   : > { %v1181_v21 = vsel %vm8334_vm5, %v6595_v38, %v1180_v32  ;;  %1914 = vmatmul.bf16.gmra.mxu3 %v1162_v15  ;;  %vm6755_vm0 = vcmp.ne.s32.totalorder %v997_v54, %v6118_v37  ;;  %v8336_v41 = vmov 0  ;;  %vm6760_vm5 = vcmp.ne.s32.totalorder %v998_v18, %v6133_v47 }
  0xe8   : > { %v6751_v40 = vsel %vm8335_vm6, %v1132_v42, %v1136_v49  ;;  %1943 = vmatmul.bf16.gmra.mxu0 %v1181_v21  ;;  %v8337_v41 = vsel %vm6755_vm0, 4294967295, %v8336_v41  ;;  %v8339_v38 = vmov 0  ;;  %vm8342_vm6 = vmpackc.low %vm6703_vm14, %vm6694_vm7  ;;  %v1100_v54 = vsel %vm8173_vm4, %v6740_v25, 0 }
  0xe9   : > { %1885 = vmatmul.bf16.gmra.mxu2 %v6751_v40  ;;  %8338 = vst [vmem:[#allocation17_spill] sm:$0xff] %v8337_v41  ;;  %v8340_v38 = vsel %vm6760_vm5, 4294967295, %v8339_v38  ;;  %v1099_v42 = vsel %vm8342_vm6, %v6700_v28, 0  ;;  %v8343_v18 = vshrl.u32 %v6393_v34, 16  ;;  %vm1046_vm15 = vcmp.ne.s32.totalorder %v6624_v5, %v6118_v37  ;;  %vm8355_vm7 = vmpackc.low %vm6760_vm5, %vm6755_vm0 }
  0xea   : > { %8341 = vst [vmem:[#allocation18_spill] sm:$0xff] %v8340_v38  ;;  %v1225_v31 = vrot.slane %v1099_v42, 5  ;;  %v8344_v56 = vshll.u32 %v6393_v34, 16  ;;  %v1227_v46 = vrot.slane %v1100_v54, 5  ;;  %v1107_v1 = vsel %vm6536_vm1, %v6700_v28, 0 }
  0xeb   : > { %v1192_v36 = vrot.slane %v8343_v18, 4  ;;  %v1108_v15 = vsel %vm6688_vm13, %v6740_v25, 0  ;;  %v8345_v37 = vrot.slane %v6606_v57, 5  ;;  %vm8346_vm4 = vcmask 1042432  }
  0xec   : > { %v1193_v48 = vrot.slane %v8344_v56, 5  ;;  %v1248_v52 = vrot.slane %v1107_v1, 1  ;;  %v8347_v42 = vshrl.u32 %v6198_v11, 16  ;;  %v8348_v18 = vshll.u32 %v6198_v11, 16  ;;  %vm8353_vm6 = vmmov %vm8346_vm4 }
  0xed   : > { %v6795_v21 = vsel %vm8346_vm4, %v8345_v37, %v1225_v31  ;;  %vm8349_vm12 = vcmp.ne.s32.totalorder %v6624_v5, %v6133_v47  ;;  %v8350_v6 = vmov 0  ;;  %v6809_v45 = vsel %vm8353_vm6, %v1225_v31, %v1227_v46 }
  0xee   : > { %v1189_v54 = vrot.slane %v8347_v42, 4  ;;  %v1190_v56 = vrot.slane %v8348_v18, 5  ;;  %vm6804_vm8 = vmpackc.low %vm8349_vm12, %vm1046_vm15  ;;  %v6811_v57 = vrot.slane %v1108_v15, 1  ;;  %vm8354_vm4 = vcmask 1046528   ;;  %v5583_v18 = vld [vmem:[#allocation2 + $0x238] sm:$0xff] }
  0xef   : > { %v8351_v6 = vsel %vm6804_vm8, 4294967295, %v8350_v6  ;;  %v6815_v1 = vsel %vm8354_vm4, %v6645_v29, %v1248_v52  ;;  %v1194_v37 = vor.u32 %v1193_v48, %v1192_v36  ;;  %v1008_v47 = vsel %vm8355_vm7, %v6740_v25, 0  ;;  %vm8356_vm12 = vmmov %vm8354_vm4  ;;  %2070 = vmatpush.bf16.msra.mxu1 %v5583_v18 }
  0xf0   : > { %8352 = vst [vmem:[#allocation19_spill] sm:$0xff] %v8351_v6  ;;  %v6825_v11 = vsel %vm8356_vm12, %v1248_v52, %v6811_v57  ;;  %vm8198_vm15 = vsmask.f32 3328  ;;  %v1053_v5 = vsel %vm6804_vm8, %v6740_v25, 0  ;;  %v1191_v31 = vor.u32 %v1190_v56, %v1189_v54  ;;  %vm8357_vm7 = vmmov %vm8354_vm4  ;;  %v5582_v56 = vld [vmem:[#allocation2 + $0x230] sm:$0xff] }
  0xf1   : > { %v1163_v29 = vrot.slane %v1008_v47, 1  ;;  %v1138_v36 = vshrl.u32 %v6700_v28, 16  ;;  %v1142_v48 = vshll.u32 %v6740_v25, 16  ;;  %v1182_v15 = vrot.slane %v1053_v5, 4 }
  0xf2   : > { %v1195_v46 = vsel %vm8198_vm15, %v1191_v31, %v1194_v37  ;;  %vm8358_vm6 = vcmask 1043456   ;;  %vm8359_vm4 = vsmask.f32 7424  ;;  %v8360_v47 = vshrl.u32 %v6568_v50, 16 }
  0xf3   : > { %v1140_v42 = vor.u32 %v1138_v36, %v1136_v49  ;;  %v1164_v52 = vsel %vm8357_vm7, %v1161_v17, %v1163_v29  ;;  %v1144_v41 = vrot.slane %v1142_v48, 1  ;;  %v1183_v6 = vsel %vm8358_vm6, %v1180_v32, %v1182_v15  ;;  %2071 = vmatpush.bf16.msra.mxu1 %v5582_v56  ;;  %v5581_v49 = vld [vmem:[#allocation2 + $0x228] sm:$0xff]  ;;  %v5580_v17 = vld [vmem:[#allocation2 + $0x220] sm:$0xff]  ;;  %v5578_v15 = vld [vmem:[#allocation2 + $0x210] sm:$0xff] }
  0xf4   : > { %1962 = vmatmul.bf16.vlgmr.msrb.gmra.mxu1 %v1195_v46  ;;  %v1196_v38 = vrot.slane %v8360_v47, 4  ;;  %v8361_v5 = vshll.u32 %v6568_v50, 16  ;;  %v1101_v32 = vsel %vm6172_vm3, %v6393_v34, 0  ;;  %v5576_v56 = vld [vmem:[#allocation2 + $0x200] sm:$0xff]  ;;  %v1102_v34 = vsel %vm6311_vm9, %v6568_v50, 0  ;;  %vm8365_vm12 = vmmov %vm8359_vm4 }
  0xf5   : > { %v1145_v54 = vsel %vm8359_vm4, %v1140_v42, %v1144_v41  ;;  %v1200_v42 = vrot.slane %v1138_v36, 4  ;;  %v1207_v36 = vrot.slane %v1142_v48, 5  ;;  %v1104_v48 = vsel %vm6673_vm11, %v6740_v25, 0 }
  0xf6   : > { %v1197_v31 = vrot.slane %v8361_v5, 5  ;;  %vm8372_vm8 = vnez %v8252_v20 }
  0xf7   : > { %1919 = vmatmul.bf16.gmra.mxu3 %v1164_v52  ;;  %2072 = vmatpush.bf16.msra.mxu1 %v5581_v49  ;;  %v1103_v49 = vsel %vm6514_vm2, %v6700_v28, 0 }
  0xf8   : > { %1948 = vmatmul.bf16.gmra.mxu0 %v1183_v6  ;;  %v1198_v46 = vor.u32 %v1197_v31, %v1196_v38  ;;  %v5579_v6 = vld [vmem:[#allocation2 + $0x218] sm:$0xff]  ;;  %v8362_v38 = vshll.u32 %v6700_v28, 16 }
  0xf9   : > { %1890 = vmatmul.bf16.gmra.mxu2 %v1145_v54 }
  0xfa   : > { %v1199_v29 = vsel %vm8198_vm15, %v1194_v37, %v1198_v46  ;;  %v1201_v18 = vrot.slane %v8362_v38, 5  ;;  %v5577_v37 = vld [vmem:[#allocation2 + $0x208] sm:$0xff] }
  0xfb   : > { %2073 = vmatpush.bf16.msra.mxu1 %v5580_v17 }
  0xfc   : > { %v1202_v52 = vor.u32 %v1201_v18, %v1200_v42 }
  0xfe   : > { %v1203_v47 = vsel %vm8198_vm15, %v1198_v46, %v1202_v52 }
  0xff   : > { %2074 = vmatpush.bf16.msra.mxu1 %v5579_v6 }
 0x103   : > { %2075 = vmatpush.bf16.msra.mxu1 %v5578_v15 }
 0x104   : > { %1967 = vmatmul.bf16.gmra.mxu1 %v1199_v29 }
 0x107   : > { %2020 = vmatmul.bf16.vlgmr.msrb.gmra.mxu3 %v1101_v32  ;;  %2076 = vmatpush.bf16.msra.mxu1 %v5577_v37 }
 0x108   : > { %2049 = vmatmul.bf16.vlgmr.msra.gmra.mxu0 %v6632_v13 }
 0x109   : > { %1991 = vmatmul.bf16.vlgmr.msrb.gmra.mxu2 %v6543_v10  ;;  %v1204_v10 = vshrl.u32 %v6740_v25, 16 }
 0x10b   : > { %2077 = vmatpush.bf16.msra.mxu1 %v5576_v56  ;;  %v1206_v13 = vrot.slane %v1204_v10, 4  ;;  %v1233_v46 = vor.u32 %v1204_v10, %v1144_v41  ;;  %v6876_v41 = vld [vmem:[%s8131_s4] ss:$0 sm:$0xff] }
 0x10d   : > { %v1208_v5 = vor.u32 %v1207_v36, %v1206_v13 }
 0x10f   : > { %v1209_v31 = vsel %vm8198_vm15, %v1202_v52, %v1208_v5  ;;  %3035 = vmatpush.bf16.msrb.mxu1 %v5615_v61  ;;  %vm8370_vm15 = vnez %v8242_v63 }
 0x114   : > { %1972 = vmatmul.bf16.gmra.mxu1 %v1203_v47 }
 0x117   : > { %2025 = vmatmul.bf16.gmra.mxu3 %v1102_v34 }
 0x118   : > { %2054 = vmatmul.bf16.gmra.mxu0 %v6751_v40  ;;  %v8363_v40 = vmov 0  }
 0x119   : > { %1996 = vmatmul.bf16.gmra.mxu2 %v6640_v33  ;;  %v6862_v33 = vrot.slane %v8363_v40, 1 }
 0x11b   : > { %8364 = vst [vmem:[#allocation20_spill] sm:$0xff] %v6862_v33  ;;  %v1238_v17 = vsel %vm8365_vm12, %v1233_v46, %v6862_v33 }
 0x124   : > { %1977 = vmatmul.bf16.gmra.mxu1 %v1209_v31 }
 0x127   : > { %2030 = vmatmul.bf16.gmra.mxu3 %v1103_v49 }
 0x128   : > { %2059 = vmatmul.bf16.gmra.mxu0 %v1145_v54 }
 0x129   : > { %2001 = vmatmul.bf16.gmra.mxu2 %v6795_v21 }
 0x12f   : > { %v1847_v50 = vpop.f32.mrf.mxu1 }
 0x130   : > { %v1848_v29 = vadd.f32 %v6876_v41, %v1847_v50  ;;  %v1253_v50 = vsel %vm8357_vm7, %v6811_v57, %v6862_v33 }
 0x134   : > { %2078 = vmatmul.bf16.vlgmr.msra.gmra.mxu1 %v6657_v59 }
 0x137   : > { %2035 = vmatmul.bf16.gmra.mxu3 %v1104_v48  ;;  %v6870_v28 = vpop.f32.mrf.mxu1 }
 0x138   : > { %2064 = vmatmul.bf16.gmra.mxu0 %v1238_v17 }
 0x139   : > { %2006 = vmatmul.bf16.gmra.mxu2 %v6809_v45 }
 0x13f   : > { %v1852_v21 = vpop.f32.mrf.mxu1 }
 0x140   : > { %v1853_v47 = vadd.f32 %v6876_v41, %v1852_v21 }
 0x143   : > { %v1934_v59 = vpop.f32.mrf.mxu0 }
 0x144   : > { %2083 = vmatmul.bf16.gmra.mxu1 %v6815_v1 }
 0x147   : > { %v6878_v54 = vpop.f32.mrf.mxu1 }
 0x148   : > { %v1905_v25 = vpop.f32.mrf.mxu3 }
 0x14a   : > { %v1876_v6 = vpop.f32.mrf.mxu2 }
 0x14b   : > { %v1877_v32 = vadd.f32 %v1876_v6, %v1848_v29  ;;  %v6881_v15 = vpop.f32.mrf.mxu0 }
 0x14d   : > { %v1906_v45 = vadd.f32 %v1905_v25, %v1877_v32 }
 0x14f   : > { %v1857_v42 = vpop.f32.mrf.mxu1  ;;  %v1935_v38 = vadd.f32 %v1934_v59, %v1906_v45 }
 0x150   : > { %v6883_v18 = vpop.f32.mrf.mxu3  ;;  %v1858_v48 = vadd.f32 %v6876_v41, %v1857_v42 }
 0x152   : > { %v1878_v1 = vpop.f32.mrf.mxu2 }
 0x154   : > { %2088 = vmatmul.bf16.gmra.mxu1 %v6825_v11  ;;  %v1939_v37 = vpop.f32.mrf.mxu0 }
 0x157   : > { %v6886_v52 = vpop.f32.mrf.mxu1 }
 0x159   : > { %v1910_v56 = vpop.f32.mrf.mxu3 }
 0x15c   : > { %v1881_v34 = vpop.f32.mrf.mxu2  ;;  %v6889_v31 = vpop.f32.mrf.mxu0 }
 0x15d   : > { %v1882_v10 = vadd.f32 %v1881_v34, %v1853_v47 }
 0x15f   : > { %v1911_v13 = vadd.f32 %v1910_v56, %v1882_v10 }
 0x161   : > { %v1862_v36 = vpop.f32.mrf.mxu1  ;;  %v1940_v5 = vadd.f32 %v1939_v37, %v1911_v13  ;;  %v6891_v49 = vpop.f32.mrf.mxu3 }
 0x162   : > { %v1863_v47 = vadd.f32 %v6876_v41, %v1862_v36 }
 0x164   : > { %v6896_v11 = vpop.f32.mrf.mxu2  ;;  %2093 = vmatmul.bf16.gmra.mxu1 %v1253_v50 }
 0x165   : > { %v1944_v17 = vpop.f32.mrf.mxu0 }
 0x169   : > { %v6898_v46 = vpop.f32.mrf.mxu1 }
 0x16a   : > { %v1915_v40 = vpop.f32.mrf.mxu3 }
 0x16c   : > { %v1886_v21 = vpop.f32.mrf.mxu2 }
 0x16d   : > { %v1887_v59 = vadd.f32 %v1886_v21, %v1858_v48  ;;  %v6905_v57 = vpop.f32.mrf.mxu0  ;;  %v5591_v21 = vld [vmem:[#allocation2 + $0x278] sm:$0xff] }
 0x16e   : > { %2948 = vmatpush.bf16.msra.mxu2 %v5591_v21  ;;  %v1850_v21 = vadd.f32 %v6876_v41, %v6870_v28  ;;  %v5586_v28 = vld [vmem:[#allocation2 + $0x250] sm:$0xff] }
 0x16f   : > { %v1916_v25 = vadd.f32 %v1915_v40, %v1887_v59 }
 0x171   : > { %v1963_v29 = vpop.f32.mrf.mxu1  ;;  %v1945_v6 = vadd.f32 %v1944_v17, %v1916_v25 }
 0x172   : > { %v1964_v32 = vadd.f32 %v1963_v29, %v1935_v38  ;;  %v6901_v45 = vpop.f32.mrf.mxu3 }
 0x174   : > { %v6903_v37 = vpop.f32.mrf.mxu2 }
 0x175   : > { %v1949_v50 = vpop.f32.mrf.mxu0 }
 0x179   : > { %v1965_v56 = vpop.f32.mrf.mxu1 }
 0x17a   : > { %v1920_v13 = vpop.f32.mrf.mxu3 }
 0x17c   : > { %v1891_v34 = vpop.f32.mrf.mxu2 }
 0x17d   : > { %v1892_v10 = vadd.f32 %v1891_v34, %v1863_v47  ;;  %v6918_v36 = vpop.f32.mrf.mxu0 }
 0x17f   : > { %v1921_v42 = vadd.f32 %v1920_v13, %v1892_v10  ;;  %v5590_v10 = vld [vmem:[#allocation2 + $0x270] sm:$0xff] }
 0x180   : > { %2949 = vmatpush.bf16.msra.mxu2 %v5590_v10  ;;  %v5587_v10 = vld [vmem:[#allocation2 + $0x258] sm:$0xff] }
 0x181   : > { %v1968_v33 = vpop.f32.mrf.mxu1  ;;  %v1950_v48 = vadd.f32 %v1949_v50, %v1921_v42 }
 0x182   : > { %v6908_v40 = vadd.f32 %v1968_v33, %v1940_v5  ;;  %v6916_v29 = vpop.f32.mrf.mxu3  ;;  %v5589_v33 = vld [vmem:[#allocation2 + $0x268] sm:$0xff] }
 0x184   : > { %v6912_v38 = vpop.f32.mrf.mxu2  ;;  %2950 = vmatpush.bf16.msra.mxu2 %v5589_v33 }
 0x185   : > { %v2050_v5 = vpop.f32.mrf.mxu0 }
 0x188   : > { %2951 = vmatpush.bf16.msra.mxu2 %v5588_v24  ;;  %v5598_v24 = vld [vmem:[#allocation2 + $0x2b0] sm:$0xff] }
 0x189   : > { %v6910_v17 = vpop.f32.mrf.mxu1 }
 0x18a   : > { %v2021_v13 = vpop.f32.mrf.mxu3 }
 0x18c   : > { %v1992_v47 = vpop.f32.mrf.mxu2  ;;  %2952 = vmatpush.bf16.msra.mxu2 %v5587_v10  ;;  %v5597_v10 = vld [vmem:[#allocation2 + $0x2a8] sm:$0xff] }
 0x18d   : > { %v1993_v55 = vadd.f32 %v1992_v47, %v1964_v32  ;;  %v2052_v43 = vpop.f32.mrf.mxu0 }
 0x18f   : > { %v2022_v62 = vadd.f32 %v2021_v13, %v1993_v55 }
 0x190   : > { %2953 = vmatpush.bf16.msra.mxu2 %v5586_v28 }
 0x191   : > { %v1973_v59 = vpop.f32.mrf.mxu1  ;;  %v2051_v47 = vadd.f32 %v2050_v5, %v2022_v62  ;;  %v5605_v62 = vld [vmem:[#allocation2 + $0x2e8] sm:$0xff] }
 0x192   : > { %v6914_v25 = vadd.f32 %v1973_v59, %v1945_v6  ;;  %v1879_v59 = vadd.f32 %v1878_v1, %v1850_v21  ;;  %v2023_v51 = vpop.f32.mrf.mxu3  ;;  %v5606_v1 = vld [vmem:[#allocation2 + $0x2f0] sm:$0xff]  ;;  %v5585_v21 = vld [vmem:[#allocation2 + $0x248] sm:$0xff] }
 0x193   : > { %3007 = vmatpush.bf16.msrb.mxu0 %v5606_v1  ;;  %v5613_v5 = vld [vmem:[#allocation2 + $0x328] sm:$0xff]  ;;  %v5612_v1 = vld [vmem:[#allocation2 + $0x320] sm:$0xff] }
 0x194   : > { %v1994_v42 = vpop.f32.mrf.mxu2  ;;  %v1908_v35 = vadd.f32 %v6883_v18, %v1879_v59  ;;  %v1855_v59 = vadd.f32 %v6876_v41, %v6878_v54  ;;  %2954 = vmatpush.bf16.msra.mxu2 %v5585_v21 }
 0x196   : > { %v1937_v33 = vadd.f32 %v6881_v15, %v1908_v35  ;;  %v1884_v19 = vadd.f32 %v6896_v11, %v1855_v59  ;;  %v2055_v15 = vpop.f32.mrf.mxu0  ;;  %v5604_v11 = vld [vmem:[#allocation2 + $0x2e0] sm:$0xff] }
 0x197   : > { %3008 = vmatpush.bf16.msrb.mxu0 %v5605_v62 }
 0x198   : > { %v1966_v18 = vadd.f32 %v1965_v56, %v1937_v33  ;;  %v1913_v54 = vadd.f32 %v6891_v49, %v1884_v19  ;;  %v5603_v49 = vld [vmem:[#allocation2 + $0x2d8] sm:$0xff] }
 0x199   : > { %v6920_v34 = vpop.f32.mrf.mxu1 }
 0x19a   : > { %v1995_v32 = vadd.f32 %v1994_v42, %v1966_v18  ;;  %v2026_v9 = vpop.f32.mrf.mxu3  ;;  %v5584_v42 = vld [vmem:[#allocation2 + $0x240] sm:$0xff]  ;;  %v1942_v21 = vadd.f32 %v6889_v31, %v1913_v54  ;;  %v5610_v31 = vld [vmem:[#allocation2 + $0x310] sm:$0xff] }
 0x19b   : > { %2955 = vmatpush.bf16.msra.mxu2 %v5584_v42  ;;  %v5596_v18 = vld [vmem:[#allocation2 + $0x2a0] sm:$0xff]  ;;  %3009 = vmatpush.bf16.msrb.mxu0 %v5604_v11  ;;  %v5601_v11 = vld [vmem:[#allocation2 + $0x2c8] sm:$0xff] }
 0x19c   : > { %v1997_v4 = vpop.f32.mrf.mxu2  ;;  %v2024_v61 = vadd.f32 %v2023_v51, %v1995_v32  ;;  %v1971_v59 = vadd.f32 %v6910_v17, %v1942_v21 }
 0x19d   : > { %v1998_v33 = vadd.f32 %v1997_v4, %v6908_v40  ;;  %v5595_v40 = vld [vmem:[#allocation2 + $0x298] sm:$0xff] }
 0x19f   : > { %v2027_v4 = vadd.f32 %v2026_v9, %v1998_v33  ;;  %3010 = vmatpush.bf16.msrb.mxu0 %v5603_v49 }
 0x1a1   : > { %v1978_v50 = vpop.f32.mrf.mxu1  ;;  %v2056_v62 = vadd.f32 %v2055_v15, %v2027_v4 }
 0x1a2   : > { %v6924_v6 = vadd.f32 %v1978_v50, %v1950_v48  ;;  %v5599_v48 = vld [vmem:[#allocation2 + $0x2b8] sm:$0xff]  ;;  %v5614_v50 = vld [vmem:[#allocation2 + $0x330] sm:$0xff] }
 0x1a3   : > { %2977 = vmatpush.bf16.msra.mxu3 %v5599_v48  ;;  %3036 = vmatpush.bf16.msrb.mxu1 %v5614_v50  ;;  %v2053_v48 = vadd.f32 %v2052_v43, %v2024_v61 }
 0x1a4   : > { %v1999_v13 = vpop.f32.mrf.mxu2 }
 0x1a5   : > { %v2000_v9 = vadd.f32 %v1999_v13, %v1971_v59 }
 0x1a7   : > { %2978 = vmatpush.bf16.msra.mxu3 %v5598_v24  ;;  %3037 = vmatpush.bf16.msrb.mxu1 %v5613_v5  ;;  %v2028_v24 = vpop.f32.mrf.mxu3  ;;  %v5594_v5 = vld [vmem:[#allocation2 + $0x290] sm:$0xff] }
 0x1a9   : > { %v6927_v12 = vpop.f32.mrf.mxu1 }
 0x1ab   : > { %2979 = vmatpush.bf16.msra.mxu3 %v5597_v10  ;;  %3038 = vmatpush.bf16.msrb.mxu1 %v5612_v1  ;;  %v1860_v10 = vadd.f32 %v6876_v41, %v6886_v52  ;;  %v5609_v1 = vld [vmem:[#allocation2 + $0x308] sm:$0xff] }
 0x1ac   : > { %v2002_v19 = vpop.f32.mrf.mxu2 }
 0x1ad   : > { %v2003_v21 = vadd.f32 %v2002_v19, %v6914_v25 }
 0x1af   : > { %2980 = vmatpush.bf16.msra.mxu3 %v5596_v18  ;;  %v2031_v15 = vpop.f32.mrf.mxu3 }
 0x1b0   : > { %v2032_v25 = vadd.f32 %v2031_v15, %v2003_v21 }
 0x1b1   : > { %v2079_v35 = vpop.f32.mrf.mxu1 }
 0x1b2   : > { %v2080_v55 = vadd.f32 %v2079_v35, %v2051_v47  ;;  %v5611_v47 = vld [vmem:[#allocation2 + $0x318] sm:$0xff]  ;;  %v2057_v35 = vpop.f32.mrf.mxu0 }
 0x1b3   : > { %3039 = vmatpush.bf16.msrb.mxu1 %v5611_v47  ;;  %2981 = vmatpush.bf16.msra.mxu3 %v5595_v40 }
 0x1b4   : > { %v2107_v56 = vmul.f32 0.01, %v2080_v55  ;;  %vm2099_vm6 = vcmp.gt.f32.partialorder %v2080_v55, 0.0 }
 0x1b6   : > { %v2115_v28 = vsel %vm2099_vm6, %v2080_v55, %v2107_v56  ;;  %v5602_v56 = vld [vmem:[#allocation2 + $0x2d0] sm:$0xff] }
 0x1b7   : > { %v6936_v32 = vadd.f32 %v2115_v28, %v6085_v14  ;;  %3011 = vmatpush.bf16.msrb.mxu0 %v5602_v56  ;;  %3040 = vmatpush.bf16.msrb.mxu1 %v5610_v31  ;;  %v5592_v31 = vld [vmem:[#allocation2 + $0x280] sm:$0xff] }
 0x1b8   : > { %2982 = vmatpush.bf16.msra.mxu3 %v5594_v5  ;;  %v1865_v5 = vadd.f32 %v6876_v41, %v6898_v46 }
 0x1b9   : > { %v2081_v51 = vpop.f32.mrf.mxu1  ;;  %v2131_v14 = vpack.c.bf16 %v6936_v32, %v6936_v32 }
 0x1ba   : > { %v2082_v50 = vadd.f32 %v2081_v51, %v2053_v48  ;;  %v2029_v48 = vadd.f32 %v2028_v24, %v2000_v9  ;;  %v2060_v47 = vpop.f32.mrf.mxu0  ;;  %v2004_v24 = vpop.f32.mrf.mxu2 }
 0x1bb   : > { %v2147_v33 = vunpack.c.l.b16 %v2131_v14  ;;  %3012 = vmatpush.bf16.msrb.mxu0 %v5601_v11  ;;  %3041 = vmatpush.bf16.msrb.mxu1 %v5609_v1  ;;  %v5608_v14 = vld [vmem:[#allocation2 + $0x300] sm:$0xff] }
 0x1bc   : > { %vm2100_vm4 = vcmp.gt.f32.partialorder %v2082_v50, 0.0  ;;  %v2108_v43 = vmul.f32 0.01, %v2082_v50 }
 0x1be   : > { %v2116_v55 = vsel %vm2100_vm4, %v2082_v50, %v2108_v43  ;;  %v5593_v50 = vld [vmem:[#allocation2 + $0x288] sm:$0xff]  ;;  %vm8366_vm4 = vnez %v8238_v53 }
 0x1bf   : > { %v6943_v61 = vadd.f32 %v2116_v55, %v6099_v30  ;;  %v1889_v30 = vadd.f32 %v6903_v37, %v1860_v10  ;;  %v2058_v37 = vadd.f32 %v2057_v35, %v2029_v48  ;;  %2983 = vmatpush.bf16.msra.mxu3 %v5593_v50  ;;  %v5600_v55 = vld [vmem:[#allocation2 + $0x2c0] sm:$0xff]  ;;  %3042 = vmatpush.bf16.msrb.mxu1 %v5608_v14  ;;  %v2033_v10 = vpop.f32.mrf.mxu3 }
 0x1c0   : > { %3013 = vmatpush.bf16.msrb.mxu0 %v5600_v55 }
 0x1c1   : > { %v2132_v17 = vpack.c.bf16 %v6943_v61, %v6943_v61  ;;  %v2084_v42 = vpop.f32.mrf.mxu1  ;;  %v1918_v52 = vadd.f32 %v6901_v45, %v1889_v30  ;;  %v2061_v30 = vadd.f32 %v2060_v47, %v2032_v25 }
 0x1c2   : > { %v2085_v54 = vadd.f32 %v2084_v42, %v2056_v62  ;;  %v2062_v48 = vpop.f32.mrf.mxu0 }
 0x1c3   : > { %v2148_v28 = vunpack.c.l.b16 %v2132_v17  ;;  %v1947_v45 = vadd.f32 %v6905_v57, %v1918_v52  ;;  %2984 = vmatpush.bf16.msra.mxu3 %v5592_v31 }
 0x1c4   : > { %v2109_v51 = vmul.f32 0.01, %v2085_v54  ;;  %vm2101_vm12 = vcmp.gt.f32.partialorder %v2085_v54, 0.0 }
 0x1c5   : > { %v2155_v13 = vpack.c.b16 %v2148_v28, %v2147_v33  ;;  %v1976_v17 = vadd.f32 %v6920_v34, %v1947_v45  ;;  %v1894_v33 = vadd.f32 %v6912_v38, %v1865_v5 }
 0x1c6   : > { %v2117_v4 = vsel %vm2101_vm12, %v2085_v54, %v2109_v51  ;;  %v2007_v51 = vpop.f32.mrf.mxu2  ;;  %vm8367_vm12 = vnez %v8246_v8 }
 0x1c7   : > { %v2160_v18 = vshrl.u32 %v2155_v13, 16  ;;  %v2163_v49 = vshll.u32 %v2155_v13, 16  ;;  %v6953_v9 = vadd.f32 %v2117_v4, %v6183_v7  ;;  %v2005_v28 = vadd.f32 %v2004_v24, %v1976_v17  ;;  %v2036_v24 = vpop.f32.mrf.mxu3 }
 0x1c8   : > { %v1923_v11 = vadd.f32 %v6916_v29, %v1894_v33  ;;  %v2008_v38 = vadd.f32 %v2007_v51, %v6924_v6  ;;  %v5621_v51 = vld [vmem:[#allocation2 + $0x368] sm:$0xff] }
 0x1c9   : > { %v2162_v43 = vrot.slane %v2160_v18, 3  ;;  %v2165_v40 = vrot.slane %v2163_v49, 4  ;;  %v2086_v59 = vpop.f32.mrf.mxu1  ;;  %v2133_v57 = vpack.c.bf16 %v6953_v9, %v6953_v9  ;;  %v2034_v1 = vadd.f32 %v2033_v10, %v2005_v28 }
 0x1ca   : > { %v2087_v56 = vadd.f32 %v2086_v59, %v2058_v37  ;;  %v1952_v47 = vadd.f32 %v6918_v36, %v1923_v11  ;;  %v5623_v36 = vld [vmem:[#allocation2 + $0x378] sm:$0xff]  ;;  %v2065_v5 = vpop.f32.mrf.mxu0 }
 0x1cb   : > { %v2166_v62 = vor.u32 %v2165_v40, %v2162_v43  ;;  %v2149_v15 = vunpack.c.l.b16 %v2133_v57  ;;  %v2063_v21 = vadd.f32 %v2062_v48, %v2034_v1  ;;  %3064 = vmatpush.bf16.msrb.mxu2 %v5623_v36  ;;  %v5646_v36 = vld [vmem:[#allocation2 + $0x430] sm:$0xff] }
 0x1cc   : > { %vm2102_vm7 = vcmp.gt.f32.partialorder %v2087_v56, 0.0  ;;  %v2110_v35 = vmul.f32 0.01, %v2087_v56  ;;  %v1981_v14 = vadd.f32 %v6927_v12, %v1952_v47 }
 0x1cd   : > { %v6958_v19 = vsel %vm6152_vm10, 0, %v2166_v62 }
 0x1ce   : > { %v2118_v7 = vsel %vm2102_vm7, %v2087_v56, %v2110_v35  ;;  %v2201_v42 = vsel %vm6172_vm3, %v6958_v19, 0  ;;  %v2205_v4 = vsel %vm8366_vm4, %v6958_v19, 0  ;;  %v2231_v37 = vshll.u32 %v6958_v19, 16  ;;  %v2009_v17 = vpop.f32.mrf.mxu2 }
 0x1cf   : > { %v6969_v54 = vadd.f32 %v2118_v7, %v6230_v26  ;;  %2956 = vmatmul.bf16.vlgmr.msra.gmra.mxu2 %v2201_v42  ;;  %v2210_v6 = vsel %vm8367_vm12, %v6958_v19, 0  ;;  %v2037_v56 = vadd.f32 %v2036_v24, %v2008_v38  ;;  %v2273_v45 = vrot.slane %v2205_v4, 1  ;;  %v5622_v42 = vld [vmem:[#allocation2 + $0x370] sm:$0xff]  ;;  %v5639_v4 = vld [vmem:[#allocation2 + $0x3f8] sm:$0xff] }
 0x1d0   : > { %v2291_v35 = vrot.slane %v2210_v6, 4  ;;  %v2229_v12 = vshrl.u32 %v6958_v19, 16  ;;  %vm8369_vm12 = vnez %v8244_v0  ;;  %3065 = vmatpush.bf16.msrb.mxu2 %v5622_v42  ;;  %v5647_v24 = vld [vmem:[#allocation2 + $0x438] sm:$0xff]  ;;  %3122 = vmatpush.bf16.msra.mxu0 %v5639_v4  ;;  %v5617_v4 = vld [vmem:[#allocation2 + $0x348] sm:$0xff] }
 0x1d1   : > { %v2134_v41 = vpack.c.bf16 %v6969_v54, %v6969_v54  ;;  %v2089_v46 = vpop.f32.mrf.mxu1  ;;  %vm8371_vm3 = vmpackc.low %vm8369_vm12, %vm8370_vm15  ;;  %vm8375_vm15 = vnez %v8256_v22  ;;  %vm8377_vm12 = vcmask 1046528   ;;  %3151 = vmatpush.bf16.msra.mxu1 %v5647_v24  ;;  %v8386_v24 = vld [vmem:[#allocation6_spill] sm:$0xff] }
 0x1d2   : > { %v2090_v34 = vadd.f32 %v2089_v46, %v2061_v30  ;;  %v2215_v10 = vsel %vm8371_vm3, %v6958_v19, 0  ;;  %v2010_v46 = vadd.f32 %v2009_v17, %v1981_v14  ;;  %vm8374_vm3 = vnez %v8258_v27  ;;  %v2067_v14 = vpop.f32.mrf.mxu0 }
 0x1d3   : > { %v2150_v13 = vunpack.c.l.b16 %v2134_v41  ;;  %v2334_v22 = vrot.slane %v2215_v10, 5 }
 0x1d4   : > { %vm2103_vm6 = vcmp.gt.f32.partialorder %v2090_v34, 0.0  ;;  %v2111_v26 = vmul.f32 0.01, %v2090_v34  ;;  %3066 = vmatpush.bf16.msrb.mxu2 %v5621_v51 }
 0x1d5   : > { %v2156_v50 = vpack.c.b16 %v2150_v13, %v2149_v15  ;;  %3152 = vmatpush.bf16.msra.mxu1 %v5646_v36 }
 0x1d6   : > { %v2119_v18 = vsel %vm2103_vm6, %v2090_v34, %v2111_v26  ;;  %vm8368_vm6 = vsmask.f32 4352  ;;  %v2066_v34 = vadd.f32 %v2065_v5, %v2037_v56 }
 0x1d7   : > { %v2168_v49 = vshrl.u32 %v2156_v50, 16  ;;  %v2171_v52 = vshll.u32 %v2156_v50, 16  ;;  %v6982_v40 = vadd.f32 %v2119_v18, %v6340_v23  ;;  %v2233_v23 = vrot.slane %v2231_v37, 1  ;;  %v2038_v50 = vpop.f32.mrf.mxu3 }
 0x1d9   : > { %v2170_v29 = vrot.slane %v2168_v49, 3  ;;  %v2173_v43 = vrot.slane %v2171_v52, 4  ;;  %v2091_v59 = vpop.f32.mrf.mxu1  ;;  %v2135_v8 = vpack.c.bf16 %v6982_v40, %v6982_v40  ;;  %v2234_v48 = vor.u32 %v2233_v23, %v2229_v12  ;;  %v5619_v23 = vld [vmem:[#allocation2 + $0x358] sm:$0xff] }
 0x1da   : > { %v2092_v55 = vadd.f32 %v2091_v59, %v2063_v21  ;;  %v2039_v52 = vadd.f32 %v2038_v50, %v2010_v46  ;;  %v5620_v21 = vld [vmem:[#allocation2 + $0x360] sm:$0xff]  ;;  %v5631_v59 = vld [vmem:[#allocation2 + $0x3b8] sm:$0xff] }
 0x1db   : > { %v6988_v31 = vor.u32 %v2173_v43, %v2170_v29  ;;  %v2151_v18 = vunpack.c.l.b16 %v2135_v8  ;;  %3093 = vmatpush.bf16.msrb.mxu3 %v5631_v59  ;;  %3067 = vmatpush.bf16.msrb.mxu2 %v5620_v21  ;;  %v8385_v50 = vld [vmem:[#allocation9_spill] sm:$0xff] }
 0x1dc   : > { %vm2104_vm7 = vcmp.gt.f32.partialorder %v2092_v55, 0.0  ;;  %v2112_v25 = vmul.f32 0.01, %v2092_v55 }
 0x1dd   : > { %v6996_v7 = vsel %vm8368_vm6, %v2166_v62, %v6988_v31  ;;  %vm8373_vm6 = vnez %v8262_v39 }
 0x1de   : > { %v2120_v57 = vsel %vm2104_vm7, %v2092_v55, %v2112_v25  ;;  %v2202_v33 = vsel %vm6311_vm9, %v6996_v7, 0  ;;  %v2206_v62 = vsel %vm8372_vm8, %v6996_v7, 0  ;;  %v2211_v28 = vsel %vm8373_vm6, %v6996_v7, 0  ;;  %vm8376_vm7 = vmpackc.low %vm8374_vm3, %vm8375_vm15  ;;  %v5638_v55 = vld [vmem:[#allocation2 + $0x3f0] sm:$0xff] }
 0x1df   : > { %v7015_v30 = vadd.f32 %v2120_v57, %v6420_v58  ;;  %2961 = vmatmul.bf16.gmra.mxu2 %v2202_v33  ;;  %v7017_v63 = vrot.slane %v2206_v62, 1  ;;  %v7019_v0 = vrot.slane %v2211_v28, 4  ;;  %v2236_v41 = vshll.u32 %v6996_v7, 16  ;;  %v5630_v25 = vld [vmem:[#allocation2 + $0x3b0] sm:$0xff]  ;;  %3123 = vmatpush.bf16.msra.mxu0 %v5638_v55  ;;  %v5637_v57 = vld [vmem:[#allocation2 + $0x3e8] sm:$0xff] }
 0x1e0   : > { %v7030_v39 = vsel %vm8376_vm7, %v6996_v7, 0  ;;  %vm8378_vm6 = vcmask 1043456   ;;  %vm8379_vm3 = vsmask.f32 7424  ;;  %vm8380_vm7 = vcmask 1042432   ;;  %v5645_v33 = vld [vmem:[#allocation2 + $0x428] sm:$0xff]  ;;  %3094 = vmatpush.bf16.msrb.mxu3 %v5630_v25  ;;  %3068 = vmatpush.bf16.msrb.mxu2 %v5619_v23 }
 0x1e1   : > { %v2136_v58 = vpack.c.bf16 %v7015_v30, %v7015_v30  ;;  %v2094_v15 = vpop.f32.mrf.mxu1  ;;  %v2275_v13 = vsel %vm8377_vm12, %v2273_v45, %v7017_v63  ;;  %v2293_v11 = vsel %vm8378_vm6, %v2291_v35, %v7019_v0  ;;  %v7040_v1 = vrot.slane %v2236_v41, 1  ;;  %v5629_v28 = vld [vmem:[#allocation2 + $0x3a8] sm:$0xff]  ;;  %3153 = vmatpush.bf16.msra.mxu1 %v5645_v33  ;;  %v5627_v33 = vld [vmem:[#allocation2 + $0x398] sm:$0xff] }
 0x1e2   : > { %v2095_v27 = vadd.f32 %v2094_v15, %v2066_v34  ;;  %3014 = vmatmul.bf16.vlgmr.msrb.gmra.mxu0 %v2275_v13  ;;  %3043 = vmatmul.bf16.vlgmr.msrb.gmra.mxu1 %v2293_v11  ;;  %v2335_v26 = vrot.slane %v7030_v39, 5  ;;  %v2068_v35 = vadd.f32 %v2067_v14, %v2039_v52  ;;  %v5618_v34 = vld [vmem:[#allocation2 + $0x350] sm:$0xff]  ;;  %vm8381_vm6 = vsmask.f32 4352  ;;  %v5636_v52 = vld [vmem:[#allocation2 + $0x3e0] sm:$0xff] }
 0x1e3   : > { %v2152_v38 = vunpack.c.l.b16 %v2136_v58  ;;  %v2239_v49 = vsel %vm8379_vm3, %v2234_v48, %v7040_v1  ;;  %v2240_v51 = vshrl.u32 %v6996_v7, 16  ;;  %v2224_v58 = vsel %vm8366_vm4, %v6996_v7, 0  ;;  %3124 = vmatpush.bf16.msra.mxu0 %v5637_v57  ;;  %v5626_v39 = vld [vmem:[#allocation2 + $0x390] sm:$0xff] }
 0x1e4   : > { %vm2105_vm15 = vcmp.gt.f32.partialorder %v2095_v27, 0.0  ;;  %v2113_v47 = vmul.f32 0.01, %v2095_v27  ;;  %2985 = vmatmul.bf16.vlgmr.msra.gmra.mxu3 %v2239_v49  ;;  %v7048_v29 = vsel %vm8380_vm7, %v2334_v22, %v2335_v26  ;;  %v8383_v22 = vld [vmem:[#allocation8_spill] sm:$0xff]  ;;  %3069 = vmatpush.bf16.msrb.mxu2 %v5618_v34  ;;  %vm8387_vm4 = vnez %v8386_v24  ;;  %v5634_v34 = vld [vmem:[#allocation2 + $0x3d0] sm:$0xff] }
 0x1e5   : > { %v2157_v43 = vpack.c.b16 %v2152_v38, %v2151_v18  ;;  %vm8384_vm3 = vnez %v8383_v22  ;;  %3095 = vmatpush.bf16.msrb.mxu3 %v5629_v28  ;;  %v2242_v21 = vor.u32 %v2240_v51, %v7040_v1  ;;  %v8399_v24 = vld [vmem:[#allocation11_spill] sm:$0xff] }
 0x1e6   : > { %v2121_v6 = vsel %vm2105_vm15, %v2095_v27, %v2113_v47  ;;  %v5644_v47 = vld [vmem:[#allocation2 + $0x420] sm:$0xff] }
 0x1e7   : > { %v2177_v56 = vshrl.u32 %v2157_v43, 16  ;;  %v2180_v45 = vshll.u32 %v2157_v43, 16  ;;  %v7051_v8 = vadd.f32 %v2121_v6, %v6546_v16  ;;  %v8388_v43 = vld [vmem:[#allocation5_spill] sm:$0xff]  ;;  %3125 = vmatpush.bf16.msra.mxu0 %v5636_v52  ;;  %3154 = vmatpush.bf16.msra.mxu1 %v5644_v47 }
 0x1e8   : > { %vm8389_vm15 = vnez %v8388_v43  ;;  %3070 = vmatpush.bf16.msrb.mxu2 %v5617_v4 }
 0x1e9   : > { %v2179_v5 = vrot.slane %v2177_v56, 3  ;;  %v2182_v17 = vrot.slane %v2180_v45, 4  ;;  %v2096_v42 = vpop.f32.mrf.mxu1  ;;  %v2137_v48 = vpack.c.bf16 %v7051_v8, %v7051_v8  ;;  %vm8390_vm7 = vmpackc.low %vm8387_vm4, %vm8389_vm15  ;;  %v5628_v56 = vld [vmem:[#allocation2 + $0x3a0] sm:$0xff]  ;;  %v2354_v45 = vrot.slane %v2224_v58, 1 }
 0x1ea   : > { %v2097_v10 = vadd.f32 %v2096_v42, %v2068_v35  ;;  %3096 = vmatpush.bf16.msrb.mxu3 %v5628_v56  ;;  %vm8396_vm15 = vsmask.f32 4352 }
 0x1eb   : > { %v7053_v62 = vor.u32 %v2182_v17, %v2179_v5  ;;  %v2153_v35 = vunpack.c.l.b16 %v2137_v48  ;;  %v5643_v17 = vld [vmem:[#allocation2 + $0x418] sm:$0xff]  ;;  %v5642_v48 = vld [vmem:[#allocation2 + $0x410] sm:$0xff] }
 0x1ec   : > { %vm2106_vm12 = vcmp.gt.f32.partialorder %v2097_v10, 0.0  ;;  %v2114_v46 = vmul.f32 0.01, %v2097_v10  ;;  %3155 = vmatpush.bf16.msra.mxu1 %v5643_v17  ;;  %v8403_v17 = vld [vmem:[#allocation13_spill] sm:$0xff] }
 0x1ed   : > { %v7060_v16 = vsel %vm8381_vm6, %v6988_v31, %v7053_v62  ;;  %vm8392_vm6 = vcmask 1043456  }
 0x1ee   : > { %v2122_v15 = vsel %vm2106_vm12, %v2097_v10, %v2114_v46  ;;  %v2203_v13 = vsel %vm6514_vm2, %v7060_v16, 0  ;;  %v2207_v27 = vsel %vm6536_vm1, %v7060_v16, 0  ;;  %v2212_v31 = vsel %vm8384_vm3, %v7060_v16, 0  ;;  %3097 = vmatpush.bf16.msrb.mxu3 %v5627_v33 }
 0x1ef   : > { %v7076_v18 = vadd.f32 %v2122_v15, %v8385_v50  ;;  %2966 = vmatmul.bf16.gmra.mxu2 %v2203_v13  ;;  %v7078_v53 = vrot.slane %v2207_v27, 1  ;;  %v7080_v38 = vrot.slane %v2212_v31, 4  ;;  %v2244_v49 = vshll.u32 %v7060_v16, 16  ;;  %v5633_v13 = vld [vmem:[#allocation2 + $0x3c8] sm:$0xff] }
 0x1f0   : > { %v7092_v59 = vsel %vm8390_vm7, %v7060_v16, 0  ;;  %v2225_v6 = vsel %vm8372_vm8, %v7060_v16, 0  ;;  %vm8391_vm12 = vcmask 1046528   ;;  %vm8393_vm8 = vsmask.f32 7424  ;;  %3156 = vmatpush.bf16.msra.mxu1 %v5642_v48  ;;  %v5641_v27 = vld [vmem:[#allocation2 + $0x408] sm:$0xff] }
 0x1f1   : > { %v2138_v55 = vpack.c.bf16 %v7076_v18, %v7076_v18  ;;  %v2277_v1 = vsel %vm8391_vm12, %v7017_v63, %v7078_v53  ;;  %v2295_v36 = vsel %vm8392_vm6, %v7019_v0, %v7080_v38  ;;  %v2246_v14 = vrot.slane %v2244_v49, 1  ;;  %v5616_v63 = vld [vmem:[#allocation2 + $0x340] sm:$0xff]  ;;  %v5635_v0 = vld [vmem:[#allocation2 + $0x3d8] sm:$0xff]  ;;  %vm8395_vm4 = vmmov %vm8391_vm12 }
 0x1f2   : > { %3019 = vmatmul.bf16.gmra.mxu0 %v2277_v1  ;;  %3048 = vmatmul.bf16.gmra.mxu1 %v2295_v36  ;;  %v2337_v20 = vrot.slane %v7092_v59, 5  ;;  %v7108_v25 = vrot.slane %v2225_v6, 1  ;;  %vm8394_vm3 = vcmask 1042432   ;;  %v2248_v31 = vshrl.u32 %v7060_v16, 16  ;;  %v5625_v50 = vld [vmem:[#allocation2 + $0x388] sm:$0xff]  ;;  %v5632_v1 = vld [vmem:[#allocation2 + $0x3c0] sm:$0xff]  ;;  %vm8401_vm12 = vmmov %vm8395_vm4 }
 0x1f3   : > { %v2154_v23 = vunpack.c.l.b16 %v2138_v55  ;;  %v7111_v5 = vsel %vm8393_vm8, %v2242_v21, %v2246_v14  ;;  %3126 = vmatpush.bf16.msra.mxu0 %v5635_v0  ;;  %3071 = vmatpush.bf16.msrb.mxu2 %v5616_v63  ;;  %vm8400_vm7 = vnez %v8399_v24  ;;  %v5624_v63 = vld [vmem:[#allocation2 + $0x380] sm:$0xff]  ;;  %v2307_v33 = vrot.slane %v2240_v51, 4 }
 0x1f4   : > { %2990 = vmatmul.bf16.gmra.mxu3 %v7111_v5  ;;  %v7119_v42 = vsel %vm8394_vm3, %v2335_v26, %v2337_v20  ;;  %v7123_v10 = vsel %vm8395_vm4, %v2354_v45, %v7108_v25  ;;  %v2250_v36 = vor.u32 %v2248_v31, %v2246_v14  ;;  %3157 = vmatpush.bf16.msra.mxu1 %v5641_v27  ;;  %v5640_v45 = vld [vmem:[#allocation2 + $0x400] sm:$0xff] }
 0x1f5   : > { %v2158_v57 = vpack.c.b16 %v2154_v23, %v2153_v35  ;;  %3098 = vmatpush.bf16.msrb.mxu3 %v5626_v39  ;;  %vm8404_vm3 = vnez %v8403_v17  ;;  %v2305_v39 = vrot.slane %v2231_v37, 5  ;;  %v5654_v17 = vld [vmem:[#allocation2 + $0x470] sm:$0xff] }
 0x1f6   : > { %vm8405_vm4 = vmpackc.low %vm6703_vm14, %vm8404_vm3  ;;  %vm8411_vm14 = vcmask 1042432   ;;  %vm8422_vm3 = vcmask 1043456  }
 0x1f7   : > { %v2186_v28 = vshrl.u32 %v2158_v57, 16  ;;  %v2189_v46 = vshll.u32 %v2158_v57, 16  ;;  %3127 = vmatpush.bf16.msra.mxu0 %v5634_v34  ;;  %v2308_v57 = vrot.slane %v2236_v41, 5 }
 0x1f8   : > { %3158 = vmatpush.bf16.msra.mxu1 %v5640_v45 }
 0x1f9   : > { %v2188_v58 = vrot.slane %v2186_v28, 3  ;;  %v2191_v15 = vrot.slane %v2189_v46, 4  ;;  %3099 = vmatpush.bf16.msrb.mxu3 %v5625_v50  ;;  %v8406_v28 = vld [vmem:[#allocation16_spill] sm:$0xff]  ;;  %v8408_v46 = vld [vmem:[#allocation15_spill] sm:$0xff]  ;;  %v2309_v11 = vor.u32 %v2308_v57, %v2307_v33  ;;  %v2312_v57 = vrot.slane %v2244_v49, 5 }
 0x1fa   : > { %v5650_v49 = vld [vmem:[#allocation2 + $0x450] sm:$0xff] }
 0x1fb   : > { %v2192_v26 = vor.u32 %v2191_v15, %v2188_v58  ;;  %3128 = vmatpush.bf16.msra.mxu0 %v5633_v13  ;;  %v2304_v15 = vrot.slane %v2229_v12, 4 }
 0x1fd   : > { %v7127_v22 = vsel %vm8396_vm15, %v7053_v62, %v2192_v26  ;;  %v7153_v14 = vsel %vm6152_vm10, %v2192_v26, 0  ;;  %3100 = vmatpush.bf16.msrb.mxu3 %v5624_v63  ;;  %vm8407_vm10 = vnez %v8406_v28  ;;  %vm8409_vm15 = vnez %v8408_v46 }
 0x1fe   : > { %v2204_v47 = vsel %vm6673_vm11, %v7127_v22, 0  ;;  %v2208_v4 = vsel %vm6688_vm13, %v7127_v22, 0  ;;  %v2213_v43 = vsel %vm8400_vm7, %v7127_v22, 0  ;;  %v2252_v6 = vshll.u32 %v7127_v22, 16  ;;  %vm8410_vm7 = vmpackc.low %vm8407_vm10, %vm8409_vm15 }
 0x1ff   : > { %2971 = vmatmul.bf16.gmra.mxu2 %v2204_v47  ;;  %v2278_v62 = vrot.slane %v2208_v4, 1  ;;  %v2296_v55 = vrot.slane %v2213_v43, 4  ;;  %3129 = vmatpush.bf16.msra.mxu0 %v5632_v1  ;;  %v2219_v34 = vsel %vm8410_vm7, %v7153_v14, 0  ;;  %v2226_v48 = vsel %vm6536_vm1, %v7127_v22, 0  ;;  %vm8412_vm1 = vmmov %vm8411_vm14  ;;  %v8416_v47 = vld [vmem:[#allocation19_spill] sm:$0xff] }
 0x200   : > { %v2254_v56 = vrot.slane %v2252_v6, 1  ;;  %v2227_v41 = vsel %vm6688_vm13, %v7153_v14, 0  ;;  %v2341_v58 = vrot.slane %v2219_v34, 5  ;;  %v2357_v26 = vrot.slane %v2226_v48, 1  ;;  %vm8415_vm13 = vmpackc.low %vm6760_vm5, %vm6755_vm0  ;;  %v5649_v34 = vld [vmem:[#allocation2 + $0x448] sm:$0xff] }
 0x201   : > { %v2279_v35 = vsel %vm8401_vm12, %v7078_v53, %v2278_v62  ;;  %v2297_v23 = vsel %vm8392_vm6, %v7080_v38, %v2296_v55  ;;  %v2218_v38 = vsel %vm8405_vm4, %v7127_v22, 0  ;;  %v7187_v13 = vrot.slane %v2227_v41, 1  ;;  %v5648_v41 = vld [vmem:[#allocation2 + $0x440] sm:$0xff] }
 0x202   : > { %3024 = vmatmul.bf16.gmra.mxu0 %v2279_v35  ;;  %3053 = vmatmul.bf16.gmra.mxu1 %v2297_v23  ;;  %v7149_v0 = vsel %vm8393_vm8, %v2250_v36, %v2254_v56  ;;  %v2339_v60 = vrot.slane %v2218_v38, 5  ;;  %vm8417_vm12 = vnez %v8416_v47  ;;  %vm8418_vm6 = vcmask 1046528   ;;  %v5655_v35 = vld [vmem:[#allocation2 + $0x478] sm:$0xff] }
 0x203   : > { %v2214_v12 = vsel %vm8417_vm12, %v7153_v14, 0  ;;  %v7203_v19 = vsel %vm8418_vm6, %v7108_v25, %v2357_v26  ;;  %vm8419_vm8 = vmmov %vm8418_vm6  ;;  %v2306_v21 = vor.u32 %v2305_v39, %v2304_v15  ;;  %v2256_v43 = vshrl.u32 %v7127_v22, 16  ;;  %3180 = vmatpush.bf16.msra.mxu2 %v5655_v35 }
 0x204   : > { %2995 = vmatmul.bf16.gmra.mxu3 %v7149_v0  ;;  %v7181_v51 = vsel %vm8411_vm14, %v2337_v20, %v2339_v60  ;;  %v7190_v27 = vsel %vm8412_vm1, %v2339_v60, %v2341_v58  ;;  %v2209_v20 = vsel %vm8415_vm13, %v7153_v14, 0  ;;  %v7207_v37 = vsel %vm8419_vm8, %v2357_v26, %v7187_v13  ;;  %vm8421_vm5 = vmmov %vm8418_vm6  ;;  %v5651_v60 = vld [vmem:[#allocation2 + $0x458] sm:$0xff] }
 0x205   : > { %v2280_v4 = vrot.slane %v2209_v20, 1  ;;  %v2298_v24 = vrot.slane %v2214_v12, 4  ;;  %v2260_v1 = vshll.u32 %v7153_v14, 16  ;;  %vm8420_vm0 = vsmask.f32 3328 }
 0x206   : > { %v2310_v36 = vsel %vm8420_vm0, %v2306_v21, %v2309_v11  ;;  %v2258_v45 = vor.u32 %v2256_v43, %v2254_v56  ;;  %vm8423_vm4 = vsmask.f32 7424  ;;  %v2311_v38 = vrot.slane %v2248_v31, 4  ;;  %v5653_v56 = vld [vmem:[#allocation2 + $0x468] sm:$0xff]  ;;  %vm8424_vm10 = vmmov %vm8420_vm0 }
 0x207   : > { %v2281_v23 = vsel %vm8421_vm5, %v2278_v62, %v2280_v4  ;;  %v2299_v25 = vsel %vm8422_vm3, %v2296_v55, %v2298_v24  ;;  %v2262_v63 = vrot.slane %v2260_v1, 1  ;;  %3181 = vmatpush.bf16.msra.mxu2 %v5654_v17  ;;  %v5652_v62 = vld [vmem:[#allocation2 + $0x460] sm:$0xff]  ;;  %vm8425_vm15 = vnez %v8226_v3  ;;  %vm8426_vm7 = vmmov %vm8420_vm0 }
 0x208   : > { %v2313_v33 = vor.u32 %v2312_v57, %v2311_v38  ;;  %v2220_v28 = vsel %vm8425_vm15, %v6996_v7, 0  ;;  %v2315_v31 = vrot.slane %v2256_v43, 4  ;;  %v2316_v46 = vrot.slane %v2252_v6, 5  ;;  %vm8427_vm14 = vmmov %vm8420_vm0 }
 0x209   : > { %v2263_v53 = vsel %vm8423_vm4, %v2258_v45, %v2262_v63  ;;  %v2221_v3 = vsel %vm6311_vm9, %v7060_v16, 0  ;;  %v2319_v7 = vshrl.u32 %v7153_v14, 16  ;;  %v2222_v39 = vsel %vm6514_vm2, %v7127_v22, 0  ;;  %vm8429_vm9 = vmmov %vm8423_vm4 }
 0x20a   : > { %v2314_v55 = vsel %vm8424_vm10, %v2309_v11, %v2313_v33  ;;  %v2317_v48 = vor.u32 %v2316_v46, %v2315_v31  ;;  %v2223_v16 = vsel %vm6673_vm11, %v7153_v14, 0  ;;  %vm8430_vm2 = vmmov %vm8421_vm5 }
 0x20b   : > { %3182 = vmatpush.bf16.msra.mxu2 %v5653_v56  ;;  %v2347_v44 = vor.u32 %v2319_v7, %v2262_v63 }
 0x20c   : > { %v2318_v58 = vsel %vm8426_vm7, %v2313_v33, %v2317_v48 }
 0x20f   : > { %3072 = vmatmul.bf16.vlgmr.msrb.gmra.mxu2 %v2310_v36 }
 0x210   : > { %3183 = vmatpush.bf16.msra.mxu2 %v5652_v62 }
 0x212   : > { %3029 = vmatmul.bf16.gmra.mxu0 %v2281_v23  ;;  %3058 = vmatmul.bf16.gmra.mxu1 %v2299_v25 }
 0x214   : > { %3000 = vmatmul.bf16.gmra.mxu3 %v2263_v53  ;;  %3184 = vmatpush.bf16.msra.mxu2 %v5651_v60 }
 0x218   : > { %3185 = vmatpush.bf16.msra.mxu2 %v5650_v49 }
 0x21c   : > { %3186 = vmatpush.bf16.msra.mxu2 %v5649_v34 }
 0x21f   : > { %3077 = vmatmul.bf16.gmra.mxu2 %v2314_v55 }
 0x220   : > { %3187 = vmatpush.bf16.msra.mxu2 %v5648_v41 }
 0x222   : > { %3130 = vmatmul.bf16.vlgmr.msra.gmra.mxu0 %v2220_v28  ;;  %3159 = vmatmul.bf16.vlgmr.msra.gmra.mxu1 %v7111_v5  ;;  %v2322_v5 = vrot.slane %v2260_v1, 5 }
 0x224   : > { %3101 = vmatmul.bf16.vlgmr.msrb.gmra.mxu3 %v7048_v29  ;;  %v2321_v29 = vrot.slane %v2319_v7, 4 }
 0x226   : > { %v2323_v6 = vor.u32 %v2322_v5, %v2321_v29 }
 0x228   : > { %v2324_v15 = vsel %vm8427_vm14, %v2317_v48, %v2323_v6 }
 0x22f   : > { %3082 = vmatmul.bf16.gmra.mxu2 %v2318_v58 }
 0x232   : > { %3135 = vmatmul.bf16.gmra.mxu0 %v2221_v3  ;;  %3164 = vmatmul.bf16.gmra.mxu1 %v7149_v0 }
 0x234   : > { %3106 = vmatmul.bf16.gmra.mxu3 %v7119_v42  ;;  %v8428_v42 = vld [vmem:[#allocation20_spill] sm:$0xff] }
 0x235   : > { %v2348_v0 = vsel %vm8429_vm9, %v2347_v44, %v8428_v42  ;;  %v5351_v44 = vld [vmem:[%s8132_s5 + $0xa8] sm:$0xf] }
 0x23f   : > { %3087 = vmatmul.bf16.gmra.mxu2 %v2324_v15 }
 0x242   : > { %3140 = vmatmul.bf16.gmra.mxu0 %v2222_v39  ;;  %3169 = vmatmul.bf16.gmra.mxu1 %v2263_v53  ;;  %v2361_v53 = vsel %vm8430_vm2, %v7187_v13, %v8428_v42  ;;  %v5677_v42 = vld [vmem:[%s8132_s5 + $0xac] sm:$0xf] }
 0x244   : > { %3111 = vmatmul.bf16.gmra.mxu3 %v7181_v51 }
 0x24f   : > { %3188 = vmatmul.bf16.vlgmr.msra.gmra.mxu2 %v7123_v10  ;;  %v7252_v10 = vld [vmem:[%s8131_s4 + $0x1] ss:$0 sm:$0xff] }
 0x252   : > { %v2957_v26 = vpop.f32.mrf.mxu2  ;;  %3145 = vmatmul.bf16.gmra.mxu0 %v2223_v16  ;;  %3174 = vmatmul.bf16.gmra.mxu1 %v2348_v0  ;;  %v5678_v16 = vld [vmem:[%s8132_s5 + $0xb0] sm:$0xf0] }
 0x253   : > { %v2958_v14 = vadd.f32 %v7252_v10, %v2957_v26  ;;  %v5352_v0 = vor.u32 %v5678_v16, %v5351_v44  ;;  %v5353_v26 = vld [vmem:[%s8132_s5 + $0xb4] sm:$0xf0]  ;;  %v5670_v44 = vld [vmem:[%s8132_s5 + $0x70] sm:$0xf0] }
 0x254   : > { %3116 = vmatmul.bf16.gmra.mxu3 %v7190_v27 }
 0x255   : > { %3413 = vmatpush.bf16.msra.mxu3 %v5352_v0 }
 0x25a   : > { %v7246_v2 = vpop.f32.mrf.mxu2 }
 0x25f   : > { %v3015_v22 = vpop.f32.mrf.mxu0  ;;  %v3044_v11 = vpop.f32.mrf.mxu1  ;;  %3193 = vmatmul.bf16.gmra.mxu2 %v7203_v19 }
 0x262   : > { %v2962_v52 = vpop.f32.mrf.mxu2 }
 0x263   : > { %v2963_v43 = vadd.f32 %v7252_v10, %v2962_v52  ;;  %v5356_v52 = vor.u32 %v5677_v42, %v5353_v26 }
 0x265   : > { %3442 = vmatpush.bf16.msrb.mxu0 %v5356_v52  ;;  %v5665_v52 = vld [vmem:[%s8132_s5 + $0x4c] sm:$0xf] }
 0x267   : > { %v2986_v51 = vpop.f32.mrf.mxu3  ;;  %v7255_v50 = vpop.f32.mrf.mxu0 }
 0x268   : > { %v2987_v59 = vadd.f32 %v2986_v51, %v2958_v14  ;;  %v7257_v20 = vpop.f32.mrf.mxu1 }
 0x26a   : > { %v3016_v27 = vadd.f32 %v3015_v22, %v2987_v59  ;;  %v7259_v47 = vpop.f32.mrf.mxu2  ;;  %v5359_v22 = vld [vmem:[%s8132_s5 + $0xb0] sm:$0xf] }
 0x26b   : > { %v5339_v59 = vld [vmem:[%s8132_s5 + $0x90] sm:$0xf] }
 0x26c   : > { %v3045_v12 = vadd.f32 %v3044_v11, %v3016_v27  ;;  %v5679_v11 = vld [vmem:[%s8132_s5 + $0xb8] sm:$0xf0] }
 0x26d   : > { %v5360_v14 = vor.u32 %v5679_v11, %v5359_v22  ;;  %v5675_v27 = vld [vmem:[%s8132_s5 + $0x98] sm:$0xf0]  ;;  %v5303_v22 = vld [vmem:[%s8132_s5 + $0x48] sm:$0xf]  ;;  %v5666_v11 = vld [vmem:[%s8132_s5 + $0x50] sm:$0xf0] }
 0x26f   : > { %v7261_v21 = vpop.f32.mrf.mxu3  ;;  %3198 = vmatmul.bf16.gmra.mxu2 %v7207_v37  ;;  %v3020_v19 = vpop.f32.mrf.mxu0  ;;  %3471 = vmatpush.bf16.msrb.mxu1 %v5360_v14  ;;  %v5304_v14 = vor.u32 %v5666_v11, %v5303_v22 }
 0x270   : > { %v3049_v24 = vpop.f32.mrf.mxu1 }
 0x272   : > { %v2967_v4 = vpop.f32.mrf.mxu2 }
 0x273   : > { %v2968_v57 = vadd.f32 %v7252_v10, %v2967_v4  ;;  %v5341_v4 = vld [vmem:[%s8132_s5 + $0x9c] sm:$0xf0] }
 0x277   : > { %v2991_v1 = vpop.f32.mrf.mxu3  ;;  %v7267_v23 = vpop.f32.mrf.mxu0 }
 0x278   : > { %v2992_v36 = vadd.f32 %v2991_v1, %v2963_v43  ;;  %v7269_v63 = vpop.f32.mrf.mxu1  ;;  %v5676_v43 = vld [vmem:[%s8132_s5 + $0xa0] sm:$0xf0] }
 0x27a   : > { %v3021_v45 = vadd.f32 %v3020_v19, %v2992_v36  ;;  %v7265_v35 = vpop.f32.mrf.mxu2  ;;  %v5340_v19 = vor.u32 %v5675_v27, %v5339_v59  ;;  %v5305_v59 = vld [vmem:[%s8132_s5 + $0x54] sm:$0xf0]  ;;  %v5311_v27 = vld [vmem:[%s8132_s5 + $0x50] sm:$0xf] }
 0x27c   : > { %v3050_v25 = vadd.f32 %v3049_v24, %v3021_v45  ;;  %v5347_v24 = vld [vmem:[%s8132_s5 + $0x98] sm:$0xf]  ;;  %3414 = vmatpush.bf16.msra.mxu3 %v5340_v19 }
 0x27d   : > { %v5348_v36 = vor.u32 %v5676_v43, %v5347_v24  ;;  %v5327_v45 = vld [vmem:[%s8132_s5 + $0x78] sm:$0xf]  ;;  %v5291_v43 = vld [vmem:[%s8132_s5 + $0x30] sm:$0xf] }
 0x27f   : > { %v7274_v37 = vpop.f32.mrf.mxu3  ;;  %3203 = vmatmul.bf16.gmra.mxu2 %v2361_v53  ;;  %v3025_v38 = vpop.f32.mrf.mxu0  ;;  %v5671_v53 = vld [vmem:[%s8132_s5 + $0x7c] sm:$0xf]  ;;  %3472 = vmatpush.bf16.msrb.mxu1 %v5348_v36  ;;  %v5662_v36 = vld [vmem:[%s8132_s5 + $0x34] sm:$0xf] }
 0x280   : > { %v3054_v56 = vpop.f32.mrf.mxu1 }
 0x282   : > { %v2972_v17 = vpop.f32.mrf.mxu2 }
 0x283   : > { %v2973_v48 = vadd.f32 %v7252_v10, %v2972_v17 }
 0x287   : > { %v2996_v33 = vpop.f32.mrf.mxu3  ;;  %v7279_v49 = vpop.f32.mrf.mxu0 }
 0x288   : > { %v2997_v62 = vadd.f32 %v2996_v33, %v2968_v57  ;;  %v7283_v46 = vpop.f32.mrf.mxu1  ;;  %v5335_v57 = vld [vmem:[%s8132_s5 + $0x80] sm:$0xf] }
 0x28a   : > { %v3026_v55 = vadd.f32 %v3025_v38, %v2997_v62  ;;  %v7277_v60 = vpop.f32.mrf.mxu2  ;;  %v5329_v38 = vld [vmem:[%s8132_s5 + $0x84] sm:$0xf0] }
 0x28b   : > { %v5332_v62 = vor.u32 %v5671_v53, %v5329_v38  ;;  %v5299_v53 = vld [vmem:[%s8132_s5 + $0x38] sm:$0xf] }
 0x28c   : > { %v3055_v28 = vadd.f32 %v3054_v56, %v3026_v55  ;;  %v5673_v56 = vld [vmem:[%s8132_s5 + $0x88] sm:$0xf0] }
 0x28d   : > { %v5336_v55 = vor.u32 %v5673_v56, %v5335_v57 }
 0x28f   : > { %v7281_v31 = vpop.f32.mrf.mxu3  ;;  %v3030_v3 = vpop.f32.mrf.mxu0  ;;  %3473 = vmatpush.bf16.msrb.mxu1 %v5336_v55 }
 0x290   : > { %v3059_v5 = vpop.f32.mrf.mxu1 }
 0x292   : > { %v3073_v13 = vpop.f32.mrf.mxu2 }
 0x293   : > { %v7285_v34 = vadd.f32 %v3073_v13, %v3045_v12  ;;  %v5674_v12 = vld [vmem:[%s8132_s5 + $0x94] sm:$0xf] }
 0x294   : > { %v5344_v1 = vor.u32 %v5674_v12, %v5341_v4  ;;  %v5667_v12 = vld [vmem:[%s8132_s5 + $0x58] sm:$0xf0]  ;;  %v5308_v4 = vor.u32 %v5665_v52, %v5305_v59  ;;  %v5656_v52 = vld [vmem:[%s8132_s5 + $0x4] sm:$0xf] }
 0x295   : > { %v5312_v24 = vor.u32 %v5667_v12, %v5311_v27  ;;  %v5269_v27 = vld [vmem:[%s8132_s5 + $0xc] sm:$0xf0]  ;;  %v5275_v12 = vld [vmem:[%s8132_s5 + $0x8] sm:$0xf] }
 0x296   : > { %3443 = vmatpush.bf16.msrb.mxu0 %v5344_v1  ;;  %v5663_v1 = vld [vmem:[%s8132_s5 + $0x38] sm:$0xf0] }
 0x297   : > { %v3001_v41 = vpop.f32.mrf.mxu3  ;;  %v7372_v16 = vpop.f32.mrf.mxu0 }
 0x298   : > { %v3002_v58 = vadd.f32 %v3001_v41, %v2973_v48  ;;  %v5315_v48 = vld [vmem:[%s8132_s5 + $0x60] sm:$0xf]  ;;  %v5669_v41 = vld [vmem:[%s8132_s5 + $0x68] sm:$0xf0] }
 0x29a   : > { %v3031_v7 = vadd.f32 %v3030_v3, %v3002_v58  ;;  %v7288_v29 = vpop.f32.mrf.mxu2  ;;  %3444 = vmatpush.bf16.msrb.mxu0 %v5332_v62  ;;  %v5668_v58 = vld [vmem:[%s8132_s5 + $0x64] sm:$0xf] }
 0x29c   : > { %v7290_v6 = vadd.f32 %v3059_v5, %v3031_v7  ;;  %v5316_v7 = vor.u32 %v5669_v41, %v5315_v48  ;;  %v5317_v5 = vld [vmem:[%s8132_s5 + $0x6c] sm:$0xf0]  ;;  %v5279_v48 = vld [vmem:[%s8132_s5 + $0x18] sm:$0xf]  ;;  %v5660_v41 = vld [vmem:[%s8132_s5 + $0x20] sm:$0xf0] }
 0x29d   : > { %v5320_v42 = vor.u32 %v5668_v58, %v5317_v5  ;;  %v5659_v58 = vld [vmem:[%s8132_s5 + $0x1c] sm:$0xf] }
 0x29f   : > { %v7350_v33 = vpop.f32.mrf.mxu3  ;;  %3445 = vmatpush.bf16.msrb.mxu0 %v5320_v42  ;;  %v3131_v56 = vpop.f32.mrf.mxu0  ;;  %v5287_v42 = vld [vmem:[%s8132_s5 + $0x20] sm:$0xf] }
 0x2a2   : > { %v3078_v15 = vpop.f32.mrf.mxu2 }
 0x2a3   : > { %v7292_v39 = vadd.f32 %v3078_v15, %v3050_v25  ;;  %v5672_v25 = vld [vmem:[%s8132_s5 + $0x80] sm:$0xf0]  ;;  %v5323_v15 = vld [vmem:[%s8132_s5 + $0x68] sm:$0xf]  ;;  %3446 = vmatpush.bf16.msrb.mxu0 %v5308_v4  ;;  %v5658_v4 = vld [vmem:[%s8132_s5 + $0x10] sm:$0xf0] }
 0x2a4   : > { %v5328_v17 = vor.u32 %v5672_v25, %v5327_v45  ;;  %v5324_v0 = vor.u32 %v5670_v44, %v5323_v15  ;;  %v5292_v45 = vor.u32 %v5663_v1, %v5291_v43  ;;  %v5293_v25 = vld [vmem:[%s8132_s5 + $0x3c] sm:$0xf0]  ;;  %v5280_v15 = vor.u32 %v5660_v41, %v5279_v48  ;;  %v5281_v44 = vld [vmem:[%s8132_s5 + $0x24] sm:$0xf0] }
 0x2a5   : > { %v5296_v38 = vor.u32 %v5662_v36, %v5293_v25  ;;  %v5284_v22 = vor.u32 %v5659_v58, %v5281_v44  ;;  %v5276_v43 = vor.u32 %v5658_v4, %v5275_v12  ;;  %v2970_v4 = vadd.f32 %v7252_v10, %v7265_v35 }
 0x2a6   : > { %3415 = vmatpush.bf16.msra.mxu3 %v5328_v17  ;;  %3474 = vmatpush.bf16.msrb.mxu1 %v5324_v0  ;;  %v5664_v17 = vld [vmem:[%s8132_s5 + $0x40] sm:$0xf0]  ;;  %v5661_v0 = vld [vmem:[%s8132_s5 + $0x28] sm:$0xf0] }
 0x2a7   : > { %v3102_v26 = vpop.f32.mrf.mxu3  ;;  %v5300_v57 = vor.u32 %v5664_v17, %v5299_v53  ;;  %3447 = vmatpush.bf16.msrb.mxu0 %v5296_v38  ;;  %v5288_v11 = vor.u32 %v5661_v0, %v5287_v42  ;;  %v3133_v1 = vpop.f32.mrf.mxu0 }
 0x2aa   : > { %v7312_v51 = vpop.f32.mrf.mxu2  ;;  %3416 = vmatpush.bf16.msra.mxu3 %v5316_v7  ;;  %3475 = vmatpush.bf16.msrb.mxu1 %v5312_v24  ;;  %v2960_v7 = vadd.f32 %v7252_v10, %v7246_v2  ;;  %v5267_v2 = vld [vmem:[%s8132_s5] sm:$0xf]  ;;  %v5272_v24 = vor.u32 %v5656_v52, %v5269_v27 }
 0x2ab   : > { %3448 = vmatpush.bf16.msrb.mxu0 %v5284_v22 }
 0x2ae   : > { %3417 = vmatpush.bf16.msra.mxu3 %v5304_v14  ;;  %3476 = vmatpush.bf16.msrb.mxu1 %v5300_v57  ;;  %v2989_v14 = vadd.f32 %v7261_v21, %v2960_v7 }
 0x2af   : > { %v3104_v55 = vpop.f32.mrf.mxu3  ;;  %3449 = vmatpush.bf16.msrb.mxu0 %v5272_v24  ;;  %v3136_v48 = vpop.f32.mrf.mxu0  ;;  %v2999_v24 = vadd.f32 %v7281_v31, %v2970_v4 }
 0x2b0   : > { %v3018_v21 = vadd.f32 %v7255_v50, %v2989_v14  ;;  %v2965_v50 = vadd.f32 %v7252_v10, %v7259_v47 }
 0x2b2   : > { %v3083_v13 = vpop.f32.mrf.mxu2  ;;  %3418 = vmatpush.bf16.msra.mxu3 %v5292_v45  ;;  %3477 = vmatpush.bf16.msrb.mxu1 %v5288_v11  ;;  %v3103_v45 = vadd.f32 %v3102_v26, %v7285_v34  ;;  %v3047_v17 = vadd.f32 %v7257_v20, %v3018_v21  ;;  %v2994_v7 = vadd.f32 %v7274_v37, %v2965_v50 }
 0x2b3   : > { %v7361_v3 = vadd.f32 %v3083_v13, %v3055_v28  ;;  %v7374_v28 = vpop.f32.mrf.mxu1  ;;  %v3028_v21 = vadd.f32 %v7279_v49, %v2999_v24 }
 0x2b4   : > { %v3076_v38 = vadd.f32 %v7288_v29, %v3047_v17  ;;  %v3132_v57 = vadd.f32 %v3131_v56, %v3103_v45  ;;  %v3023_v26 = vadd.f32 %v7267_v23, %v2994_v7 }
 0x2b6   : > { %3419 = vmatpush.bf16.msra.mxu3 %v5280_v15  ;;  %3478 = vmatpush.bf16.msrb.mxu1 %v5276_v43  ;;  %v3052_v11 = vadd.f32 %v7269_v63, %v3023_v26 }
 0x2b7   : > { %v3107_v53 = vpop.f32.mrf.mxu3  ;;  %v3138_v22 = vpop.f32.mrf.mxu0 }
 0x2b8   : > { %v3108_v56 = vadd.f32 %v3107_v53, %v7292_v39  ;;  %v3081_v37 = vadd.f32 %v7312_v51, %v3052_v11 }
 0x2ba   : > { %v7394_v19 = vpop.f32.mrf.mxu2 }
 0x2bb   : > { %v3160_v62 = vpop.f32.mrf.mxu1 }
 0x2bc   : > { %v3161_v58 = vadd.f32 %v3160_v62, %v3132_v57 }
 0x2bf   : > { %v3109_v34 = vpop.f32.mrf.mxu3 }
 0x2c0   : > { %v3110_v27 = vadd.f32 %v3109_v34, %v3081_v37 }
 0x2c2   : > { %v3088_v13 = vpop.f32.mrf.mxu2  ;;  %v3139_v51 = vadd.f32 %v3138_v22, %v3110_v27 }
 0x2c3   : > { %v7426_v5 = vadd.f32 %v3088_v13, %v7290_v6  ;;  %v5657_v6 = vld [vmem:[%s8132_s5 + $0x8] sm:$0xf0]  ;;  %v3162_v25 = vpop.f32.mrf.mxu1  ;;  %v3105_v13 = vadd.f32 %v3104_v55, %v3076_v38  ;;  %v3057_v38 = vadd.f32 %v7283_v46, %v3028_v21 }
 0x2c4   : > { %v5268_v59 = vor.u32 %v5657_v6, %v5267_v2  ;;  %v3137_v2 = vadd.f32 %v3136_v48, %v3108_v56 }
 0x2c5   : > { %v3134_v15 = vadd.f32 %v3133_v1, %v3105_v13  ;;  %v3141_v1 = vpop.f32.mrf.mxu0  ;;  %v3086_v13 = vadd.f32 %v7394_v19, %v3057_v38 }
 0x2c6   : > { %3420 = vmatpush.bf16.msra.mxu3 %v5268_v59 }
 0x2c7   : > { %v3163_v20 = vadd.f32 %v3162_v25, %v3134_v15  ;;  %v3112_v14 = vpop.f32.mrf.mxu3 }
 0x2c8   : > { %v3113_v17 = vadd.f32 %v3112_v14, %v7361_v3  ;;  %v2975_v3 = vadd.f32 %v7252_v10, %v7277_v60 }
 0x2ca   : > { %v7457_v36 = vpop.f32.mrf.mxu2  ;;  %v3142_v48 = vadd.f32 %v3141_v1, %v3113_v17  ;;  %v3004_v19 = vadd.f32 %v7350_v33, %v2975_v3 }
 0x2cb   : > { %v3165_v44 = vpop.f32.mrf.mxu1 }
 0x2cc   : > { %v3166_v63 = vadd.f32 %v3165_v44, %v3137_v2 }
 0x2cd   : > { %v3143_v50 = vpop.f32.mrf.mxu0 }
 0x2cf   : > { %v3114_v25 = vpop.f32.mrf.mxu3 }
 0x2d0   : > { %v3115_v7 = vadd.f32 %v3114_v25, %v3086_v13 }
 0x2d2   : > { %v3189_v41 = vpop.f32.mrf.mxu2  ;;  %v3144_v26 = vadd.f32 %v3143_v50, %v3115_v7  ;;  %v3277_v50 = vld [vmem:[%s8133_s6] sm:$0x7] }
 0x2d3   : > { %v3190_v42 = vadd.f32 %v3189_v41, %v3161_v58  ;;  %v3167_v6 = vpop.f32.mrf.mxu1 }
 0x2d5   : > { %v3217_v0 = vmul.f32 0.01, %v3190_v42  ;;  %vm3209_vm11 = vcmp.gt.f32.partialorder %v3190_v42, 0.0 }
 0x2d7   : > { %v3225_v47 = vsel %vm3209_vm11, %v3190_v42, %v3217_v0  ;;  %v3117_v34 = vpop.f32.mrf.mxu3 }
 0x2d8   : > { %v3233_v23 = vadd.f32 %v3225_v47, %v6936_v32 }
 0x2da   : > { %v3191_v29 = vpop.f32.mrf.mxu2 }
 0x2db   : > { %v3192_v55 = vadd.f32 %v3191_v29, %v3163_v20  ;;  %v3170_v32 = vpop.f32.mrf.mxu1  ;;  %v3146_v29 = vpop.f32.mrf.mxu0 }
 0x2dc   : > { %v3171_v42 = vadd.f32 %v3170_v32, %v3142_v48 }
 0x2dd   : > { %vm3210_vm1 = vcmp.gt.f32.partialorder %v3192_v55, 0.0  ;;  %v3218_v62 = vmul.f32 0.01, %v3192_v55 }
 0x2df   : > { %v3226_v52 = vsel %vm3210_vm1, %v3192_v55, %v3218_v62  ;;  %v3118_v55 = vadd.f32 %v3117_v34, %v7426_v5  ;;  %v3119_v33 = vpop.f32.mrf.mxu3 }
 0x2e0   : > { %v3234_v59 = vadd.f32 %v3226_v52, %v6943_v61  ;;  %v3168_v61 = vadd.f32 %v3167_v6, %v3139_v51 }
 0x2e1   : > { %v3147_v37 = vadd.f32 %v3146_v29, %v3118_v55 }
 0x2e2   : > { %v3241_v12 = vpack.c.bf16 %v3234_v59, %v3233_v23  ;;  %v3194_v39 = vpop.f32.mrf.mxu2 }
 0x2e3   : > { %v3195_v43 = vadd.f32 %v3194_v39, %v3166_v63  ;;  %v3172_v46 = vpop.f32.mrf.mxu1  ;;  %v3148_v59 = vpop.f32.mrf.mxu0 }
 0x2e4   : > { %3421 = vmatmul.bf16.vlgmr.msra.gmra.mxu3 %v3241_v12  ;;  %3450 = vmatmul.bf16.vlgmr.msrb.gmra.mxu0 %v3241_v12 }
 0x2e5   : > { %3479 = vmatmul.bf16.vlgmr.msrb.gmra.mxu1 %v3241_v12  ;;  %v3219_v45 = vmul.f32 0.01, %v3195_v43  ;;  %vm3211_vm13 = vcmp.gt.f32.partialorder %v3195_v43, 0.0 }
 0x2e7   : > { %v3227_v57 = vsel %vm3211_vm13, %v3195_v43, %v3219_v45 }
 0x2e8   : > { %v3235_v49 = vadd.f32 %v3227_v57, %v6953_v9  ;;  %v3033_v9 = vadd.f32 %v7372_v16, %v3004_v19 }
 0x2ea   : > { %v3196_v53 = vpop.f32.mrf.mxu2  ;;  %v3062_v60 = vadd.f32 %v7374_v28, %v3033_v9 }
 0x2eb   : > { %v3197_v35 = vadd.f32 %v3196_v53, %v3168_v61  ;;  %v3175_v47 = vpop.f32.mrf.mxu1 }
 0x2ec   : > { %v3091_v62 = vadd.f32 %v7457_v36, %v3062_v60  ;;  %v3176_v5 = vadd.f32 %v3175_v47, %v3147_v37 }
 0x2ed   : > { %vm3212_vm12 = vcmp.gt.f32.partialorder %v3197_v35, 0.0  ;;  %v3220_v31 = vmul.f32 0.01, %v3197_v35 }
 0x2ee   : > { %v3120_v52 = vadd.f32 %v3119_v33, %v3091_v62 }
 0x2ef   : > { %v3228_v41 = vsel %vm3212_vm12, %v3197_v35, %v3220_v31 }
 0x2f0   : > { %v3236_v58 = vadd.f32 %v3228_v41, %v6969_v54  ;;  %v3173_v54 = vadd.f32 %v3172_v46, %v3144_v26  ;;  %v3149_v28 = vadd.f32 %v3148_v59, %v3120_v52 }
 0x2f2   : > { %v3199_v15 = vpop.f32.mrf.mxu2  ;;  %v3242_v44 = vpack.c.bf16 %v3236_v58, %v3235_v49  ;;  %v3280_v49 = vperm.slane %v3277_v50, 1  ;;  %v3281_v58 = vperm.slane %v3277_v50, 2 }
 0x2f3   : > { %v3200_v0 = vadd.f32 %v3199_v15, %v3171_v42  ;;  %v3177_v12 = vpop.f32.mrf.mxu1 }
 0x2f4   : > { %3426 = vmatmul.bf16.gmra.mxu3 %v3242_v44  ;;  %3455 = vmatmul.bf16.gmra.mxu0 %v3242_v44  ;;  %v3178_v4 = vadd.f32 %v3177_v12, %v3149_v28 }
 0x2f5   : > { %3484 = vmatmul.bf16.gmra.mxu1 %v3242_v44  ;;  %v3221_v20 = vmul.f32 0.01, %v3200_v0  ;;  %vm3213_vm6 = vcmp.gt.f32.partialorder %v3200_v0, 0.0 }
 0x2f7   : > { %v3229_v22 = vsel %vm3213_vm6, %v3200_v0, %v3221_v20  ;;  %vm3564_vm6 = vcmask 523264  }
 0x2f8   : > { %v3237_v16 = vadd.f32 %v3229_v22, %v6982_v40 }
 0x2fa   : > { %v3201_v56 = vpop.f32.mrf.mxu2 }
 0x2fb   : > { %v3202_v10 = vadd.f32 %v3201_v56, %v3173_v54 }
 0x2fd   : > { %vm3214_vm8 = vcmp.gt.f32.partialorder %v3202_v10, 0.0  ;;  %v3222_v11 = vmul.f32 0.01, %v3202_v10 }
 0x2ff   : > { %v3230_v2 = vsel %vm3214_vm8, %v3202_v10, %v3222_v11 }
 0x300   : > { %v3238_v6 = vadd.f32 %v3230_v2, %v7015_v30 }
 0x302   : > { %v3204_v14 = vpop.f32.mrf.mxu2  ;;  %v3243_v23 = vpack.c.bf16 %v3238_v6, %v3237_v16 }
 0x303   : > { %v3205_v27 = vadd.f32 %v3204_v14, %v3176_v5 }
 0x304   : > { %3431 = vmatmul.bf16.gmra.mxu3 %v3243_v23  ;;  %3460 = vmatmul.bf16.gmra.mxu0 %v3243_v23 }
 0x305   : > { %3489 = vmatmul.bf16.gmra.mxu1 %v3243_v23  ;;  %v3223_v39 = vmul.f32 0.01, %v3205_v27  ;;  %vm3215_vm0 = vcmp.gt.f32.partialorder %v3205_v27, 0.0 }
 0x307   : > { %v3231_v24 = vsel %vm3215_vm0, %v3205_v27, %v3223_v39  ;;  %v3279_v27 = vperm.slane %v3277_v50, 0  ;;  %vm8440_vm0 = vcmask 1040384  }
 0x308   : > { %v3239_v51 = vadd.f32 %v3231_v24, %v7051_v8 }
 0x30a   : > { %v3206_v36 = vpop.f32.mrf.mxu2 }
 0x30b   : > { %v3207_v63 = vadd.f32 %v3206_v36, %v3178_v4 }
 0x30d   : > { %vm3216_vm5 = vcmp.gt.f32.partialorder %v3207_v63, 0.0  ;;  %v3224_v40 = vmul.f32 0.01, %v3207_v63 }
 0x30f   : > { %v3232_v30 = vsel %vm3216_vm5, %v3207_v63, %v3224_v40 }
 0x310   : > { %v3240_v43 = vadd.f32 %v3232_v30, %v7076_v18  ;;  %v8431_v18 = vlaneseq }
 0x312   : > { %v3244_v1 = vpack.c.bf16 %v3240_v43, %v3239_v51  ;;  %v7496_v48 = vand.u32 127, %v8431_v18 }
 0x314   : > { %3436 = vmatmul.bf16.gmra.mxu3 %v3244_v1  ;;  %3465 = vmatmul.bf16.gmra.mxu0 %v3244_v1  ;;  %vm3657_vm3 = vcmp.ge.s32.totalorder %v7496_v48, 32  ;;  %vm3658_vm4 = vcmp.lt.s32.totalorder %v7496_v48, 64  ;;  %vm3507_vm10 = vcmp.lt.s32.totalorder %v7496_v48, 32  ;;  %vm4088_vm9 = vcmp.ge.s32.totalorder %v7496_v48, 96 }
 0x315   : > { %3494 = vmatmul.bf16.gmra.mxu1 %v3244_v1  ;;  %vm3659_vm15 = vmand %vm3657_vm3, %vm3658_vm4  ;;  %vm3889_vm11 = vcmp.ge.s32.totalorder %v7496_v48, 64  ;;  %vm3890_vm1 = vcmp.lt.s32.totalorder %v7496_v48, 96  ;;  %vm4515_vm3 = vcmp.eq.s32.totalorder %v7496_v48, 0  ;;  %vm4530_vm4 = vcmask 531456  }
 0x316   : > { %vm7504_vm7 = vmpackc.low %vm3507_vm10, %vm3507_vm10 }
 0x317   : > { %vm7508_vm14 = vmpackc.low %vm3659_vm15, %vm3659_vm15 }
 0x318   : > { %vm7533_vm2 = vmpackc.low %vm4088_vm9, %vm4088_vm9 }
 0x319   : > { %vm3891_vm13 = vmand %vm3889_vm11, %vm3890_vm1 }
 0x31a   : > { %vm7559_vm12 = vmpackc.low %vm3891_vm13, %vm3891_vm13 }
 0x361   : > { %v7491_v21 = vpop.f32.mrf.mxu0 }
 0x362   : > { %v3480_v32 = vpop.f32.mrf.mxu1  ;;  %v3452_v23 = vadd.f32 %v7491_v21, %v3280_v49 }
 0x363   : > { %v3481_v33 = vadd.f32 %v3480_v32, %v3281_v58 }
 0x367   : > { %v3422_v20 = vpop.f32.mrf.mxu3 }
 0x368   : > { %v3423_v39 = vadd.f32 %v3422_v20, %v3279_v27 }
 0x369   : > { %v7493_v45 = vpop.f32.mrf.mxu0 }
 0x36a   : > { %v3482_v61 = vpop.f32.mrf.mxu1  ;;  %v3454_v14 = vadd.f32 %v7493_v45, %v3280_v49 }
 0x36b   : > { %v3483_v11 = vadd.f32 %v3482_v61, %v3281_v58 }
 0x36c   : > { %v5371_v59 = vpack.c.bf16 %v3454_v14, %v3452_v23 }
 0x36d   : > { %v5395_v2 = vpack.c.bf16 %v3483_v11, %v3481_v33 }
 0x36f   : > { %v3424_v62 = vpop.f32.mrf.mxu3 }
 0x370   : > { %v3425_v12 = vadd.f32 %v3424_v62, %v3279_v27 }
 0x371   : > { %v3456_v25 = vpop.f32.mrf.mxu0 }
 0x372   : > { %v3485_v53 = vpop.f32.mrf.mxu1  ;;  %v3457_v6 = vadd.f32 %v3456_v25, %v3280_v49  ;;  %v7573_v4 = vpack.c.bf16 %v3425_v12, %v3423_v39 }
 0x373   : > { %v3486_v60 = vadd.f32 %v3485_v53, %v3281_v58 }
 0x377   : > { %v3427_v5 = vpop.f32.mrf.mxu3 }
 0x378   : > { %v3428_v40 = vadd.f32 %v3427_v5, %v3279_v27 }
 0x379   : > { %v3458_v17 = vpop.f32.mrf.mxu0 }
 0x37a   : > { %v3487_v35 = vpop.f32.mrf.mxu1  ;;  %v3459_v37 = vadd.f32 %v3458_v17, %v3280_v49 }
 0x37b   : > { %v3488_v56 = vadd.f32 %v3487_v35, %v3281_v58 }
 0x37c   : > { %v5368_v52 = vpack.c.bf16 %v3459_v37, %v3457_v6 }
 0x37d   : > { %v5392_v47 = vpack.c.bf16 %v3488_v56, %v3486_v60 }
 0x37f   : > { %v3429_v36 = vpop.f32.mrf.mxu3 }
 0x380   : > { %v3430_v24 = vadd.f32 %v3429_v36, %v3279_v27 }
 0x381   : > { %v3461_v38 = vpop.f32.mrf.mxu0 }
 0x382   : > { %v3490_v57 = vpop.f32.mrf.mxu1  ;;  %v3462_v10 = vadd.f32 %v3461_v38, %v3280_v49  ;;  %v7591_v30 = vpack.c.bf16 %v3430_v24, %v3428_v40 }
 0x383   : > { %v3491_v54 = vadd.f32 %v3490_v57, %v3281_v58 }
 0x387   : > { %v3432_v63 = vpop.f32.mrf.mxu3 }
 0x388   : > { %v3433_v1 = vadd.f32 %v3432_v63, %v3279_v27 }
 0x389   : > { %v3463_v31 = vpop.f32.mrf.mxu0 }
 0x38a   : > { %v3492_v8 = vpop.f32.mrf.mxu1  ;;  %v3464_v29 = vadd.f32 %v3463_v31, %v3280_v49 }
 0x38b   : > { %v3493_v0 = vadd.f32 %v3492_v8, %v3281_v58 }
 0x38c   : > { %v5365_v22 = vpack.c.bf16 %v3464_v29, %v3462_v10 }
 0x38d   : > { %v5389_v55 = vpack.c.bf16 %v3493_v0, %v3491_v54 }
 0x38f   : > { %v3434_v51 = vpop.f32.mrf.mxu3 }
 0x390   : > { %v3435_v43 = vadd.f32 %v3434_v51, %v3279_v27 }
 0x391   : > { %v3466_v13 = vpop.f32.mrf.mxu0 }
 0x392   : > { %v3495_v41 = vpop.f32.mrf.mxu1  ;;  %v3467_v15 = vadd.f32 %v3466_v13, %v3280_v49  ;;  %v7597_v32 = vpack.c.bf16 %v3435_v43, %v3433_v1 }
 0x393   : > { %v3496_v46 = vadd.f32 %v3495_v41, %v3281_v58 }
 0x397   : > { %v3437_v21 = vpop.f32.mrf.mxu3 }
 0x398   : > { %v3438_v25 = vadd.f32 %v3437_v21, %v3279_v27 }
 0x399   : > { %v3468_v7 = vpop.f32.mrf.mxu0 }
 0x39a   : > { %v3469_v44 = vadd.f32 %v3468_v7, %v3280_v49  ;;  %v3497_v3 = vpop.f32.mrf.mxu1 }
 0x39b   : > { %v3498_v34 = vadd.f32 %v3497_v3, %v3281_v58 }
 0x39c   : > { %v5362_v26 = vpack.c.bf16 %v3469_v44, %v3467_v15 }
 0x39d   : > { %v5386_v9 = vpack.c.bf16 %v3498_v34, %v3496_v46 }
 0x39e   : > { %5363 = vmatpush.bf16.xpose.msk.msrb.mxu2 %vm7504_vm7, %v5362_v26  ;;  %5375 = vmatpush.bf16.xpose.msk.msrb.mxu3 %vm7508_vm14, %v5362_v26 }
 0x39f   : > { %5387 = vmatpush.bf16.msk.msra.mxu0 %vm7508_vm14, %v5386_v9  ;;  %5403 = vmatpush.bf16.msk.msra.mxu1 %vm7504_vm7, %v5386_v9  ;;  %v3439_v45 = vpop.f32.mrf.mxu3 }
 0x3a0   : > { %v3440_v61 = vadd.f32 %v3439_v45, %v3279_v27 }
 0x3a2   : > { %v7601_v53 = vpack.c.bf16 %v3440_v61, %v3438_v25 }
 0x3a3   : > { %5390 = vmatpush.bf16.msk.msra.mxu0 %vm7508_vm14, %v5389_v55  ;;  %5406 = vmatpush.bf16.msk.msra.mxu1 %vm7504_vm7, %v5389_v55 }
 0x3a6   : > { %5366 = vmatpush.bf16.xpose.msk.msrb.mxu2 %vm7504_vm7, %v5365_v22  ;;  %5378 = vmatpush.bf16.xpose.msk.msrb.mxu3 %vm7508_vm14, %v5365_v22 }
 0x3a7   : > { %5393 = vmatpush.bf16.msk.msra.mxu0 %vm7508_vm14, %v5392_v47  ;;  %5409 = vmatpush.bf16.msk.msra.mxu1 %vm7504_vm7, %v5392_v47 }
 0x3ab   : > { %5396 = vmatpush.bf16.msk.msra.mxu0 %vm7508_vm14, %v5395_v2  ;;  %5412 = vmatpush.bf16.msk.msra.mxu1 %vm7504_vm7, %v5395_v2 }
 0x3ae   : > { %5369 = vmatpush.bf16.xpose.msk.msrb.mxu2 %vm7504_vm7, %v5368_v52  ;;  %5381 = vmatpush.bf16.xpose.msk.msrb.mxu3 %vm7508_vm14, %v5368_v52 }
 0x3af   : > { %5447 = vmatpush.bf16.xpose.msk.msrb.mxu0 %vm7533_vm2, %v5362_v26  ;;  %5459 = vmatpush.bf16.msk.msrb.mxu1 %vm7533_vm2, %v5386_v9 }
 0x3b3   : > { %5462 = vmatpush.bf16.msk.msrb.mxu1 %vm7533_vm2, %v5389_v55 }
 0x3b6   : > { %5372 = vmatpush.bf16.xpose.msk.msrb.mxu2 %vm7504_vm7, %v5371_v59  ;;  %5384 = vmatpush.bf16.xpose.msk.msrb.mxu3 %vm7508_vm14, %v5371_v59 }
 0x3b7   : > { %5450 = vmatpush.bf16.xpose.msk.msrb.mxu0 %vm7533_vm2, %v5365_v22  ;;  %5465 = vmatpush.bf16.msk.msrb.mxu1 %vm7533_vm2, %v5392_v47 }
 0x3bb   : > { %5468 = vmatpush.bf16.msk.msrb.mxu1 %vm7533_vm2, %v5395_v2 }
 0x3bd   : > { %3543 = vmatmul.bf16.vlgmr.msrb.gmra.mxu2 %v7573_v4  ;;  %3694 = vmatmul.bf16.vlgmr.msrb.gmra.mxu3 %v7573_v4 }
 0x3be   : > { %5419 = vmatpush.bf16.xpose.msk.msra.mxu2 %vm7559_vm12, %v5362_v26  ;;  %5431 = vmatpush.bf16.msk.msra.mxu3 %vm7559_vm12, %v5386_v9 }
 0x3bf   : > { %5453 = vmatpush.bf16.xpose.msk.msrb.mxu0 %vm7533_vm2, %v5368_v52 }
 0x3c2   : > { %5434 = vmatpush.bf16.msk.msra.mxu3 %vm7559_vm12, %v5389_v55 }
 0x3c6   : > { %5422 = vmatpush.bf16.xpose.msk.msra.mxu2 %vm7559_vm12, %v5365_v22  ;;  %5437 = vmatpush.bf16.msk.msra.mxu3 %vm7559_vm12, %v5392_v47 }
 0x3c7   : > { %5456 = vmatpush.bf16.xpose.msk.msrb.mxu0 %vm7533_vm2, %v5371_v59 }
 0x3ca   : > { %5440 = vmatpush.bf16.msk.msra.mxu3 %vm7559_vm12, %v5395_v2 }
 0x3cd   : > { %3548 = vmatmul.bf16.gmra.mxu2 %v7591_v30  ;;  %3699 = vmatmul.bf16.gmra.mxu3 %v7591_v30 }
 0x3ce   : > { %5425 = vmatpush.bf16.xpose.msk.msra.mxu2 %vm7559_vm12, %v5368_v52 }
 0x3d6   : > { %5428 = vmatpush.bf16.xpose.msk.msra.mxu2 %vm7559_vm12, %v5371_v59 }
 0x3dd   : > { %3553 = vmatmul.bf16.gmra.mxu2 %v7597_v32  ;;  %3704 = vmatmul.bf16.gmra.mxu3 %v7597_v32 }
 0x3ed   : > { %3558 = vmatmul.bf16.gmra.mxu2 %v7601_v53  ;;  %3709 = vmatmul.bf16.gmra.mxu3 %v7601_v53 }
 0x3fd   : > { %3926 = vmatmul.bf16.vlgmr.msra.gmra.mxu2 %v7573_v4 }
 0x40d   : > { %3931 = vmatmul.bf16.gmra.mxu2 %v7591_v30 }
 0x41d   : > { %3936 = vmatmul.bf16.gmra.mxu2 %v7597_v32 }
 0x42d   : > { %3941 = vmatmul.bf16.gmra.mxu2 %v7601_v53 }
 0x440   : > { %v3695_v17 = vpop.f32.mrf.mxu3  ;;  %v7617_v26 = vpop.f32.mrf.mxu2 }
 0x441   : > { %v3715_v35 = vsel %vm3564_vm6, %v3695_v17, -inf }
 0x442   : > { %3716 = vmax.xlane.f32.xlu0 %v3715_v35  ;;  %v3565_v35 = vsel %vm3564_vm6, %v7617_v26, -inf }
 0x448   : > { %v3697_v38 = vpop.f32.mrf.mxu3  ;;  %v7625_v10 = vpop.f32.mrf.mxu2 }
 0x449   : > { %v3718_v57 = vsel %vm3564_vm6, %v3697_v38, -inf }
 0x44a   : > { %3719 = vmax.xlane.f32.xlu0 %v3718_v57  ;;  %v3568_v57 = vsel %vm3564_vm6, %v7625_v10, -inf }
 0x450   : > { %v3700_v31 = vpop.f32.mrf.mxu3  ;;  %v7633_v2 = vpop.f32.mrf.mxu2 }
 0x451   : > { %v3721_v8 = vsel %vm3564_vm6, %v3700_v31, -inf }
 0x452   : > { %3722 = vmax.xlane.f32.xlu1 %v3721_v8 }
 0x458   : > { %v3702_v13 = vpop.f32.mrf.mxu3  ;;  %v7639_v5 = vpop.f32.mrf.mxu2 }
 0x459   : > { %v3724_v18 = vsel %vm3564_vm6, %v3702_v13, -inf }
 0x45a   : > { %3725 = vmax.xlane.f32.xlu1 %v3724_v18  ;;  %v3571_v18 = vsel %vm3564_vm6, %v7633_v2, -inf }
 0x460   : > { %v3705_v41 = vpop.f32.mrf.mxu3  ;;  %v7645_v63 = vpop.f32.mrf.mxu2 }
 0x461   : > { %v3727_v50 = vsel %vm3564_vm6, %v3705_v41, -inf }
 0x462   : > { %3728 = vmax.xlane.f32.xlu2 %v3727_v50 }
 0x468   : > { %v3707_v49 = vpop.f32.mrf.mxu3  ;;  %v7653_v61 = vpop.f32.mrf.mxu2 }
 0x469   : > { %v3730_v58 = vsel %vm3564_vm6, %v3707_v49, -inf }
 0x46a   : > { %3731 = vmax.xlane.f32.xlu2 %v3730_v58  ;;  %v3580_v58 = vsel %vm3564_vm6, %v7653_v61, -inf }
 0x470   : > { %v3710_v7 = vpop.f32.mrf.mxu3  ;;  %v7665_v8 = vpop.f32.mrf.mxu2 }
 0x471   : > { %v3733_v15 = vsel %vm3564_vm6, %v3710_v7, -inf  ;;  %v3583_v50 = vsel %vm3564_vm6, %v7665_v8, -inf }
 0x472   : > { %3734 = vmax.xlane.f32.xlu0 %v3733_v15 }
 0x478   : > { %v3712_v44 = vpop.f32.mrf.mxu3 }
 0x479   : > { %v3736_v3 = vsel %vm3564_vm6, %v3712_v44, -inf }
 0x47a   : > { %3737 = vmax.xlane.f32.xlu1 %v3736_v3 }
 0x4b5   : > { %v3717_v42 = vpop.xlane.xlu0 %3716 }
 0x4b6   : > { %v3739_v46 = vsub.f32 %v3695_v17, %v3717_v42 }
 0x4b8   : > { %v3747_v34 = vmul.f32 1.442695, %v3739_v46 }
 0x4ba   : > { %5717 = vpow2.f32 %v3747_v34 }
 0x4bd   : > { %v3720_v19 = vpop.xlane.xlu0 %3719 }
 0x4be   : > { %v3740_v0 = vsub.f32 %v3697_v38, %v3720_v19 }
 0x4c0   : > { %v7619_v9 = vpop.eup %5717  ;;  %v3749_v20 = vmul.f32 1.442695, %v3740_v0 }
 0x4c1   : > { %v3763_v54 = vsel %vm3564_vm6, %v7619_v9, 0.0 }
 0x4c2   : > { %5719 = vpow2.f32 %v3749_v20  ;;  %3764 = vadd.xlane.f32.xlu2 %v3763_v54 }
 0x4c5   : > { %v3723_v29 = vpop.xlane.xlu1 %3722 }
 0x4c6   : > { %v3741_v56 = vsub.f32 %v3700_v31, %v3723_v29 }
 0x4c8   : > { %v7623_v55 = vpop.eup %5719  ;;  %v3751_v60 = vmul.f32 1.442695, %v3741_v56 }
 0x4c9   : > { %v3766_v22 = vsel %vm3564_vm6, %v7623_v55, 0.0 }
 0x4ca   : > { %5721 = vpow2.f32 %v3751_v60  ;;  %3767 = vadd.xlane.f32.xlu0 %v3766_v22 }
 0x4cd   : > { %v3726_v11 = vpop.xlane.xlu1 %3725 }
 0x4ce   : > { %v3742_v47 = vsub.f32 %v3702_v13, %v3726_v11  ;;  %v3574_v13 = vsel %vm3564_vm6, %v7639_v5, -inf }
 0x4d0   : > { %v7629_v33 = vpop.eup %5721  ;;  %v3753_v62 = vmul.f32 1.442695, %v3742_v47 }
 0x4d1   : > { %v3769_v37 = vsel %vm3564_vm6, %v7629_v33, 0.0 }
 0x4d2   : > { %5723 = vpow2.f32 %v3753_v62  ;;  %3770 = vadd.xlane.f32.xlu1 %v3769_v37 }
 0x4d5   : > { %v3729_v16 = vpop.xlane.xlu2 %3728 }
 0x4d6   : > { %v3743_v6 = vsub.f32 %v3705_v41, %v3729_v16  ;;  %v3577_v41 = vsel %vm3564_vm6, %v7645_v63, -inf }
 0x4d8   : > { %v7635_v52 = vpop.eup %5723  ;;  %v3755_v14 = vmul.f32 1.442695, %v3743_v6 }
 0x4d9   : > { %v3772_v23 = vsel %vm3564_vm6, %v7635_v52, 0.0 }
 0x4da   : > { %5725 = vpow2.f32 %v3755_v14  ;;  %3773 = vadd.xlane.f32.xlu2 %v3772_v23 }
 0x4dd   : > { %v3732_v59 = vpop.xlane.xlu2 %3731 }
 0x4de   : > { %v3744_v28 = vsub.f32 %v3707_v49, %v3732_v59  ;;  %v7675_v49 = vpop.f32.mrf.mxu2 }
 0x4e0   : > { %v7641_v27 = vpop.eup %5725  ;;  %v3757_v12 = vmul.f32 1.442695, %v3744_v28 }
 0x4e1   : > { %v3775_v39 = vsel %vm3564_vm6, %v7641_v27, 0.0 }
 0x4e2   : > { %5727 = vpow2.f32 %v3757_v12  ;;  %3776 = vadd.xlane.f32.xlu0 %v3775_v39 }
 0x4e5   : > { %v3735_v36 = vpop.xlane.xlu0 %3734 }
 0x4e6   : > { %v3745_v24 = vsub.f32 %v3710_v7, %v3735_v36  ;;  %v3586_v7 = vsel %vm3564_vm6, %v7675_v49, -inf  ;;  %v7681_v15 = vpop.f32.mrf.mxu2 }
 0x4e8   : > { %v7647_v40 = vpop.eup %5727  ;;  %v3759_v51 = vmul.f32 1.442695, %v3745_v24 }
 0x4e9   : > { %v3778_v43 = vsel %vm3564_vm6, %v7647_v40, 0.0 }
 0x4ea   : > { %5729 = vpow2.f32 %v3759_v51  ;;  %3779 = vadd.xlane.f32.xlu1 %v3778_v43 }
 0x4ed   : > { %v3738_v1 = vpop.xlane.xlu1 %3737 }
 0x4ee   : > { %v3746_v21 = vsub.f32 %v3712_v44, %v3738_v1  ;;  %v3947_v44 = vsel %vm3564_vm6, %v7681_v15, -inf }
 0x4f0   : > { %v7651_v45 = vpop.eup %5729  ;;  %v3761_v25 = vmul.f32 1.442695, %v3746_v21 }
 0x4f1   : > { %v3781_v17 = vsel %vm3564_vm6, %v7651_v45, 0.0 }
 0x4f2   : > { %5731 = vpow2.f32 %v3761_v25  ;;  %3782 = vadd.xlane.f32.xlu2 %v3781_v17  ;;  %3566 = vmax.xlane.f32.xlu1 %v3565_v35 }
 0x4f8   : > { %v7659_v38 = vpop.eup %5731 }
 0x4f9   : > { %v3784_v31 = vsel %vm3564_vm6, %v7659_v38, 0.0 }
 0x4fa   : > { %3569 = vmax.xlane.f32.xlu2 %v3568_v57  ;;  %3785 = vadd.xlane.f32.xlu0 %v3784_v31 }
 0x4fb   : > { %3575 = vmax.xlane.f32.xlu1 %v3574_v13 }
 0x502   : > { %3572 = vmax.xlane.f32.xlu0 %v3571_v18  ;;  %3578 = vmax.xlane.f32.xlu2 %v3577_v41 }
 0x503   : > { %3584 = vmax.xlane.f32.xlu1 %v3583_v50 }
 0x50a   : > { %3581 = vmax.xlane.f32.xlu0 %v3580_v58  ;;  %3587 = vmax.xlane.f32.xlu2 %v3586_v7 }
 0x512   : > { %3948 = vmax.xlane.f32.xlu2 %v3947_v44 }
 0x535   : > { %v3765_v3 = vpop.xlane.xlu2 %3764 }
 0x536   : > { %5733 = vrcp.f32 %v3765_v3 }
 0x53c   : > { %v5734_v46 = vpop.eup %5733 }
 0x53d   : > { %v3768_v42 = vpop.xlane.xlu0 %3767  ;;  %v3795_v19 = vmul.f32 %v5734_v46, %v7619_v9 }
 0x53e   : > { %5735 = vrcp.f32 %v3768_v42 }
 0x544   : > { %v5736_v34 = vpop.eup %5735 }
 0x545   : > { %v3796_v0 = vmul.f32 %v5736_v34, %v7623_v55  ;;  %v3771_v54 = vpop.xlane.xlu1 %3770 }
 0x546   : > { %5737 = vrcp.f32 %v3771_v54 }
 0x547   : > { %v3803_v20 = vpack.c.bf16 %v3796_v0, %v3795_v19 }
 0x549   : > { %5397 = vmatmul.msk.bf16.vlgmr.msra.gmra.mxu0 %vm3564_vm6, %v3803_v20 }
 0x54c   : > { %v5738_v56 = vpop.eup %5737 }
 0x54d   : > { %v3774_v29 = vpop.xlane.xlu2 %3773  ;;  %v3797_v22 = vmul.f32 %v5738_v56, %v7629_v33 }
 0x54e   : > { %5739 = vrcp.f32 %v3774_v29 }
 0x554   : > { %v5740_v60 = vpop.eup %5739 }
 0x555   : > { %v3798_v11 = vmul.f32 %v5740_v60, %v7635_v52  ;;  %v3777_v62 = vpop.xlane.xlu0 %3776  ;;  %v7695_v52 = vpop.f32.mrf.mxu2 }
 0x556   : > { %5741 = vrcp.f32 %v3777_v62  ;;  %v3950_v41 = vsel %vm3564_vm6, %v7695_v52, -inf }
 0x557   : > { %v3804_v47 = vpack.c.bf16 %v3798_v11, %v3797_v22 }
 0x559   : > { %5398 = vmatmul.msk.bf16.gmra.mxu0 %vm3564_vm6, %v3804_v47 }
 0x55c   : > { %v5742_v55 = vpop.eup %5741 }
 0x55d   : > { %v3780_v9 = vpop.xlane.xlu1 %3779  ;;  %v3799_v16 = vmul.f32 %v5742_v55, %v7641_v27  ;;  %v7703_v21 = vpop.f32.mrf.mxu2 }
 0x55e   : > { %5743 = vrcp.f32 %v3780_v9 }
 0x564   : > { %v5744_v37 = vpop.eup %5743 }
 0x565   : > { %v3800_v6 = vmul.f32 %v5744_v37, %v7647_v40  ;;  %v3783_v14 = vpop.xlane.xlu2 %3782  ;;  %v3567_v23 = vpop.xlane.xlu1 %3566 }
 0x566   : > { %v3589_v59 = vsub.f32 %v7617_v26, %v3567_v23 }
 0x567   : > { %v3805_v33 = vpack.c.bf16 %v3800_v6, %v3799_v16 }
 0x568   : > { %v3597_v28 = vmul.f32 1.442695, %v3589_v59 }
 0x569   : > { %5399 = vmatmul.msk.bf16.gmra.mxu0 %vm3564_vm6, %v3805_v33 }
 0x56a   : > { %5745 = vpow2.f32 %v3597_v28 }
 0x56b   : > { %5747 = vrcp.f32 %v3783_v14 }
 0x56d   : > { %v3570_v12 = vpop.xlane.xlu2 %3569  ;;  %v3786_v39 = vpop.xlane.xlu0 %3785 }
 0x56e   : > { %v3590_v36 = vsub.f32 %v7625_v10, %v3570_v12  ;;  %5749 = vrcp.f32 %v3786_v39  ;;  %v3576_v27 = vpop.xlane.xlu1 %3575 }
 0x56f   : > { %v3592_v51 = vsub.f32 %v7639_v5, %v3576_v27 }
 0x570   : > { %v7698_v24 = vpop.eup %5745  ;;  %v3599_v40 = vmul.f32 1.442695, %v3590_v36 }
 0x571   : > { %v3613_v26 = vsel %vm3564_vm6, %v7698_v24, 0.0  ;;  %v5748_v43 = vpop.eup %5747  ;;  %v3603_v25 = vmul.f32 1.442695, %v3592_v51 }
 0x572   : > { %5751 = vpow2.f32 %v3599_v40  ;;  %3614 = vadd.xlane.f32.xlu0 %v3613_v26  ;;  %v3801_v17 = vmul.f32 %v5748_v43, %v7651_v45 }
 0x573   : > { %5753 = vpow2.f32 %v3603_v25 }
 0x574   : > { %v5750_v1 = vpop.eup %5749 }
 0x575   : > { %v3802_v10 = vmul.f32 %v5750_v1, %v7659_v38  ;;  %v3573_v35 = vpop.xlane.xlu0 %3572  ;;  %v3579_v45 = vpop.xlane.xlu2 %3578 }
 0x576   : > { %v3591_v57 = vsub.f32 %v7633_v2, %v3573_v35  ;;  %v7712_v38 = vpop.f32.mrf.mxu2  ;;  %v3593_v2 = vsub.f32 %v7645_v63, %v3579_v45  ;;  %v3585_v34 = vpop.xlane.xlu1 %3584 }
 0x577   : > { %v3806_v31 = vpack.c.bf16 %v3802_v10, %v3801_v17  ;;  %v3956_v46 = vsel %vm3564_vm6, %v7712_v38, -inf  ;;  %v3595_v63 = vsub.f32 %v7665_v8, %v3585_v34 }
 0x578   : > { %v5752_v13 = vpop.eup %5751  ;;  %v3601_v5 = vmul.f32 1.442695, %v3591_v57  ;;  %v3605_v3 = vmul.f32 1.442695, %v3593_v2 }
 0x579   : > { %5400 = vmatmul.msk.bf16.gmra.mxu0 %vm3564_vm6, %v3806_v31  ;;  %v3616_v18 = vsel %vm3564_vm6, %v5752_v13, 0.0  ;;  %v5754_v50 = vpop.eup %5753  ;;  %v3609_v54 = vmul.f32 1.442695, %v3595_v63 }
 0x57a   : > { %5755 = vpow2.f32 %v3601_v5  ;;  %3617 = vadd.xlane.f32.xlu1 %v3616_v18  ;;  %3951 = vmax.xlane.f32.xlu0 %v3950_v41  ;;  %v3622_v7 = vsel %vm3564_vm6, %v5754_v50, 0.0 }
 0x57b   : > { %5757 = vpow2.f32 %v3605_v3 }
 0x57c   : > { %5759 = vpow2.f32 %v3609_v54 }
 0x57d   : > { %v3582_v62 = vpop.xlane.xlu0 %3581  ;;  %v3588_v10 = vpop.xlane.xlu2 %3587 }
 0x57e   : > { %v7717_v42 = vpop.f32.mrf.mxu2  ;;  %v3594_v36 = vsub.f32 %v7653_v61, %v3582_v62  ;;  %v3596_v61 = vsub.f32 %v7675_v49, %v3588_v10  ;;  %v3953_v49 = vsel %vm3564_vm6, %v7703_v21, -inf }
 0x57f   : > { %v3959_v34 = vsel %vm3564_vm6, %v7717_v42, -inf }
 0x580   : > { %v5756_v58 = vpop.eup %5755  ;;  %v3607_v26 = vmul.f32 1.442695, %v3594_v36  ;;  %v3611_v5 = vmul.f32 1.442695, %v3596_v61 }
 0x581   : > { %v3619_v44 = vsel %vm3564_vm6, %v5756_v58, 0.0  ;;  %v7722_v19 = vpop.eup %5757 }
 0x582   : > { %3623 = vadd.xlane.f32.xlu1 %v3622_v7  ;;  %3620 = vadd.xlane.f32.xlu0 %v3619_v44  ;;  %v3625_v0 = vsel %vm3564_vm6, %v7722_v19, 0.0  ;;  %v7734_v56 = vpop.eup %5759 }
 0x583   : > { %v3631_v8 = vsel %vm3564_vm6, %v7734_v56, 0.0 }
 0x585   : > { %v3949_v45 = vpop.xlane.xlu2 %3948 }
 0x586   : > { %v7727_v20 = vpop.f32.mrf.mxu2 }
 0x589   : > { %4125 = vmatmul.bf16.vlgmr.msrb.gmra.mxu0 %v7573_v4  ;;  %v3962_v4 = vsel %vm3564_vm6, %v7727_v20, -inf }
 0x58a   : > { %3957 = vmax.xlane.f32.xlu0 %v3956_v46 }
 0x58e   : > { %v7732_v29 = vpop.f32.mrf.mxu2 }
 0x592   : > { %3626 = vadd.xlane.f32.xlu0 %v3625_v0 }
 0x596   : > { %v7738_v60 = vpop.f32.mrf.mxu2 }
 0x597   : > { %v3968_v22 = vsel %vm3564_vm6, %v7738_v60, -inf }
 0x599   : > { %4130 = vmatmul.bf16.gmra.mxu0 %v7591_v30 }
 0x59a   : > { %3963 = vmax.xlane.f32.xlu0 %v3962_v4 }
 0x5a2   : > { %3632 = vadd.xlane.f32.xlu0 %v3631_v8 }
 0x5a9   : > { %4135 = vmatmul.bf16.gmra.mxu0 %v7597_v32 }
 0x5aa   : > { %3969 = vmax.xlane.f32.xlu0 %v3968_v22 }
 0x5b9   : > { %4140 = vmatmul.bf16.gmra.mxu0 %v7601_v53 }
 0x5c6   : > { %v7744_v30 = vpop.f32.mrf.mxu0 }
 0x5ce   : > { %v7746_v11 = vpop.f32.mrf.mxu0 }
 0x5d6   : > { %v7748_v47 = vpop.f32.mrf.mxu0 }
 0x5de   : > { %v7750_v9 = vpop.f32.mrf.mxu0 }
 0x5e5   : > { %v3615_v55 = vpop.xlane.xlu0 %3614 }
 0x5e6   : > { %v7752_v37 = vpop.f32.mrf.mxu0  ;;  %5761 = vrcp.f32 %v3615_v55 }
 0x5ec   : > { %v5762_v53 = vpop.eup %5761 }
 0x5ed   : > { %v3618_v32 = vpop.xlane.xlu1 %3617  ;;  %v7754_v16 = vpop.xlane.xlu0 %3951  ;;  %v3645_v23 = vmul.f32 %v5762_v53, %v7698_v24 }
 0x5ee   : > { %5763 = vrcp.f32 %v3618_v32  ;;  %v7756_v6 = vpop.f32.mrf.mxu0  ;;  %v3972_v0 = vsub.f32 %v7695_v52, %v7754_v16  ;;  %v3965_v52 = vsel %vm3564_vm6, %v7732_v29, -inf }
 0x5f0   : > { %v3981_v22 = vmul.f32 1.442695, %v3972_v0 }
 0x5f4   : > { %v5764_v14 = vpop.eup %5763 }
 0x5f5   : > { %v3646_v59 = vmul.f32 %v5764_v14, %v5752_v13  ;;  %v3624_v33 = vpop.xlane.xlu1 %3623  ;;  %v3621_v39 = vpop.xlane.xlu0 %3620 }
 0x5f6   : > { %v7759_v28 = vpop.f32.mrf.mxu0  ;;  %5765 = vrcp.f32 %v3624_v33 }
 0x5f7   : > { %v3653_v12 = vpack.c.bf16 %v3646_v59, %v3645_v23  ;;  %5767 = vrcp.f32 %v3621_v39 }
 0x5f8   : > { %5769 = vpow2.f32 %v3607_v26 }
 0x5f9   : > { %5413 = vmatmul.msk.bf16.vlgmr.msra.gmra.mxu1 %vm3564_vm6, %v3653_v12  ;;  %5771 = vpow2.f32 %v3611_v5 }
 0x5fc   : > { %v5766_v40 = vpop.eup %5765 }
 0x5fd   : > { %v5768_v51 = vpop.eup %5767  ;;  %v3648_v43 = vmul.f32 %v5766_v40, %v5754_v50  ;;  %v3958_v23 = vpop.xlane.xlu0 %3957 }
 0x5fe   : > { %v7763_v27 = vpop.f32.mrf.mxu0  ;;  %v3647_v1 = vmul.f32 %v5768_v51, %v5756_v58  ;;  %v7767_v35 = vpop.eup %5769  ;;  %v3971_v58 = vsub.f32 %v7681_v15, %v3949_v45  ;;  %v3974_v39 = vsub.f32 %v7712_v38, %v3958_v23 }
 0x5ff   : > { %v3628_v31 = vsel %vm3564_vm6, %v7767_v35, 0.0  ;;  %v7782_v50 = vpop.eup %5771 }
 0x600   : > { %v3654_v17 = vpack.c.bf16 %v3648_v43, %v3647_v1  ;;  %v3634_v44 = vsel %vm3564_vm6, %v7782_v50, 0.0  ;;  %v3979_v3 = vmul.f32 1.442695, %v3971_v58  ;;  %v3985_v40 = vmul.f32 1.442695, %v3974_v39 }
 0x602   : > { %5773 = vpow2.f32 %v3979_v3 }
 0x603   : > { %5775 = vpow2.f32 %v3981_v22 }
 0x605   : > { %v3627_v59 = vpop.xlane.xlu0 %3626 }
 0x606   : > { %v4126_v24 = vpop.f32.mrf.mxu0 }
 0x607   : > { %v4146_v25 = vsel %vm3564_vm6, %v4126_v24, -inf }
 0x608   : > { %4147 = vmax.xlane.f32.xlu1 %v4146_v25  ;;  %v7797_v63 = vpop.eup %5773 }
 0x609   : > { %5414 = vmatmul.msk.bf16.gmra.mxu1 %vm3564_vm6, %v3654_v17  ;;  %v3995_v8 = vsel %vm3564_vm6, %v7797_v63, 0.0  ;;  %v7813_v32 = vpop.eup %5775 }
 0x60a   : > { %v3998_v53 = vsel %vm3564_vm6, %v7813_v32, 0.0 }
 0x60d   : > { %v3964_v1 = vpop.xlane.xlu0 %3963 }
 0x60e   : > { %v7770_v57 = vpop.f32.mrf.mxu0 }
 0x60f   : > { %v4149_v13 = vsel %vm3564_vm6, %v7770_v57, -inf }
 0x610   : > { %3629 = vadd.xlane.f32.xlu1 %v3628_v31  ;;  %4150 = vmax.xlane.f32.xlu2 %v4149_v13 }
 0x616   : > { %v7776_v18 = vpop.f32.mrf.mxu0 }
 0x617   : > { %v4152_v41 = vsel %vm3564_vm6, %v7776_v18, -inf }
 0x618   : > { %4153 = vmax.xlane.f32.xlu1 %v4152_v41  ;;  %3954 = vmax.xlane.f32.xlu2 %v3953_v49 }
 0x61e   : > { %v7785_v2 = vpop.f32.mrf.mxu0 }
 0x61f   : > { %v4155_v7 = vsel %vm3564_vm6, %v7785_v2, -inf }
 0x620   : > { %4156 = vmax.xlane.f32.xlu2 %v4155_v7  ;;  %3635 = vadd.xlane.f32.xlu1 %v3634_v44  ;;  %v3976_v7 = vsub.f32 %v7727_v20, %v3964_v1 }
 0x626   : > { %v7791_v46 = vpop.f32.mrf.mxu0 }
 0x627   : > { %v4158_v15 = vsel %vm3564_vm6, %v7791_v46, -inf }
 0x628   : > { %3960 = vmax.xlane.f32.xlu2 %v3959_v34  ;;  %4159 = vmax.xlane.f32.xlu1 %v4158_v15  ;;  %v3633_v34 = vpop.xlane.xlu0 %3632 }
 0x62e   : > { %v7801_v54 = vpop.f32.mrf.mxu0 }
 0x62f   : > { %v4161_v4 = vsel %vm3564_vm6, %v7801_v54, -inf }
 0x630   : > { %4162 = vmax.xlane.f32.xlu2 %v4161_v4  ;;  %3996 = vadd.xlane.f32.xlu1 %v3995_v8 }
 0x636   : > { %v7807_v62 = vpop.f32.mrf.mxu0 }
 0x637   : > { %v4164_v55 = vsel %vm3564_vm6, %v7807_v62, -inf }
 0x638   : > { %4165 = vmax.xlane.f32.xlu0 %v4164_v55  ;;  %3966 = vmax.xlane.f32.xlu2 %v3965_v52 }
 0x63e   : > { %v7815_v16 = vpop.f32.mrf.mxu0 }
 0x63f   : > { %v4167_v14 = vsel %vm3564_vm6, %v7815_v16, -inf }
 0x640   : > { %3999 = vadd.xlane.f32.xlu2 %v3998_v53  ;;  %4168 = vmax.xlane.f32.xlu1 %v4167_v14 }
 0x67b   : > { %v4148_v33 = vpop.xlane.xlu1 %4147 }
 0x67c   : > { %v4170_v12 = vsub.f32 %v4126_v24, %v4148_v33 }
 0x67e   : > { %v4178_v36 = vmul.f32 1.442695, %v4170_v12  ;;  %v3970_v12 = vpop.xlane.xlu0 %3969 }
 0x67f   : > { %v3978_v1 = vsub.f32 %v7738_v60, %v3970_v12 }
 0x680   : > { %5777 = vpow2.f32 %v4178_v36 }
 0x681   : > { %5779 = vrcp.f32 %v3627_v59 }
 0x683   : > { %v3630_v51 = vpop.xlane.xlu1 %3629  ;;  %v4151_v26 = vpop.xlane.xlu2 %4150 }
 0x684   : > { %5781 = vrcp.f32 %v3630_v51  ;;  %v4171_v43 = vsub.f32 %v7770_v57, %v4151_v26 }
 0x685   : > { %5783 = vpow2.f32 %v3985_v40 }
 0x686   : > { %v7823_v25 = vpop.eup %5777  ;;  %v4180_v17 = vmul.f32 1.442695, %v4171_v43 }
 0x687   : > { %v4194_v10 = vsel %vm3564_vm6, %v7823_v25, 0.0  ;;  %v5780_v24 = vpop.eup %5779 }
 0x688   : > { %5785 = vpow2.f32 %v4180_v17  ;;  %4195 = vadd.xlane.f32.xlu2 %v4194_v10  ;;  %v3649_v61 = vmul.f32 %v5780_v24, %v7722_v19 }
 0x68a   : > { %v5782_v38 = vpop.eup %5781 }
 0x68b   : > { %v3650_v31 = vmul.f32 %v5782_v38, %v7767_v35  ;;  %v4154_v13 = vpop.xlane.xlu1 %4153  ;;  %v3955_v5 = vpop.xlane.xlu2 %3954 }
 0x68c   : > { %v7829_v41 = vpop.eup %5783  ;;  %v4172_v57 = vsub.f32 %v7776_v18, %v4154_v13  ;;  %v3973_v49 = vsub.f32 %v7703_v21, %v3955_v5  ;;  %v3989_v21 = vmul.f32 1.442695, %v3976_v7 }
 0x68d   : > { %v3655_v45 = vpack.c.bf16 %v3650_v31, %v3649_v61  ;;  %v4004_v19 = vsel %vm3564_vm6, %v7829_v41, 0.0 }
 0x68e   : > { %v7833_v58 = vpop.eup %5785  ;;  %v4182_v44 = vmul.f32 1.442695, %v4172_v57  ;;  %v3983_v3 = vmul.f32 1.442695, %v3973_v49 }
 0x68f   : > { %5415 = vmatmul.msk.bf16.gmra.mxu1 %vm3564_vm6, %v3655_v45  ;;  %v4197_v35 = vsel %vm3564_vm6, %v7833_v58, 0.0 }
 0x690   : > { %5787 = vpow2.f32 %v4182_v44  ;;  %4005 = vadd.xlane.f32.xlu2 %v4004_v19  ;;  %4198 = vadd.xlane.f32.xlu0 %v4197_v35 }
 0x691   : > { %5789 = vpow2.f32 %v3983_v3 }
 0x692   : > { %5791 = vrcp.f32 %v3633_v34 }
 0x693   : > { %v3636_v18 = vpop.xlane.xlu1 %3635  ;;  %v4157_v15 = vpop.xlane.xlu2 %4156 }
 0x694   : > { %5793 = vrcp.f32 %v3636_v18  ;;  %v4173_v20 = vsub.f32 %v7785_v2, %v4157_v15 }
 0x695   : > { %5795 = vpow2.f32 %v3989_v21 }
 0x696   : > { %v7842_v0 = vpop.eup %5787  ;;  %v4184_v4 = vmul.f32 1.442695, %v4173_v20 }
 0x697   : > { %v7844_v8 = vpop.eup %5789  ;;  %v4200_v22 = vsel %vm3564_vm6, %v7842_v0, 0.0 }
 0x698   : > { %v5792_v55 = vpop.eup %5791  ;;  %5797 = vpow2.f32 %v4184_v4  ;;  %4201 = vadd.xlane.f32.xlu0 %v4200_v22  ;;  %v4001_v52 = vsel %vm3564_vm6, %v7844_v8, 0.0 }
 0x699   : > { %4002 = vadd.xlane.f32.xlu1 %v4001_v52  ;;  %v3651_v14 = vmul.f32 %v5792_v55, %v7734_v56 }
 0x69a   : > { %v5794_v53 = vpop.eup %5793 }
 0x69b   : > { %v3652_v2 = vmul.f32 %v5794_v53, %v7782_v50  ;;  %v4160_v23 = vpop.xlane.xlu1 %4159  ;;  %v3961_v59 = vpop.xlane.xlu2 %3960 }
 0x69c   : > { %v7852_v33 = vpop.eup %5795  ;;  %v4174_v39 = vsub.f32 %v7791_v46, %v4160_v23  ;;  %v3975_v36 = vsub.f32 %v7717_v42, %v3961_v59  ;;  %v3993_v42 = vmul.f32 1.442695, %v3978_v1 }
 0x69d   : > { %v3656_v40 = vpack.c.bf16 %v3652_v2, %v3651_v14  ;;  %v4010_v56 = vsel %vm3564_vm6, %v7852_v33, 0.0 }
 0x69e   : > { %v7856_v51 = vpop.eup %5797  ;;  %v4186_v26 = vmul.f32 1.442695, %v4174_v39  ;;  %v3987_v43 = vmul.f32 1.442695, %v3975_v36 }
 0x69f   : > { %5416 = vmatmul.msk.bf16.gmra.mxu1 %vm3564_vm6, %v3656_v40  ;;  %v4203_v50 = vsel %vm3564_vm6, %v7856_v51, 0.0 }
 0x6a0   : > { %5799 = vpow2.f32 %v4186_v26  ;;  %4011 = vadd.xlane.f32.xlu0 %v4010_v56 }
 0x6a1   : > { %5801 = vpow2.f32 %v3987_v43  ;;  %4204 = vadd.xlane.f32.xlu1 %v4203_v50 }
 0x6a2   : > { %5803 = vpow2.f32 %v3993_v42 }
 0x6a3   : > { %v4163_v46 = vpop.xlane.xlu2 %4162  ;;  %v3997_v31 = vpop.xlane.xlu1 %3996 }
 0x6a4   : > { %v4175_v17 = vsub.f32 %v7801_v54, %v4163_v46 }
 0x6a6   : > { %v7865_v10 = vpop.eup %5799  ;;  %v4188_v24 = vmul.f32 1.442695, %v4175_v17 }
 0x6a7   : > { %v7867_v60 = vpop.eup %5801  ;;  %v4206_v38 = vsel %vm3564_vm6, %v7865_v10, 0.0 }
 0x6a8   : > { %5805 = vpow2.f32 %v4188_v24  ;;  %v4007_v61 = vsel %vm3564_vm6, %v7867_v60, 0.0  ;;  %v7875_v49 = vpop.eup %5803 }
 0x6a9   : > { %4207 = vadd.xlane.f32.xlu1 %v4206_v38  ;;  %4008 = vadd.xlane.f32.xlu2 %v4007_v61  ;;  %v4016_v34 = vsel %vm3564_vm6, %v7875_v49, 0.0 }
 0x6ab   : > { %v4166_v13 = vpop.xlane.xlu0 %4165  ;;  %v3967_v5 = vpop.xlane.xlu2 %3966 }
 0x6ac   : > { %v4176_v54 = vsub.f32 %v7807_v62, %v4166_v13  ;;  %v3977_v57 = vsub.f32 %v7732_v29, %v3967_v5 }
 0x6ae   : > { %v7877_v45 = vpop.eup %5805  ;;  %v4190_v7 = vmul.f32 1.442695, %v4176_v54  ;;  %v3991_v44 = vmul.f32 1.442695, %v3977_v57 }
 0x6af   : > { %v4209_v3 = vsel %vm3564_vm6, %v7877_v45, 0.0 }
 0x6b0   : > { %5807 = vpow2.f32 %v4190_v7 }
 0x6b1   : > { %5809 = vpow2.f32 %v3991_v44  ;;  %4017 = vadd.xlane.f32.xlu1 %v4016_v34  ;;  %4210 = vadd.xlane.f32.xlu2 %v4209_v3  ;;  %v5687_v44 = vld [vmem:[%s8134_s7 + $0x38] sm:$0xff] }
 0x6b2   : > { %5811 = vrcp.f32 %v3997_v31  ;;  %4359 = vmatpush.bf16.msrb.mxu2 %v5687_v44 }
 0x6b3   : > { %v4169_v62 = vpop.xlane.xlu1 %4168  ;;  %v4000_v19 = vpop.xlane.xlu2 %3999 }
 0x6b4   : > { %v4177_v29 = vsub.f32 %v7815_v16, %v4169_v62  ;;  %5813 = vrcp.f32 %v4000_v19 }
 0x6b6   : > { %v7884_v35 = vpop.eup %5807  ;;  %v4192_v21 = vmul.f32 1.442695, %v4177_v29 }
 0x6b7   : > { %v7886_v18 = vpop.eup %5809  ;;  %v4212_v15 = vsel %vm3564_vm6, %v7884_v35, 0.0 }
 0x6b8   : > { %v5812_v20 = vpop.eup %5811  ;;  %5815 = vpow2.f32 %v4192_v21  ;;  %v4013_v4 = vsel %vm3564_vm6, %v7886_v18, 0.0 }
 0x6b9   : > { %4213 = vadd.xlane.f32.xlu2 %v4212_v15  ;;  %4014 = vadd.xlane.f32.xlu0 %v4013_v4  ;;  %v4027_v55 = vmul.f32 %v5812_v20, %v7797_v63  ;;  %v5685_v15 = vld [vmem:[%s8134_s7 + $0x28] sm:$0xff] }
 0x6ba   : > { %v5814_v22 = vpop.eup %5813 }
 0x6bb   : > { %v4028_v16 = vmul.f32 %v5814_v22, %v7813_v32  ;;  %v5684_v22 = vld [vmem:[%s8134_s7 + $0x20] sm:$0xff] }
 0x6bd   : > { %v4035_v52 = vpack.c.bf16 %v4028_v16, %v4027_v55 }
 0x6be   : > { %v7894_v53 = vpop.eup %5815 }
 0x6bf   : > { %5441 = vmatmul.msk.bf16.vlgmr.msra.gmra.mxu3 %vm3564_vm6, %v4035_v52  ;;  %v4215_v14 = vsel %vm3564_vm6, %v7894_v53, 0.0  ;;  %v5683_v52 = vld [vmem:[%s8134_s7 + $0x18] sm:$0xff] }
 0x6c1   : > { %4216 = vadd.xlane.f32.xlu0 %v4215_v14 }
 0x6fb   : > { %v4196_v2 = vpop.xlane.xlu2 %4195 }
 0x6fc   : > { %5817 = vrcp.f32 %v4196_v2 }
 0x702   : > { %v5818_v59 = vpop.eup %5817 }
 0x703   : > { %v4199_v23 = vpop.xlane.xlu0 %4198  ;;  %v4006_v12 = vpop.xlane.xlu2 %4005  ;;  %v4226_v63 = vmul.f32 %v5818_v59, %v7823_v25 }
 0x704   : > { %5819 = vrcp.f32 %v4199_v23  ;;  %v3869_v23 = vpop.f32.mrf.mxu1 }
 0x705   : > { %5821 = vrcp.f32 %v4006_v12 }
 0x70a   : > { %v5820_v39 = vpop.eup %5819 }
 0x70b   : > { %v4227_v32 = vmul.f32 %v5820_v39, %v7833_v58  ;;  %v4202_v26 = vpop.xlane.xlu0 %4201  ;;  %v5822_v43 = vpop.eup %5821 }
 0x70c   : > { %v4003_v36 = vpop.xlane.xlu1 %4002  ;;  %v4030_v56 = vmul.f32 %v5822_v43, %v7829_v41  ;;  %v3871_v59 = vpop.f32.mrf.mxu1 }
 0x70d   : > { %v4234_v40 = vpack.c.bf16 %v4227_v32, %v4226_v63  ;;  %5823 = vrcp.f32 %v4003_v36  ;;  %v5682_v32 = vld [vmem:[%s8134_s7 + $0x10] sm:$0xff] }
 0x70e   : > { %5825 = vrcp.f32 %v4202_v26 }
 0x70f   : > { %5469 = vmatmul.msk.bf16.vlgmr.msrb.gmra.mxu1 %vm3564_vm6, %v4234_v40 }
 0x713   : > { %v5824_v1 = vpop.eup %5823  ;;  %v4012_v58 = vpop.xlane.xlu0 %4011 }
 0x714   : > { %v4029_v50 = vmul.f32 %v5824_v1, %v7844_v8  ;;  %v4205_v42 = vpop.xlane.xlu1 %4204  ;;  %v5826_v25 = vpop.eup %5825 }
 0x715   : > { %5827 = vrcp.f32 %v4205_v42  ;;  %v4228_v24 = vmul.f32 %v5826_v25, %v7842_v0  ;;  %v3874_v12 = vpop.f32.mrf.mxu1  ;;  %v3872_v42 = vadd.f32 %v3871_v59, %v7746_v11  ;;  %v4390_v59 = vld [vmem:[%s8136_s9 + $0x10] sm:$0xff] }
 0x716   : > { %v4036_v46 = vpack.c.bf16 %v4030_v56, %v4029_v50  ;;  %5829 = vrcp.f32 %v4012_v58  ;;  %v3870_v50 = vadd.f32 %v3869_v23, %v7744_v30 }
 0x718   : > { %5442 = vmatmul.msk.bf16.gmra.mxu3 %vm3564_vm6, %v4036_v46 }
 0x71b   : > { %v5828_v17 = vpop.eup %5827 }
 0x71c   : > { %v4229_v38 = vmul.f32 %v5828_v17, %v7856_v51  ;;  %v4009_v61 = vpop.xlane.xlu2 %4008  ;;  %v4208_v31 = vpop.xlane.xlu1 %4207 }
 0x71d   : > { %5831 = vrcp.f32 %v4009_v61  ;;  %v5830_v41 = vpop.eup %5829  ;;  %v3876_v39 = vpop.f32.mrf.mxu1 }
 0x71e   : > { %v4235_v13 = vpack.c.bf16 %v4229_v38, %v4228_v24  ;;  %5833 = vrcp.f32 %v4208_v31  ;;  %v4032_v54 = vmul.f32 %v5830_v41, %v7852_v33  ;;  %v5686_v33 = vld [vmem:[%s8134_s7 + $0x30] sm:$0xff]  ;;  %v3877_v41 = vadd.f32 %v3876_v39, %v7750_v9 }
 0x71f   : > { %4360 = vmatpush.bf16.msrb.mxu2 %v5686_v33 }
 0x720   : > { %5470 = vmatmul.msk.bf16.gmra.mxu1 %vm3564_vm6, %v4235_v13  ;;  %v3875_v13 = vadd.f32 %v3874_v12, %v7748_v47  ;;  %v4401_v47 = vld [vmem:[%s8136_s9 + $0x68] sm:$0xff] }
 0x723   : > { %v5832_v8 = vpop.eup %5831  ;;  %4361 = vmatpush.bf16.msrb.mxu2 %v5685_v15  ;;  %v4397_v15 = vld [vmem:[%s8136_s9 + $0x48] sm:$0xff] }
 0x724   : > { %v4211_v5 = vpop.xlane.xlu2 %4210  ;;  %v4031_v57 = vmul.f32 %v5832_v8, %v7867_v60  ;;  %v4018_v0 = vpop.xlane.xlu1 %4017 }
 0x725   : > { %5835 = vrcp.f32 %v4211_v5  ;;  %v5834_v51 = vpop.eup %5833  ;;  %v3879_v63 = vpop.f32.mrf.mxu1 }
 0x726   : > { %v4037_v7 = vpack.c.bf16 %v4032_v54, %v4031_v57  ;;  %5837 = vrcp.f32 %v4018_v0  ;;  %v4230_v62 = vmul.f32 %v5834_v51, %v7865_v10  ;;  %v4403_v0 = vld [vmem:[%s8136_s9 + $0x78] sm:$0xff]  ;;  %v4402_v51 = vld [vmem:[%s8136_s9 + $0x70] sm:$0xff] }
 0x727   : > { %4362 = vmatpush.bf16.msrb.mxu2 %v5684_v22  ;;  %4408 = vmatpush.msrb.mxu3 %v4403_v0  ;;  %v4394_v22 = vld [vmem:[%s8136_s9 + $0x30] sm:$0xff]  ;;  %v4481_v0 = vld [vmem:[%s8138_s11 + $0x18] sm:$0xff] }
 0x728   : > { %5443 = vmatmul.msk.bf16.gmra.mxu3 %vm3564_vm6, %v4037_v7 }
 0x729   : > { %4409 = vmatpush.msrb.mxu3 %v4402_v51  ;;  %v5894_v51 = vmov 64.0  }
 0x72b   : > { %v5836_v3 = vpop.eup %5835  ;;  %4363 = vmatpush.bf16.msrb.mxu2 %v5683_v52  ;;  %4410 = vmatpush.msrb.mxu3 %v4401_v47 }
 0x72c   : > { %v4015_v34 = vpop.xlane.xlu0 %4014  ;;  %v4231_v19 = vmul.f32 %v5836_v3, %v7877_v45  ;;  %v4214_v29 = vpop.xlane.xlu2 %4213  ;;  %v4400_v3 = vld [vmem:[%s8136_s9 + $0x60] sm:$0xff] }
 0x72d   : > { %5839 = vrcp.f32 %v4015_v34  ;;  %v5838_v21 = vpop.eup %5837  ;;  %v3881_v36 = vpop.f32.mrf.mxu1  ;;  %v3880_v34 = vadd.f32 %v3879_v63, %v7752_v37  ;;  %4411 = vmatpush.msrb.mxu3 %v4400_v3 }
 0x72e   : > { %v4236_v60 = vpack.c.bf16 %v4231_v19, %v4230_v62  ;;  %5841 = vrcp.f32 %v4214_v29  ;;  %v4034_v10 = vmul.f32 %v5838_v21, %v7875_v49  ;;  %v4399_v62 = vld [vmem:[%s8136_s9 + $0x58] sm:$0xff]  ;;  %v3882_v19 = vadd.f32 %v3881_v36, %v7756_v6  ;;  %v4396_v6 = vld [vmem:[%s8136_s9 + $0x40] sm:$0xff]  ;;  %v4389_v36 = vld [vmem:[%s8136_s9 + $0x8] sm:$0xff] }
 0x72f   : > { %4364 = vmatpush.bf16.msrb.mxu2 %v5682_v32  ;;  %4412 = vmatpush.msrb.mxu3 %v4399_v62 }
 0x730   : > { %5471 = vmatmul.msk.bf16.gmra.mxu1 %vm3564_vm6, %v4236_v60  ;;  %v4398_v60 = vld [vmem:[%s8136_s9 + $0x50] sm:$0xff] }
 0x731   : > { %4413 = vmatpush.msrb.mxu3 %v4398_v60 }
 0x733   : > { %v5840_v20 = vpop.eup %5839  ;;  %4414 = vmatpush.msrb.mxu3 %v4397_v15 }
 0x734   : > { %v4033_v45 = vmul.f32 %v5840_v20, %v7886_v18  ;;  %v4217_v4 = vpop.xlane.xlu0 %4216  ;;  %v5842_v16 = vpop.eup %5841 }
 0x735   : > { %5843 = vrcp.f32 %v4217_v4  ;;  %v4232_v49 = vmul.f32 %v5842_v16, %v7884_v35  ;;  %v5681_v35 = vld [vmem:[%s8134_s7 + $0x8] sm:$0xff]  ;;  %v7944_v40 = vpop.f32.mrf.mxu1  ;;  %v4395_v4 = vld [vmem:[%s8136_s9 + $0x38] sm:$0xff]  ;;  %4415 = vmatpush.msrb.mxu3 %v4396_v6 }
 0x736   : > { %v4038_v55 = vpack.c.bf16 %v4034_v10, %v4033_v45  ;;  %4365 = vmatpush.bf16.msrb.mxu2 %v5681_v35  ;;  %v4393_v16 = vld [vmem:[%s8136_s9 + $0x28] sm:$0xff]  ;;  %5845 = vrcp.f32 %v5894_v51 }
 0x737   : > { %4416 = vmatpush.msrb.mxu3 %v4395_v4 }
 0x738   : > { %5444 = vmatmul.msk.bf16.gmra.mxu3 %vm3564_vm6, %v4038_v55 }
 0x739   : > { %4417 = vmatpush.msrb.mxu3 %v4394_v22 }
 0x73b   : > { %v5844_v14 = vpop.eup %5843  ;;  %4418 = vmatpush.msrb.mxu3 %v4393_v16 }
 0x73c   : > { %v4233_v18 = vmul.f32 %v5844_v14, %v7894_v53  ;;  %v5680_v53 = vld [vmem:[%s8134_s7] sm:$0xff] }
 0x73d   : > { %4366 = vmatpush.bf16.msrb.mxu2 %v5680_v53  ;;  %v7946_v26 = vpop.f32.mrf.mxu1  ;;  %v4392_v14 = vld [vmem:[%s8136_s9 + $0x20] sm:$0xff] }
 0x73e   : > { %v4237_v2 = vpack.c.bf16 %v4233_v18, %v4232_v49  ;;  %v3885_v49 = vadd.f32 %v7944_v40, %v7759_v28  ;;  %v4391_v18 = vld [vmem:[%s8136_s9 + $0x18] sm:$0xff]  ;;  %4419 = vmatpush.msrb.mxu3 %v4392_v14  ;;  %v8009_v53 = vld [vmem:[%s8135_s8] ss:$0 sm:$0xff] }
 0x740   : > { %5472 = vmatmul.msk.bf16.gmra.mxu1 %vm3564_vm6, %v4237_v2  ;;  %v3887_v2 = vadd.f32 %v7946_v26, %v7763_v27  ;;  %4420 = vmatpush.msrb.mxu3 %v4391_v18  ;;  %v4388_v27 = vld [vmem:[%s8136_s9] sm:$0xff] }
 0x742   : > { %v4060_v43 = vpop.f32.mrf.mxu3  ;;  %4421 = vmatpush.msrb.mxu3 %v4390_v59  ;;  %v5716_v59 = vld [vmem:[%s8137_s10] ss:$0 sm:$0xff] }
 0x743   : > { %v4080_v46 = vadd.f32 %v4060_v43, %v3870_v50  ;;  %v4492_v50 = vld [vmem:[%s8138_s11 + $0x70] sm:$0xff] }
 0x744   : > { %4422 = vmatpush.msrb.mxu3 %v4389_v36 }
 0x746   : > { %4423 = vmatpush.msrb.mxu3 %v4388_v27 }
 0x74a   : > { %v4062_v56 = vpop.f32.mrf.mxu3 }
 0x74b   : > { %v4081_v25 = vadd.f32 %v4062_v56, %v3872_v42  ;;  %v4493_v56 = vld [vmem:[%s8138_s11 + $0x78] sm:$0xff] }
 0x74c   : > { %4495 = vmatpush.msra.mxu0 %v4493_v56 }
 0x74e   : > { %4496 = vmatpush.msra.mxu0 %v4492_v50  ;;  %v4524_v50 = vld [vmem:[%s8140_s13 + $0x20] sm:$0xff] }
 0x78c   : > { %v4259_v1 = vpop.f32.mrf.mxu1 }
 0x78d   : > { %v4279_v17 = vadd.f32 %v4259_v1, %v4080_v46 }
 0x794   : > { %v4261_v58 = vpop.f32.mrf.mxu1 }
 0x795   : > { %v4280_v24 = vadd.f32 %v4261_v58, %v4081_v25  ;;  %v4491_v25 = vld [vmem:[%s8138_s11 + $0x68] sm:$0xff]  ;;  %v4490_v58 = vld [vmem:[%s8138_s11 + $0x60] sm:$0xff] }
 0x796   : > { %4497 = vmatpush.msra.mxu0 %v4491_v25 }
 0x797   : > { %v4287_v38 = vpack.c.bf16 %v4280_v24, %v4279_v17  ;;  %v4489_v17 = vld [vmem:[%s8138_s11 + $0x58] sm:$0xff] }
 0x798   : > { %4498 = vmatpush.msra.mxu0 %v4490_v58 }
 0x799   : > { %4367 = vmatmul.bf16.vlgmr.msrb.gmra.mxu2 %v4287_v38  ;;  %v4488_v38 = vld [vmem:[%s8138_s11 + $0x50] sm:$0xff] }
 0x79a   : > { %4499 = vmatpush.msra.mxu0 %v4489_v17  ;;  %v4521_v17 = vld [vmem:[%s8140_s13 + $0x8] sm:$0xff] }
 0x79b   : > { %v4065_v61 = vpop.f32.mrf.mxu3 }
 0x79c   : > { %v4082_v8 = vadd.f32 %v4065_v61, %v3875_v13  ;;  %4500 = vmatpush.msra.mxu0 %v4488_v38 }
 0x79d   : > { %v4264_v31 = vpop.f32.mrf.mxu1 }
 0x79e   : > { %v4281_v30 = vadd.f32 %v4264_v31, %v4082_v8  ;;  %v4486_v8 = vld [vmem:[%s8138_s11 + $0x40] sm:$0xff] }
 0x7a3   : > { %v4067_v5 = vpop.f32.mrf.mxu3 }
 0x7a4   : > { %v4083_v54 = vadd.f32 %v4067_v5, %v3877_v41  ;;  %v4487_v41 = vld [vmem:[%s8138_s11 + $0x48] sm:$0xff]  ;;  %v4485_v5 = vld [vmem:[%s8138_s11 + $0x38] sm:$0xff] }
 0x7a5   : > { %v4266_v57 = vpop.f32.mrf.mxu1  ;;  %4501 = vmatpush.msra.mxu0 %v4487_v41  ;;  %v4494_v41 = vld [vmem:[%s8139_s12] sm:$0x1] }
 0x7a6   : > { %v4282_v7 = vadd.f32 %v4266_v57, %v4083_v54  ;;  %v4484_v54 = vld [vmem:[%s8138_s11 + $0x30] sm:$0xff] }
 0x7a7   : > { %4502 = vmatpush.msra.mxu0 %v4486_v8 }
 0x7a8   : > { %v4288_v11 = vpack.c.bf16 %v4282_v7, %v4281_v30  ;;  %v4483_v7 = vld [vmem:[%s8138_s11 + $0x28] sm:$0xff] }
 0x7a9   : > { %4503 = vmatpush.msra.mxu0 %v4485_v5 }
 0x7aa   : > { %4372 = vmatmul.bf16.gmra.mxu2 %v4288_v11  ;;  %v4482_v11 = vld [vmem:[%s8138_s11 + $0x20] sm:$0xff] }
 0x7ab   : > { %v4070_v44 = vpop.f32.mrf.mxu3  ;;  %4504 = vmatpush.msra.mxu0 %v4484_v54 }
 0x7ac   : > { %v4084_v33 = vadd.f32 %v4070_v44, %v3880_v34  ;;  %v4480_v44 = vld [vmem:[%s8138_s11 + $0x10] sm:$0xff] }
 0x7ad   : > { %v4269_v9 = vpop.f32.mrf.mxu1  ;;  %4505 = vmatpush.msra.mxu0 %v4483_v7  ;;  %v4529_v7 = vld [vmem:[%s8141_s14] sm:$0x1] }
 0x7ae   : > { %v4283_v20 = vadd.f32 %v4269_v9, %v4084_v33  ;;  %v4479_v9 = vld [vmem:[%s8138_s11 + $0x8] sm:$0xff]  ;;  %v5846_v33 = vpop.eup %5845 }
 0x7af   : > { %4506 = vmatpush.msra.mxu0 %v4482_v11  ;;  %vm4475_vm8 = vweird.f32 %v5846_v33 }
 0x7b1   : > { %4507 = vmatpush.msra.mxu0 %v4481_v0 }
 0x7b3   : > { %v4072_v29 = vpop.f32.mrf.mxu3  ;;  %4508 = vmatpush.msra.mxu0 %v4480_v44 }
 0x7b4   : > { %v4085_v21 = vadd.f32 %v4072_v29, %v3882_v19  ;;  %v4478_v19 = vld [vmem:[%s8138_s11] sm:$0xff] }
 0x7b5   : > { %v4271_v37 = vpop.f32.mrf.mxu1  ;;  %4509 = vmatpush.msra.mxu0 %v4479_v9 }
 0x7b6   : > { %v4284_v10 = vadd.f32 %v4271_v37, %v4085_v21  ;;  %v4471_v21 = vmul.f32 64.0, %v5846_v33 }
 0x7b7   : > { %4510 = vmatpush.msra.mxu0 %v4478_v19 }
 0x7b8   : > { %v4289_v45 = vpack.c.bf16 %v4284_v10, %v4283_v20  ;;  %v4472_v6 = vsub.f32 1.0, %v4471_v21 }
 0x7ba   : > { %4377 = vmatmul.bf16.gmra.mxu2 %v4289_v45  ;;  %v4473_v22 = vmul.f32 %v5846_v33, %v4472_v6 }
 0x7bb   : > { %v4075_v55 = vpop.f32.mrf.mxu3 }
 0x7bc   : > { %v4086_v23 = vadd.f32 %v4075_v55, %v3885_v49 }
 0x7bd   : > { %v4274_v52 = vpop.f32.mrf.mxu1 }
 0x7be   : > { %v4285_v32 = vadd.f32 %v4274_v52, %v4086_v23  ;;  %v4474_v52 = vadd.f32 %v5846_v33, %v4473_v22 }
 0x7c0   : > { %v4476_v18 = vsel %vm4475_vm8, %v5846_v33, %v4474_v52 }
 0x7c3   : > { %v4077_v12 = vpop.f32.mrf.mxu3 }
 0x7c4   : > { %v4087_v39 = vadd.f32 %v4077_v12, %v3887_v2 }
 0x7c5   : > { %v4276_v63 = vpop.f32.mrf.mxu1 }
 0x7c6   : > { %v4286_v28 = vadd.f32 %v4276_v63, %v4087_v39 }
 0x7c8   : > { %v4290_v35 = vpack.c.bf16 %v4286_v28, %v4285_v32 }
 0x7ca   : > { %4382 = vmatmul.bf16.gmra.mxu2 %v4290_v35 }
 0x81c   : > { %v4368_v40 = vpop.f32.mrf.mxu2 }
 0x81d   : > { %v4369_v26 = vadd.f32 %v8009_v53, %v4368_v40  ;;  %v4527_v40 = vld [vmem:[%s8140_s13 + $0x38] sm:$0xff] }
 0x81f   : > { %4424 = vmatmul.f32.vlgmr.msrb.gmra.mxu3 %v4369_v26 }
 0x824   : > { %v4370_v43 = vpop.f32.mrf.mxu2 }
 0x825   : > { %v4371_v1 = vadd.f32 %v8009_v53, %v4370_v43  ;;  %v4525_v43 = vld [vmem:[%s8140_s13 + $0x28] sm:$0xff] }
 0x827   : > { %4427 = vmatmul.f32.gmra.mxu3 %v4371_v1  ;;  %v4457_v47 = vadd.f32 %v4371_v1, %v4369_v26  ;;  %v4526_v26 = vld [vmem:[%s8140_s13 + $0x30] sm:$0xff] }
 0x82d   : > { %v4373_v42 = vpop.f32.mrf.mxu2 }
 0x82e   : > { %v4374_v46 = vadd.f32 %v8009_v53, %v4373_v42  ;;  %v4523_v42 = vld [vmem:[%s8140_s13 + $0x18] sm:$0xff] }
 0x830   : > { %4430 = vmatmul.f32.gmra.mxu3 %v4374_v46  ;;  %v4458_v34 = vadd.f32 %v4457_v47, %v4374_v46  ;;  %v4522_v46 = vld [vmem:[%s8140_s13 + $0x10] sm:$0xff] }
 0x835   : > { %v4375_v24 = vpop.f32.mrf.mxu2 }
 0x836   : > { %v4376_v61 = vadd.f32 %v8009_v53, %v4375_v24  ;;  %v4520_v24 = vld [vmem:[%s8140_s13] sm:$0xff] }
 0x838   : > { %4433 = vmatmul.f32.gmra.mxu3 %v4376_v61  ;;  %v4459_v60 = vadd.f32 %v4458_v34, %v4376_v61 }
 0x83d   : > { %v4378_v31 = vpop.f32.mrf.mxu2 }
 0x83e   : > { %v4379_v13 = vadd.f32 %v8009_v53, %v4378_v31 }
 0x840   : > { %4436 = vmatmul.f32.gmra.mxu3 %v4379_v13  ;;  %v4460_v29 = vadd.f32 %v4459_v60, %v4379_v13 }
 0x845   : > { %v4380_v57 = vpop.f32.mrf.mxu2 }
 0x846   : > { %v4381_v30 = vadd.f32 %v8009_v53, %v4380_v57 }
 0x848   : > { %4439 = vmatmul.f32.gmra.mxu3 %v4381_v30  ;;  %v4461_v15 = vadd.f32 %v4460_v29, %v4381_v30 }
 0x84d   : > { %v4383_v3 = vpop.f32.mrf.mxu2 }
 0x84e   : > { %v4384_v62 = vadd.f32 %v8009_v53, %v4383_v3 }
 0x850   : > { %4442 = vmatmul.f32.gmra.mxu3 %v4384_v62  ;;  %v4462_v20 = vadd.f32 %v4461_v15, %v4384_v62 }
 0x855   : > { %v4385_v37 = vpop.f32.mrf.mxu2 }
 0x856   : > { %v4386_v10 = vadd.f32 %v8009_v53, %v4385_v37  ;;  %v4528_v53 = vld [vmem:[%s8140_s13 + $0x40] sm:$0x1] }
 0x857   : > { %5505 = vmatpush.msk.msrb.mxu0 %vm8440_vm0, %v4528_v53 }
 0x858   : > { %v4463_v45 = vadd.f32 %v4462_v20, %v4386_v10  ;;  %4445 = vmatmul.f32.gmra.mxu3 %v4386_v10 }
 0x859   : > { %4546 = vmatpush.msrb.mxu0 %v4527_v40 }
 0x85a   : > { %v4464_v4 = vrot.slane %v4463_v45, 4 }
 0x85b   : > { %4547 = vmatpush.msrb.mxu0 %v4526_v26 }
 0x85c   : > { %v4465_v55 = vadd.f32 %v4464_v4, %v4463_v45 }
 0x85d   : > { %4548 = vmatpush.msrb.mxu0 %v4525_v43 }
 0x85e   : > { %v4466_v16 = vrot.slane %v4465_v55, 2 }
 0x85f   : > { %4549 = vmatpush.msrb.mxu0 %v4524_v50 }
 0x860   : > { %v4467_v14 = vadd.f32 %v4466_v16, %v4465_v55 }
 0x861   : > { %4550 = vmatpush.msrb.mxu0 %v4523_v42 }
 0x862   : > { %v4468_v49 = vrot.slane %v4467_v14, 1 }
 0x863   : > { %4551 = vmatpush.msrb.mxu0 %v4522_v46 }
 0x864   : > { %v4469_v2 = vadd.f32 %v4468_v49, %v4467_v14 }
 0x865   : > { %4552 = vmatpush.msrb.mxu0 %v4521_v17 }
 0x866   : > { %v4477_v23 = vmul.f32 %v4476_v18, %v4469_v2 }
 0x867   : > { %4553 = vmatpush.msrb.mxu0 %v4520_v24 }
 0x868   : > { %4511 = vmatmul.f32.vlgmr.msra.gmra.mxu0 %v4477_v23 }
 0x8a2   : > { %v4425_v12 = vpop.f32.mrf.mxu3 }
 0x8a3   : > { %v4426_v39 = vadd.f32 %v5716_v59, %v4425_v12 }
 0x8a5   : > { %4449 = vst [vmem:[%s8075_s23] sm:$0xff] %v4426_v39 }
 0x8aa   : > { %v4428_v63 = vpop.f32.mrf.mxu3 }
 0x8ab   : > { %v4429_v32 = vadd.f32 %v5716_v59, %v4428_v63 }
 0x8ad   : > { %4450 = vst [vmem:[%s8075_s23 + $0x8] sm:$0xff] %v4429_v32 }
 0x8b3   : > { %v4431_v28 = vpop.f32.mrf.mxu3 }
 0x8b4   : > { %v4432_v35 = vadd.f32 %v5716_v59, %v4431_v28 }
 0x8b6   : > { %4451 = vst [vmem:[%s8075_s23 + $0x10] sm:$0xff] %v4432_v35 }
 0x8bb   : > { %v4434_v36 = vpop.f32.mrf.mxu3 }
 0x8bc   : > { %v4435_v27 = vadd.f32 %v5716_v59, %v4434_v36 }
 0x8be   : > { %4452 = vst [vmem:[%s8075_s23 + $0x18] sm:$0xff] %v4435_v27 }
 0x8c3   : > { %v4437_v1 = vpop.f32.mrf.mxu3 }
 0x8c4   : > { %v4438_v56 = vadd.f32 %v5716_v59, %v4437_v1 }
 0x8c6   : > { %4453 = vst [vmem:[%s8075_s23 + $0x20] sm:$0xff] %v4438_v56 }
 0x8cb   : > { %v4440_v25 = vpop.f32.mrf.mxu3 }
 0x8cc   : > { %v4441_v58 = vadd.f32 %v5716_v59, %v4440_v25 }
 0x8ce   : > { %4454 = vst [vmem:[%s8075_s23 + $0x28] sm:$0xff] %v4441_v58 }
 0x8d3   : > { %v4443_v38 = vpop.f32.mrf.mxu3 }
 0x8d4   : > { %v4444_v61 = vadd.f32 %v5716_v59, %v4443_v38 }
 0x8d6   : > { %4455 = vst [vmem:[%s8075_s23 + $0x30] sm:$0xff] %v4444_v61 }
 0x8db   : > { %v4446_v31 = vpop.f32.mrf.mxu3 }
 0x8dc   : > { %v4447_v13 = vadd.f32 %v5716_v59, %v4446_v31 }
 0x8de   : > { %4456 = vst [vmem:[%s8075_s23 + $0x38] sm:$0xff] %v4447_v13 }
 0x8e5   : > { %v4512_v8 = vpop.f32.mrf.mxu0 }
 0x8e6   : > { %v4513_v5 = vadd.f32 %v4512_v8, %v4494_v41 }
 0x8e8   : > { %vm4516_vm5 = vcmp.gt.f32.partialorder %v4513_v5, 0.0  ;;  %v4517_v54 = vmul.f32 0.01, %v4513_v5 }
 0x8ea   : > { %v4518_v57 = vsel %vm4516_vm5, %v4513_v5, %v4517_v54 }
 0x8eb   : > { %v4519_v30 = vsel %vm4515_vm3, %v4513_v5, %v4518_v57 }
 0x8ec   : > { %5506 = vmatmul.msk.f32.vlgmr.msrb.gmra.mxu0 %vm4530_vm4, %v4519_v30 }
 0x969   : > { %v4555_v11 = vpop.f32.mrf.mxu0 }
 0x96a   : > { %v4556_v0 = vadd.f32 %v4555_v11, %v4529_v7 }
 0x96c   : > { %4558 = vst [vmem:[%s547_s22] sm:$0x1] %v4556_v0 }
 0x96d PF: > { %s28_s21 = sadd.s32 1, %s5887_s21  }
 0x96e   : > { %p25_p7 = scmp.ge.s32.totalorder %s28_s21, 4  }
 0x970   :  { %27 = sbr.rel (!%p25_p7) target bundleno = 3 (0x3), region = 129 }
 0x975   :  { %4592 = vsyncpa [#allocation3], 1 }
 0x976   :  { %4594 = vsyncpa [#allocation3 + $0x1], 1 }

</bundles_post_ra>
